<compile_context>
chip_gen: v7x
topology: tpu7x:2x2x1
jax: 0.10.0
libtpu: 0.0.40
codegen_flags: <defaults>
</compile_context>

<pallas_src>
import functools

import jax
import jax.numpy as jnp
from jax import lax
from jax.experimental import pallas as pl
from jax.experimental.pallas import tpu as pltpu

_INV_SQRT2 = 0.7071067811865476
_VMEM_LIMIT = 32 * 1024 * 1024          # safe scoped-VMEM budget on v5e/v6e/v7x


def _round_up(x, m):
    return (x + m - 1) // m * m


def _gelu(x):
    # exact GELU (torch.nn.GELU default): 0.5*x*(1+erf(x/sqrt(2)))
    return 0.5 * x * (1.0 + lax.erf(x * _INV_SQRT2))


def _bn_fold(bn_params, eps=1e-5):
    gamma, beta, mean, var = bn_params
    scale = gamma / jnp.sqrt(var + eps)
    return scale, beta - mean * scale


# --------------------------- the fused ConvMixer kernel ---------------------------

def _convmixer_kernel(x_ref, w0_ref, v0_ref, tap_ref, pw_ref, vb_ref,
                      fcw_ref, fcb_ref, o_ref, pad_ref, u_ref,
                      *, kh, kw, Hp, Wp, S):
    n = pl.program_id(1)                      # block index ("arbitrary" axis)
    nblk = pl.num_programs(1)
    p_h, p_w = kh // 2, kw // 2
    C = u_ref.shape[-1]
    PH, PW = Hp + 2 * p_h, Wp + 2 * p_w

    # ---- block 0 only: zero the halo ring + patch-embed -> GELU -> BN0 ----
    @pl.when(n == 0)
    def _init():
        if p_h:
            zrow = jnp.zeros((p_h, PW, C), jnp.float32)
            pad_ref[0:p_h, :, :] = zrow
            pad_ref[p_h + Hp:, :, :] = zrow
        if p_w:
            zcol = jnp.zeros((PH, p_w, C), jnp.float32)
            pad_ref[:, 0:p_w, :] = zcol
            pad_ref[:, p_w + Wp:, :] = zcol
        v0 = v0_ref[...]                                        # (3, C): bias, bn scale, bn shift
        emb = jnp.dot(x_ref[...], w0_ref[...], preferred_element_type=jnp.float32)
        emb = _gelu(emb + v0[0]) * v0[1] + v0[2]
        pad_ref[p_h:p_h + Hp, p_w:p_w + Wp, :] = emb.reshape(Hp, Wp, C)

    # ---- depthwise conv + GELU + BN1 + residual, strip-mined over H ----
    taps = tap_ref[...]                                         # (kh*kw, C)
    vb = vb_ref[...]                                            # (6, C)
    dw_b, s1, t1, pw_b, s2, t2 = vb[0], vb[1], vb[2], vb[3], vb[4], vb[5]

    dw_order = [d for d in range(kw) if d != p_w] + [p_w]       # centre column last

    def _strip(s, carry):
        r0 = pl.multiple_of(s * S, S)
        acc = None
        res = None
        for dw in dw_order:
            # one sublane-misaligned slice per kernel column; the dh offsets below
            # only re-select vregs of the already-loaded slab (free).
            slab = pad_ref[pl.ds(r0, S + 2 * p_h), dw:dw + Wp, :]
            for dh in range(kh):
                contrib = slab[dh:dh + S, :, :] * taps[dh * kw + dw, :]
                acc = contrib if acc is None else acc + contrib
            if dw == p_w:
                res = slab[p_h:p_h + S, :, :]                   # pre-conv act (residual)
        z = _gelu(acc + dw_b) * s1 + t1 + res                   # GELU -> BN1 -> +x
        u_ref[pl.ds(r0, S), :, :] = z
        return carry

    lax.fori_loop(0, Hp // S, _strip, 0)

    # ---- pointwise (1x1) conv on the MXU + GELU + BN2 ----
    u = u_ref[...].reshape(Hp * Wp, C)
    pre = jnp.dot(u, pw_ref[...], preferred_element_type=jnp.float32) + pw_b
    out = _gelu(pre) * s2 + t2                                  # (Hp*Wp, C)

    @pl.when(n < nblk - 1)
    def _carry_to_next_block():
        pad_ref[p_h:p_h + Hp, p_w:p_w + Wp, :] = out.reshape(Hp, Wp, C)

    @pl.when(n == nblk - 1)
    def _pool_and_classify():
        # AdaptiveAvgPool2d((1,1)) + Flatten + Linear:  mean(out) @ W == mean(out @ W)
        t = jnp.dot(out, fcw_ref[...], preferred_element_type=jnp.float32)
        o_ref[...] = (jnp.mean(t, axis=0, keepdims=True)
                      + fcb_ref[...]).astype(o_ref.dtype)


# ----------------------------------- parameters -----------------------------------

def init_params(key, size, num_blocks, kernel_size, patch_size, num_classes, in_ch=3):
    keys = iter(jax.random.split(key, 128))

    def nrm(shape, scale=0.05):
        return scale * jax.random.normal(next(keys), shape, jnp.float32)

    def bn(c):
        gamma = 1.0 + 0.1 * jax.random.normal(next(keys), (c,), jnp.float32)
        beta = 0.1 * jax.random.normal(next(keys), (c,), jnp.float32)
        mean = 0.1 * jax.random.normal(next(keys), (c,), jnp.float32)
        var = 0.5 + jax.random.uniform(next(keys), (c,), jnp.float32)
        return (gamma, beta, mean, var)

    params = {
        "patch_w": nrm((size, in_ch, patch_size, patch_size)),   # (Cout,Cin,ps,ps)
        "patch_b": nrm((size,), 0.1),
        "bn0": bn(size),
        "blocks": [],
        "fc_w": nrm((size, num_classes)),                        # (Cin, Cout)
        "fc_b": nrm((num_classes,), 0.1),
    }
    for _ in range(num_blocks):
        params["blocks"].append({
            "dw_w": nrm((size, kernel_size, kernel_size), 0.1),  # depthwise (C,kh,kw)
            "dw_b": nrm((size,), 0.1),
            "bn1": bn(size),
            "pw_w": nrm((size, size)),                           # (Cin, Cout)
            "pw_b": nrm((size,), 0.1),
            "bn2": bn(size),
        })
    return params


# ---------------------------------- forward pass ----------------------------------

def convmixer_forward(x_nchw, params, *, size, num_blocks, kernel_size, patch_size):
    # TODO(synk): even kernel_size needs torch-style asymmetric 'same' padding.
    assert kernel_size % 2 == 1 and num_blocks >= 1
    B, Cin, H, W = x_nchw.shape
    ps = patch_size
    Hp, Wp = H // ps, W // ps
    C = size
    kh = kw = kernel_size
    p_h, p_w = kh // 2, kw // 2

    # PatchEmbedding: Conv2d(3,C,ps,stride=ps) == patch extraction (XLA) + matmul (kernel)
    K = Cin * ps * ps
    Kp = _round_up(K, 128)                                       # lane-dense contraction dim
    xp = x_nchw.reshape(B, Cin, Hp, ps, Wp, ps)
    xp = jnp.transpose(xp, (0, 2, 4, 1, 3, 5)).reshape(B, Hp * Wp, K)
    xp = jnp.pad(xp, ((0, 0), (0, 0), (0, Kp - K)))
    w0 = jnp.pad(params["patch_w"].reshape(C, K).T, ((0, Kp - K), (0, 0)))   # (Kp, C)
    s0, t0 = _bn_fold(params["bn0"])
    v0 = jnp.stack([params["patch_b"], s0, t0], axis=0)                      # (3, C)

    # Stack per-block weights along a leading num_blocks axis (streamed per block step)
    taps, pw, vb = [], [], []
    for blk in params["blocks"]:
        taps.append(jnp.transpose(blk["dw_w"], (1, 2, 0)).reshape(kh * kw, C))
        pw.append(blk["pw_w"])
        s1, t1 = _bn_fold(blk["bn1"])
        s2, t2 = _bn_fold(blk["bn2"])
        vb.append(jnp.stack([blk["dw_b"], s1, t1, blk["pw_b"], s2, t2], axis=0))
    taps = jnp.stack(taps, 0)                                    # (nb, kh*kw, C)
    pw = jnp.stack(pw, 0)                                        # (nb, C, C)
    vb = jnp.stack(vb, 0)                                        # (nb, 6, C)

    # Classifier weights padded to a lane-dense 128-wide output (sliced outside)
    ncls = params["fc_w"].shape[1]
    NP = _round_up(ncls, 128)
    fcw = jnp.pad(params["fc_w"], ((0, 0), (0, NP - ncls)))                  # (C, NP)
    fcb = jnp.pad(params["fc_b"], (0, NP - ncls)).reshape(1, NP)

    S = 8 if Hp % 8 == 0 else Hp                                 # H strip size
    kern = functools.partial(_convmixer_kernel, kh=kh, kw=kw, Hp=Hp, Wp=Wp, S=S)

    logits = pl.pallas_call(
        kern,
        out_shape=jax.ShapeDtypeStruct((B, 1, NP), jnp.float32),
        grid=(B, num_blocks),
        in_specs=[
            pl.BlockSpec((None, Hp * Wp, Kp), lambda b, n: (b, 0, 0)),   # patches
            pl.BlockSpec((Kp, C), lambda b, n: (0, 0)),                  # patch-embed W
            pl.BlockSpec((3, C), lambda b, n: (0, 0)),                   # bias/BN0 vectors
            pl.BlockSpec((None, kh * kw, C), lambda b, n: (n, 0, 0)),    # depthwise taps
            pl.BlockSpec((None, C, C), lambda b, n: (n, 0, 0)),          # pointwise W
            pl.BlockSpec((None, 6, C), lambda b, n: (n, 0, 0)),          # per-block vectors
            pl.BlockSpec((C, NP), lambda b, n: (0, 0)),                  # classifier W
            pl.BlockSpec((1, NP), lambda b, n: (0, 0)),                  # classifier b
        ],
        out_specs=pl.BlockSpec((None, 1, NP), lambda b, n: (b, 0, 0)),
        scratch_shapes=[
            pltpu.VMEM((Hp + 2 * p_h, Wp + 2 * p_w, C), jnp.float32),    # zero-padded act
            pltpu.VMEM((Hp, Wp, C), jnp.float32),                        # residual-added act
        ],
        compiler_params=pltpu.CompilerParams(
            dimension_semantics=("parallel", "arbitrary"),
            vmem_limit_bytes=_VMEM_LIMIT),
    )(xp, w0, v0, taps, pw, vb, fcw, fcb)

    return logits.reshape(B, NP)[:, :ncls]


# -------------------------- pure-JAX reference (for checking) --------------------------

def _ref_forward(x, params, *, kernel_size, patch_size, eps=1e-5):
    hp = lax.Precision.HIGHEST

    def bn(v, p):
        gamma, beta, mean, var = p
        s = gamma / jnp.sqrt(var + eps)
        return v * s[None, :, None, None] + (beta - mean * s)[None, :, None, None]

    y = lax.conv_general_dilated(
        x, params["patch_w"], (patch_size, patch_size), "VALID",
        dimension_numbers=("NCHW", "OIHW", "NCHW"), precision=hp)
    y = y + params["patch_b"][None, :, None, None]
    y = bn(_gelu(y), params["bn0"])
    for blk in params["blocks"]:
        C = y.shape[1]
        dw = blk["dw_w"].reshape(C, 1, kernel_size, kernel_size)
        z = lax.conv_general_dilated(
            y, dw, (1, 1), "SAME", dimension_numbers=("NCHW", "OIHW", "NCHW"),
            feature_group_count=C, precision=hp)
        z = z + blk["dw_b"][None, :, None, None]
        y = bn(_gelu(z), blk["bn1"]) + y
        y = jnp.einsum("bchw,cd->bdhw", y, blk["pw_w"], precision=hp)
        y = y + blk["pw_b"][None, :, None, None]
        y = bn(_gelu(y), blk["bn2"])
    pooled = jnp.mean(y, axis=(2, 3))
    return jnp.dot(pooled, params["fc_w"], precision=hp) + params["fc_b"]


# --------------------------------------- main ---------------------------------------

if __name__ == "__main__":
    size, num_blocks, kernel_size, patch_size, num_classes = 128, 2, 5, 4, 10

    key = jax.random.PRNGKey(0)
    k_params, k_x = jax.random.split(key)
    params = init_params(k_params, size, num_blocks, kernel_size, patch_size, num_classes)

    x = jax.random.normal(k_x, (2, 3, 64, 64), jnp.float32)      # NCHW, like PyTorch

    fwd = jax.jit(functools.partial(
        convmixer_forward, size=size, num_blocks=num_blocks,
        kernel_size=kernel_size, patch_size=patch_size))
    out = jax.block_until_ready(fwd(x, params))

    assert out.shape == (2, num_classes), out.shape
    assert out.dtype == jnp.float32

    ref = _ref_forward(x, params, kernel_size=kernel_size, patch_size=patch_size)
    max_err = float(jnp.max(jnp.abs(out - ref)))
    assert max_err < 1e-2, f"mismatch vs pure-JAX reference: {max_err}"

    print("KERNEL_OK")
</pallas_src>

<mosaic_0001>
module attributes {stable_mosaic.version = 11 : i64} {
  func.func @_convmixer_kernel(%arg0: i32, %arg1: i32, %arg2: memref<1x256x128xf32, #tpu.memory_space<vmem>>, %arg3: memref<128x128xf32, #tpu.memory_space<vmem>>, %arg4: memref<3x128xf32, #tpu.memory_space<vmem>>, %arg5: memref<1x25x128xf32, #tpu.memory_space<vmem>>, %arg6: memref<1x128x128xf32, #tpu.memory_space<vmem>>, %arg7: memref<1x6x128xf32, #tpu.memory_space<vmem>>, %arg8: memref<128x128xf32, #tpu.memory_space<vmem>>, %arg9: memref<1x128xf32, #tpu.memory_space<vmem>>, %arg10: memref<1x1x128xf32, #tpu.memory_space<vmem>>, %arg11: memref<20x20x128xf32, #tpu.memory_space<vmem>>, %arg12: memref<16x16x128xf32, #tpu.memory_space<vmem>>) attributes {dimension_semantics = [#tpu.dimension_semantics<parallel>, #tpu.dimension_semantics<arbitrary>], iteration_bounds = array<i64: 2, 2>, scalar_prefetch = 0 : i64, scratch_operands = 2 : i64, tpu.core_type = #tpu.core_type<tc>, window_params = [{transform_indices = @transform_0, window_bounds = array<i64: 1, 256, 128>}, {pipeline_mode = #tpu.pipeline_mode<synchronous>, transform_indices = @transform_1, window_bounds = array<i64: 128, 128>}, {pipeline_mode = #tpu.pipeline_mode<synchronous>, transform_indices = @transform_2, window_bounds = array<i64: 3, 128>}, {transform_indices = @transform_3, window_bounds = array<i64: 1, 25, 128>}, {transform_indices = @transform_4, window_bounds = array<i64: 1, 128, 128>}, {transform_indices = @transform_5, window_bounds = array<i64: 1, 6, 128>}, {pipeline_mode = #tpu.pipeline_mode<synchronous>, transform_indices = @transform_6, window_bounds = array<i64: 128, 128>}, {pipeline_mode = #tpu.pipeline_mode<synchronous>, transform_indices = @transform_7, window_bounds = array<i64: 1, 128>}, {transform_indices = @transform_8, window_bounds = array<i64: 1, 1, 128>}]} {
    %c0_i32 = arith.constant 0 : i32
    %0 = arith.cmpi eq, %arg1, %c0_i32 : i32
    %1 = arith.extui %0 : i1 to i32
    %c0_i32_0 = arith.constant 0 : i32
    %2 = arith.cmpi ne, %1, %c0_i32_0 : i32
    scf.if %2 {
      %cst_21 = arith.constant 0.000000e+00 : f32
      %48 = vector.broadcast %cst_21 : f32 to vector<2x20x128xf32>
      %c0_22 = arith.constant 0 : index
      %c0_23 = arith.constant 0 : index
      %c0_24 = arith.constant 0 : index
      %49 = vector.load %arg11[%c0_22, %c0_23, %c0_24] : memref<20x20x128xf32, #tpu.memory_space<vmem>>, vector<2x20x128xf32>
      tpu.vector_store %arg11[%c0_22, %c0_23, %c0_24], %48 {strides = array<i32>} : memref<20x20x128xf32, #tpu.memory_space<vmem>>, vector<2x20x128xf32>,
      %c18 = arith.constant 18 : index
      %c0_25 = arith.constant 0 : index
      %c0_26 = arith.constant 0 : index
      %50 = vector.load %arg11[%c18, %c0_25, %c0_26] : memref<20x20x128xf32, #tpu.memory_space<vmem>>, vector<2x20x128xf32>
      tpu.vector_store %arg11[%c18, %c0_25, %c0_26], %48 {strides = array<i32>} : memref<20x20x128xf32, #tpu.memory_space<vmem>>, vector<2x20x128xf32>,
      %cst_27 = arith.constant 0.000000e+00 : f32
      %51 = vector.broadcast %cst_27 : f32 to vector<20x2x128xf32>
      %c0_28 = arith.constant 0 : index
      %c0_29 = arith.constant 0 : index
      %c0_30 = arith.constant 0 : index
      %52 = vector.load %arg11[%c0_28, %c0_29, %c0_30] : memref<20x20x128xf32, #tpu.memory_space<vmem>>, vector<20x2x128xf32>
      tpu.vector_store %arg11[%c0_28, %c0_29, %c0_30], %51 {strides = array<i32>} : memref<20x20x128xf32, #tpu.memory_space<vmem>>, vector<20x2x128xf32>,
      %c0_31 = arith.constant 0 : index
      %c18_32 = arith.constant 18 : index
      %c0_33 = arith.constant 0 : index
      %53 = vector.load %arg11[%c0_31, %c18_32, %c0_33] : memref<20x20x128xf32, #tpu.memory_space<vmem>>, vector<20x2x128xf32>
      tpu.vector_store %arg11[%c0_31, %c18_32, %c0_33], %51 {strides = array<i32>} : memref<20x20x128xf32, #tpu.memory_space<vmem>>, vector<20x2x128xf32>,
      %c0_34 = arith.constant 0 : index
      %c0_35 = arith.constant 0 : index
      %54 = vector.load %arg4[%c0_34, %c0_35] : memref<3x128xf32, #tpu.memory_space<vmem>>, vector<3x128xf32>
      %c0_36 = arith.constant 0 : index
      %c0_37 = arith.constant 0 : index
      %c0_38 = arith.constant 0 : index
      %55 = vector.load %arg2[%c0_36, %c0_37, %c0_38] : memref<1x256x128xf32, #tpu.memory_space<vmem>>, vector<1x256x128xf32>
      %56 = vector.shape_cast %55 : vector<1x256x128xf32> to vector<256x128xf32>
      %c0_39 = arith.constant 0 : index
      %c0_40 = arith.constant 0 : index
      %57 = vector.load %arg3[%c0_39, %c0_40] : memref<128x128xf32, #tpu.memory_space<vmem>>, vector<128x128xf32>
      %cst_41 = arith.constant dense<0.000000e+00> : vector<256x128xf32>
      %58 = tpu.matmul %56, %57, %cst_41 {dimension_numbers = #tpu.dot_dimension_numbers<[1], [0], [0], [1], [0, 0, 1, 1], [], []>} : vector<256x128xf32>, vector<128x128xf32>, vector<256x128xf32> -> vector<256x128xf32>
      %59 = vector.extract_strided_slice %54 {offsets = [0, 0], sizes = [1, 128], strides = [1, 1]} : vector<3x128xf32> to vector<1x128xf32>
      %60 = vector.shape_cast %59 : vector<1x128xf32> to vector<128xf32>
      %61 = vector.shape_cast %60 : vector<128xf32> to vector<1x128xf32>
      %62 = vector.broadcast %61 : vector<1x128xf32> to vector<256x128xf32>
      %63 = arith.addf %58, %62 : vector<256x128xf32>
      %cst_42 = arith.constant 5.000000e-01 : f32
      %64 = vector.broadcast %cst_42 : f32 to vector<256x128xf32>
      %65 = arith.mulf %64, %63 : vector<256x128xf32>
      %cst_43 = arith.constant 0.707106769 : f32
      %66 = vector.broadcast %cst_43 : f32 to vector<256x128xf32>
      %67 = arith.mulf %63, %66 : vector<256x128xf32>
      %68 = math.erf %67 : vector<256x128xf32>
      %cst_44 = arith.constant 1.000000e+00 : f32
      %69 = vector.broadcast %cst_44 : f32 to vector<256x128xf32>
      %70 = arith.addf %69, %68 : vector<256x128xf32>
      %71 = arith.mulf %65, %70 : vector<256x128xf32>
      %72 = vector.extract_strided_slice %54 {offsets = [1, 0], sizes = [1, 128], strides = [1, 1]} : vector<3x128xf32> to vector<1x128xf32>
      %73 = vector.shape_cast %72 : vector<1x128xf32> to vector<128xf32>
      %74 = vector.shape_cast %73 : vector<128xf32> to vector<1x128xf32>
      %75 = vector.broadcast %74 : vector<1x128xf32> to vector<256x128xf32>
      %76 = arith.mulf %71, %75 : vector<256x128xf32>
      %77 = vector.extract_strided_slice %54 {offsets = [2, 0], sizes = [1, 128], strides = [1, 1]} : vector<3x128xf32> to vector<1x128xf32>
      %78 = vector.shape_cast %77 : vector<1x128xf32> to vector<128xf32>
      %79 = vector.shape_cast %78 : vector<128xf32> to vector<1x128xf32>
      %80 = vector.broadcast %79 : vector<1x128xf32> to vector<256x128xf32>
      %81 = arith.addf %76, %80 : vector<256x128xf32>
      %82 = vector.shape_cast %81 : vector<256x128xf32> to vector<16x16x128xf32>
      %c2 = arith.constant 2 : index
      %c2_45 = arith.constant 2 : index
      %c0_46 = arith.constant 0 : index
      %83 = vector.load %arg11[%c2, %c2_45, %c0_46] : memref<20x20x128xf32, #tpu.memory_space<vmem>>, vector<16x16x128xf32>
      tpu.vector_store %arg11[%c2, %c2_45, %c0_46], %82 {strides = array<i32>} : memref<20x20x128xf32, #tpu.memory_space<vmem>>, vector<16x16x128xf32>,
    } else {
    }
    %c0 = arith.constant 0 : index
    %c0_1 = arith.constant 0 : index
    %c0_2 = arith.constant 0 : index
    %3 = vector.load %arg5[%c0, %c0_1, %c0_2] : memref<1x25x128xf32, #tpu.memory_space<vmem>>, vector<1x25x128xf32>
    %4 = vector.shape_cast %3 : vector<1x25x128xf32> to vector<25x128xf32>
    %c0_3 = arith.constant 0 : index
    %c0_4 = arith.constant 0 : index
    %c0_5 = arith.constant 0 : index
    %5 = vector.load %arg7[%c0_3, %c0_4, %c0_5] : memref<1x6x128xf32, #tpu.memory_space<vmem>>, vector<1x6x128xf32>
    %6 = vector.shape_cast %5 : vector<1x6x128xf32> to vector<6x128xf32>
    %7 = vector.extract_strided_slice %6 {offsets = [0, 0], sizes = [1, 128], strides = [1, 1]} : vector<6x128xf32> to vector<1x128xf32>
    %8 = vector.shape_cast %7 : vector<1x128xf32> to vector<128xf32>
    %9 = vector.extract_strided_slice %6 {offsets = [1, 0], sizes = [1, 128], strides = [1, 1]} : vector<6x128xf32> to vector<1x128xf32>
    %10 = vector.shape_cast %9 : vector<1x128xf32> to vector<128xf32>
    %11 = vector.extract_strided_slice %6 {offsets = [2, 0], sizes = [1, 128], strides = [1, 1]} : vector<6x128xf32> to vector<1x128xf32>
    %12 = vector.shape_cast %11 : vector<1x128xf32> to vector<128xf32>
    %13 = vector.extract_strided_slice %6 {offsets = [3, 0], sizes = [1, 128], strides = [1, 1]} : vector<6x128xf32> to vector<1x128xf32>
    %14 = vector.shape_cast %13 : vector<1x128xf32> to vector<128xf32>
    %15 = vector.extract_strided_slice %6 {offsets = [4, 0], sizes = [1, 128], strides = [1, 1]} : vector<6x128xf32> to vector<1x128xf32>
    %16 = vector.shape_cast %15 : vector<1x128xf32> to vector<128xf32>
    %17 = vector.extract_strided_slice %6 {offsets = [5, 0], sizes = [1, 128], strides = [1, 1]} : vector<6x128xf32> to vector<1x128xf32>
    %18 = vector.shape_cast %17 : vector<1x128xf32> to vector<128xf32>
    %c0_i32_6 = arith.constant 0 : i32
    %c2_i32 = arith.constant 2 : i32
    %19 = arith.addi %c0_i32_6, %c2_i32 : i32
    %c1_i32 = arith.constant 1 : i32
    scf.for %arg13 = %c0_i32_6 to %19 step %c1_i32  : i32 {
      %c8_i32 = arith.constant 8 : i32
      %48 = arith.muli %arg13, %c8_i32 : i32
      %49 = tpu.assume_multiple %48, 8 : i32
      %50 = arith.index_cast %49 : i32 to index
      %c0_21 = arith.constant 0 : index
      %c0_22 = arith.constant 0 : index
      %51 = vector.load %arg11[%50, %c0_21, %c0_22] : memref<20x20x128xf32, #tpu.memory_space<vmem>>, vector<12x16x128xf32>
      %52 = vector.extract_strided_slice %51 {offsets = [0, 0, 0], sizes = [8, 16, 128], strides = [1, 1, 1]} : vector<12x16x128xf32> to vector<8x16x128xf32>
      %53 = vector.extract_strided_slice %4 {offsets = [0, 0], sizes = [1, 128], strides = [1, 1]} : vector<25x128xf32> to vector<1x128xf32>
      %54 = vector.shape_cast %53 : vector<1x128xf32> to vector<128xf32>
      %55 = vector.shape_cast %54 : vector<128xf32> to vector<1x1x128xf32>
      %56 = vector.broadcast %55 : vector<1x1x128xf32> to vector<8x16x128xf32>
      %57 = arith.mulf %52, %56 : vector<8x16x128xf32>
      %58 = vector.extract_strided_slice %51 {offsets = [1, 0, 0], sizes = [8, 16, 128], strides = [1, 1, 1]} : vector<12x16x128xf32> to vector<8x16x128xf32>
      %59 = vector.extract_strided_slice %4 {offsets = [5, 0], sizes = [1, 128], strides = [1, 1]} : vector<25x128xf32> to vector<1x128xf32>
      %60 = vector.shape_cast %59 : vector<1x128xf32> to vector<128xf32>
      %61 = vector.shape_cast %60 : vector<128xf32> to vector<1x1x128xf32>
      %62 = vector.broadcast %61 : vector<1x1x128xf32> to vector<8x16x128xf32>
      %63 = arith.mulf %58, %62 : vector<8x16x128xf32>
      %64 = arith.addf %57, %63 : vector<8x16x128xf32>
      %65 = vector.extract_strided_slice %51 {offsets = [2, 0, 0], sizes = [8, 16, 128], strides = [1, 1, 1]} : vector<12x16x128xf32> to vector<8x16x128xf32>
      %66 = vector.extract_strided_slice %4 {offsets = [10, 0], sizes = [1, 128], strides = [1, 1]} : vector<25x128xf32> to vector<1x128xf32>
      %67 = vector.shape_cast %66 : vector<1x128xf32> to vector<128xf32>
      %68 = vector.shape_cast %67 : vector<128xf32> to vector<1x1x128xf32>
      %69 = vector.broadcast %68 : vector<1x1x128xf32> to vector<8x16x128xf32>
      %70 = arith.mulf %65, %69 : vector<8x16x128xf32>
      %71 = arith.addf %64, %70 : vector<8x16x128xf32>
      %72 = vector.extract_strided_slice %51 {offsets = [3, 0, 0], sizes = [8, 16, 128], strides = [1, 1, 1]} : vector<12x16x128xf32> to vector<8x16x128xf32>
      %73 = vector.extract_strided_slice %4 {offsets = [15, 0], sizes = [1, 128], strides = [1, 1]} : vector<25x128xf32> to vector<1x128xf32>
      %74 = vector.shape_cast %73 : vector<1x128xf32> to vector<128xf32>
      %75 = vector.shape_cast %74 : vector<128xf32> to vector<1x1x128xf32>
      %76 = vector.broadcast %75 : vector<1x1x128xf32> to vector<8x16x128xf32>
      %77 = arith.mulf %72, %76 : vector<8x16x128xf32>
      %78 = arith.addf %71, %77 : vector<8x16x128xf32>
      %79 = vector.extract_strided_slice %51 {offsets = [4, 0, 0], sizes = [8, 16, 128], strides = [1, 1, 1]} : vector<12x16x128xf32> to vector<8x16x128xf32>
      %80 = vector.extract_strided_slice %4 {offsets = [20, 0], sizes = [1, 128], strides = [1, 1]} : vector<25x128xf32> to vector<1x128xf32>
      %81 = vector.shape_cast %80 : vector<1x128xf32> to vector<128xf32>
      %82 = vector.shape_cast %81 : vector<128xf32> to vector<1x1x128xf32>
      %83 = vector.broadcast %82 : vector<1x1x128xf32> to vector<8x16x128xf32>
      %84 = arith.mulf %79, %83 : vector<8x16x128xf32>
      %85 = arith.addf %78, %84 : vector<8x16x128xf32>
      %86 = arith.index_cast %49 : i32 to index
      %c1 = arith.constant 1 : index
      %c0_23 = arith.constant 0 : index
      %87 = vector.load %arg11[%86, %c1, %c0_23] : memref<20x20x128xf32, #tpu.memory_space<vmem>>, vector<12x16x128xf32>
      %88 = vector.extract_strided_slice %87 {offsets = [0, 0, 0], sizes = [8, 16, 128], strides = [1, 1, 1]} : vector<12x16x128xf32> to vector<8x16x128xf32>
      %89 = vector.extract_strided_slice %4 {offsets = [1, 0], sizes = [1, 128], strides = [1, 1]} : vector<25x128xf32> to vector<1x128xf32>
      %90 = vector.shape_cast %89 : vector<1x128xf32> to vector<128xf32>
      %91 = vector.shape_cast %90 : vector<128xf32> to vector<1x1x128xf32>
      %92 = vector.broadcast %91 : vector<1x1x128xf32> to vector<8x16x128xf32>
      %93 = arith.mulf %88, %92 : vector<8x16x128xf32>
      %94 = arith.addf %85, %93 : vector<8x16x128xf32>
      %95 = vector.extract_strided_slice %87 {offsets = [1, 0, 0], sizes = [8, 16, 128], strides = [1, 1, 1]} : vector<12x16x128xf32> to vector<8x16x128xf32>
      %96 = vector.extract_strided_slice %4 {offsets = [6, 0], sizes = [1, 128], strides = [1, 1]} : vector<25x128xf32> to vector<1x128xf32>
      %97 = vector.shape_cast %96 : vector<1x128xf32> to vector<128xf32>
      %98 = vector.shape_cast %97 : vector<128xf32> to vector<1x1x128xf32>
      %99 = vector.broadcast %98 : vector<1x1x128xf32> to vector<8x16x128xf32>
      %100 = arith.mulf %95, %99 : vector<8x16x128xf32>
      %101 = arith.addf %94, %100 : vector<8x16x128xf32>
      %102 = vector.extract_strided_slice %87 {offsets = [2, 0, 0], sizes = [8, 16, 128], strides = [1, 1, 1]} : vector<12x16x128xf32> to vector<8x16x128xf32>
      %103 = vector.extract_strided_slice %4 {offsets = [11, 0], sizes = [1, 128], strides = [1, 1]} : vector<25x128xf32> to vector<1x128xf32>
      %104 = vector.shape_cast %103 : vector<1x128xf32> to vector<128xf32>
      %105 = vector.shape_cast %104 : vector<128xf32> to vector<1x1x128xf32>
      %106 = vector.broadcast %105 : vector<1x1x128xf32> to vector<8x16x128xf32>
      %107 = arith.mulf %102, %106 : vector<8x16x128xf32>
      %108 = arith.addf %101, %107 : vector<8x16x128xf32>
      %109 = vector.extract_strided_slice %87 {offsets = [3, 0, 0], sizes = [8, 16, 128], strides = [1, 1, 1]} : vector<12x16x128xf32> to vector<8x16x128xf32>
      %110 = vector.extract_strided_slice %4 {offsets = [16, 0], sizes = [1, 128], strides = [1, 1]} : vector<25x128xf32> to vector<1x128xf32>
      %111 = vector.shape_cast %110 : vector<1x128xf32> to vector<128xf32>
      %112 = vector.shape_cast %111 : vector<128xf32> to vector<1x1x128xf32>
      %113 = vector.broadcast %112 : vector<1x1x128xf32> to vector<8x16x128xf32>
      %114 = arith.mulf %109, %113 : vector<8x16x128xf32>
      %115 = arith.addf %108, %114 : vector<8x16x128xf32>
      %116 = vector.extract_strided_slice %87 {offsets = [4, 0, 0], sizes = [8, 16, 128], strides = [1, 1, 1]} : vector<12x16x128xf32> to vector<8x16x128xf32>
      %117 = vector.extract_strided_slice %4 {offsets = [21, 0], sizes = [1, 128], strides = [1, 1]} : vector<25x128xf32> to vector<1x128xf32>
      %118 = vector.shape_cast %117 : vector<1x128xf32> to vector<128xf32>
      %119 = vector.shape_cast %118 : vector<128xf32> to vector<1x1x128xf32>
      %120 = vector.broadcast %119 : vector<1x1x128xf32> to vector<8x16x128xf32>
      %121 = arith.mulf %116, %120 : vector<8x16x128xf32>
      %122 = arith.addf %115, %121 : vector<8x16x128xf32>
      %123 = arith.index_cast %49 : i32 to index
      %c3 = arith.constant 3 : index
      %c0_24 = arith.constant 0 : index
      %124 = vector.load %arg11[%123, %c3, %c0_24] : memref<20x20x128xf32, #tpu.memory_space<vmem>>, vector<12x16x128xf32>
      %125 = vector.extract_strided_slice %124 {offsets = [0, 0, 0], sizes = [8, 16, 128], strides = [1, 1, 1]} : vector<12x16x128xf32> to vector<8x16x128xf32>
      %126 = vector.extract_strided_slice %4 {offsets = [3, 0], sizes = [1, 128], strides = [1, 1]} : vector<25x128xf32> to vector<1x128xf32>
      %127 = vector.shape_cast %126 : vector<1x128xf32> to vector<128xf32>
      %128 = vector.shape_cast %127 : vector<128xf32> to vector<1x1x128xf32>
      %129 = vector.broadcast %128 : vector<1x1x128xf32> to vector<8x16x128xf32>
      %130 = arith.mulf %125, %129 : vector<8x16x128xf32>
      %131 = arith.addf %122, %130 : vector<8x16x128xf32>
      %132 = vector.extract_strided_slice %124 {offsets = [1, 0, 0], sizes = [8, 16, 128], strides = [1, 1, 1]} : vector<12x16x128xf32> to vector<8x16x128xf32>
      %133 = vector.extract_strided_slice %4 {offsets = [8, 0], sizes = [1, 128], strides = [1, 1]} : vector<25x128xf32> to vector<1x128xf32>
      %134 = vector.shape_cast %133 : vector<1x128xf32> to vector<128xf32>
      %135 = vector.shape_cast %134 : vector<128xf32> to vector<1x1x128xf32>
      %136 = vector.broadcast %135 : vector<1x1x128xf32> to vector<8x16x128xf32>
      %137 = arith.mulf %132, %136 : vector<8x16x128xf32>
      %138 = arith.addf %131, %137 : vector<8x16x128xf32>
      %139 = vector.extract_strided_slice %124 {offsets = [2, 0, 0], sizes = [8, 16, 128], strides = [1, 1, 1]} : vector<12x16x128xf32> to vector<8x16x128xf32>
      %140 = vector.extract_strided_slice %4 {offsets = [13, 0], sizes = [1, 128], strides = [1, 1]} : vector<25x128xf32> to vector<1x128xf32>
      %141 = vector.shape_cast %140 : vector<1x128xf32> to vector<128xf32>
      %142 = vector.shape_cast %141 : vector<128xf32> to vector<1x1x128xf32>
      %143 = vector.broadcast %142 : vector<1x1x128xf32> to vector<8x16x128xf32>
      %144 = arith.mulf %139, %143 : vector<8x16x128xf32>
      %145 = arith.addf %138, %144 : vector<8x16x128xf32>
      %146 = vector.extract_strided_slice %124 {offsets = [3, 0, 0], sizes = [8, 16, 128], strides = [1, 1, 1]} : vector<12x16x128xf32> to vector<8x16x128xf32>
      %147 = vector.extract_strided_slice %4 {offsets = [18, 0], sizes = [1, 128], strides = [1, 1]} : vector<25x128xf32> to vector<1x128xf32>
      %148 = vector.shape_cast %147 : vector<1x128xf32> to vector<128xf32>
      %149 = vector.shape_cast %148 : vector<128xf32> to vector<1x1x128xf32>
      %150 = vector.broadcast %149 : vector<1x1x128xf32> to vector<8x16x128xf32>
      %151 = arith.mulf %146, %150 : vector<8x16x128xf32>
      %152 = arith.addf %145, %151 : vector<8x16x128xf32>
      %153 = vector.extract_strided_slice %124 {offsets = [4, 0, 0], sizes = [8, 16, 128], strides = [1, 1, 1]} : vector<12x16x128xf32> to vector<8x16x128xf32>
      %154 = vector.extract_strided_slice %4 {offsets = [23, 0], sizes = [1, 128], strides = [1, 1]} : vector<25x128xf32> to vector<1x128xf32>
      %155 = vector.shape_cast %154 : vector<1x128xf32> to vector<128xf32>
      %156 = vector.shape_cast %155 : vector<128xf32> to vector<1x1x128xf32>
      %157 = vector.broadcast %156 : vector<1x1x128xf32> to vector<8x16x128xf32>
      %158 = arith.mulf %153, %157 : vector<8x16x128xf32>
      %159 = arith.addf %152, %158 : vector<8x16x128xf32>
      %160 = arith.index_cast %49 : i32 to index
      %c4 = arith.constant 4 : index
      %c0_25 = arith.constant 0 : index
      %161 = vector.load %arg11[%160, %c4, %c0_25] : memref<20x20x128xf32, #tpu.memory_space<vmem>>, vector<12x16x128xf32>
      %162 = vector.extract_strided_slice %161 {offsets = [0, 0, 0], sizes = [8, 16, 128], strides = [1, 1, 1]} : vector<12x16x128xf32> to vector<8x16x128xf32>
      %163 = vector.extract_strided_slice %4 {offsets = [4, 0], sizes = [1, 128], strides = [1, 1]} : vector<25x128xf32> to vector<1x128xf32>
      %164 = vector.shape_cast %163 : vector<1x128xf32> to vector<128xf32>
      %165 = vector.shape_cast %164 : vector<128xf32> to vector<1x1x128xf32>
      %166 = vector.broadcast %165 : vector<1x1x128xf32> to vector<8x16x128xf32>
      %167 = arith.mulf %162, %166 : vector<8x16x128xf32>
      %168 = arith.addf %159, %167 : vector<8x16x128xf32>
      %169 = vector.extract_strided_slice %161 {offsets = [1, 0, 0], sizes = [8, 16, 128], strides = [1, 1, 1]} : vector<12x16x128xf32> to vector<8x16x128xf32>
      %170 = vector.extract_strided_slice %4 {offsets = [9, 0], sizes = [1, 128], strides = [1, 1]} : vector<25x128xf32> to vector<1x128xf32>
      %171 = vector.shape_cast %170 : vector<1x128xf32> to vector<128xf32>
      %172 = vector.shape_cast %171 : vector<128xf32> to vector<1x1x128xf32>
      %173 = vector.broadcast %172 : vector<1x1x128xf32> to vector<8x16x128xf32>
      %174 = arith.mulf %169, %173 : vector<8x16x128xf32>
      %175 = arith.addf %168, %174 : vector<8x16x128xf32>
      %176 = vector.extract_strided_slice %161 {offsets = [2, 0, 0], sizes = [8, 16, 128], strides = [1, 1, 1]} : vector<12x16x128xf32> to vector<8x16x128xf32>
      %177 = vector.extract_strided_slice %4 {offsets = [14, 0], sizes = [1, 128], strides = [1, 1]} : vector<25x128xf32> to vector<1x128xf32>
      %178 = vector.shape_cast %177 : vector<1x128xf32> to vector<128xf32>
      %179 = vector.shape_cast %178 : vector<128xf32> to vector<1x1x128xf32>
      %180 = vector.broadcast %179 : vector<1x1x128xf32> to vector<8x16x128xf32>
      %181 = arith.mulf %176, %180 : vector<8x16x128xf32>
      %182 = arith.addf %175, %181 : vector<8x16x128xf32>
      %183 = vector.extract_strided_slice %161 {offsets = [3, 0, 0], sizes = [8, 16, 128], strides = [1, 1, 1]} : vector<12x16x128xf32> to vector<8x16x128xf32>
      %184 = vector.extract_strided_slice %4 {offsets = [19, 0], sizes = [1, 128], strides = [1, 1]} : vector<25x128xf32> to vector<1x128xf32>
      %185 = vector.shape_cast %184 : vector<1x128xf32> to vector<128xf32>
      %186 = vector.shape_cast %185 : vector<128xf32> to vector<1x1x128xf32>
      %187 = vector.broadcast %186 : vector<1x1x128xf32> to vector<8x16x128xf32>
      %188 = arith.mulf %183, %187 : vector<8x16x128xf32>
      %189 = arith.addf %182, %188 : vector<8x16x128xf32>
      %190 = vector.extract_strided_slice %161 {offsets = [4, 0, 0], sizes = [8, 16, 128], strides = [1, 1, 1]} : vector<12x16x128xf32> to vector<8x16x128xf32>
      %191 = vector.extract_strided_slice %4 {offsets = [24, 0], sizes = [1, 128], strides = [1, 1]} : vector<25x128xf32> to vector<1x128xf32>
      %192 = vector.shape_cast %191 : vector<1x128xf32> to vector<128xf32>
      %193 = vector.shape_cast %192 : vector<128xf32> to vector<1x1x128xf32>
      %194 = vector.broadcast %193 : vector<1x1x128xf32> to vector<8x16x128xf32>
      %195 = arith.mulf %190, %194 : vector<8x16x128xf32>
      %196 = arith.addf %189, %195 : vector<8x16x128xf32>
      %197 = arith.index_cast %49 : i32 to index
      %c2 = arith.constant 2 : index
      %c0_26 = arith.constant 0 : index
      %198 = vector.load %arg11[%197, %c2, %c0_26] : memref<20x20x128xf32, #tpu.memory_space<vmem>>, vector<12x16x128xf32>
      %199 = vector.extract_strided_slice %198 {offsets = [0, 0, 0], sizes = [8, 16, 128], strides = [1, 1, 1]} : vector<12x16x128xf32> to vector<8x16x128xf32>
      %200 = vector.extract_strided_slice %4 {offsets = [2, 0], sizes = [1, 128], strides = [1, 1]} : vector<25x128xf32> to vector<1x128xf32>
      %201 = vector.shape_cast %200 : vector<1x128xf32> to vector<128xf32>
      %202 = vector.shape_cast %201 : vector<128xf32> to vector<1x1x128xf32>
      %203 = vector.broadcast %202 : vector<1x1x128xf32> to vector<8x16x128xf32>
      %204 = arith.mulf %199, %203 : vector<8x16x128xf32>
      %205 = arith.addf %196, %204 : vector<8x16x128xf32>
      %206 = vector.extract_strided_slice %198 {offsets = [1, 0, 0], sizes = [8, 16, 128], strides = [1, 1, 1]} : vector<12x16x128xf32> to vector<8x16x128xf32>
      %207 = vector.extract_strided_slice %4 {offsets = [7, 0], sizes = [1, 128], strides = [1, 1]} : vector<25x128xf32> to vector<1x128xf32>
      %208 = vector.shape_cast %207 : vector<1x128xf32> to vector<128xf32>
      %209 = vector.shape_cast %208 : vector<128xf32> to vector<1x1x128xf32>
      %210 = vector.broadcast %209 : vector<1x1x128xf32> to vector<8x16x128xf32>
      %211 = arith.mulf %206, %210 : vector<8x16x128xf32>
      %212 = arith.addf %205, %211 : vector<8x16x128xf32>
      %213 = vector.extract_strided_slice %198 {offsets = [2, 0, 0], sizes = [8, 16, 128], strides = [1, 1, 1]} : vector<12x16x128xf32> to vector<8x16x128xf32>
      %214 = vector.extract_strided_slice %4 {offsets = [12, 0], sizes = [1, 128], strides = [1, 1]} : vector<25x128xf32> to vector<1x128xf32>
      %215 = vector.shape_cast %214 : vector<1x128xf32> to vector<128xf32>
      %216 = vector.shape_cast %215 : vector<128xf32> to vector<1x1x128xf32>
      %217 = vector.broadcast %216 : vector<1x1x128xf32> to vector<8x16x128xf32>
      %218 = arith.mulf %213, %217 : vector<8x16x128xf32>
      %219 = arith.addf %212, %218 : vector<8x16x128xf32>
      %220 = vector.extract_strided_slice %198 {offsets = [3, 0, 0], sizes = [8, 16, 128], strides = [1, 1, 1]} : vector<12x16x128xf32> to vector<8x16x128xf32>
      %221 = vector.extract_strided_slice %4 {offsets = [17, 0], sizes = [1, 128], strides = [1, 1]} : vector<25x128xf32> to vector<1x128xf32>
      %222 = vector.shape_cast %221 : vector<1x128xf32> to vector<128xf32>
      %223 = vector.shape_cast %222 : vector<128xf32> to vector<1x1x128xf32>
      %224 = vector.broadcast %223 : vector<1x1x128xf32> to vector<8x16x128xf32>
      %225 = arith.mulf %220, %224 : vector<8x16x128xf32>
      %226 = arith.addf %219, %225 : vector<8x16x128xf32>
      %227 = vector.extract_strided_slice %198 {offsets = [4, 0, 0], sizes = [8, 16, 128], strides = [1, 1, 1]} : vector<12x16x128xf32> to vector<8x16x128xf32>
      %228 = vector.extract_strided_slice %4 {offsets = [22, 0], sizes = [1, 128], strides = [1, 1]} : vector<25x128xf32> to vector<1x128xf32>
      %229 = vector.shape_cast %228 : vector<1x128xf32> to vector<128xf32>
      %230 = vector.shape_cast %229 : vector<128xf32> to vector<1x1x128xf32>
      %231 = vector.broadcast %230 : vector<1x1x128xf32> to vector<8x16x128xf32>
      %232 = arith.mulf %227, %231 : vector<8x16x128xf32>
      %233 = arith.addf %226, %232 : vector<8x16x128xf32>
      %234 = vector.extract_strided_slice %198 {offsets = [2, 0, 0], sizes = [8, 16, 128], strides = [1, 1, 1]} : vector<12x16x128xf32> to vector<8x16x128xf32>
      %235 = vector.shape_cast %8 : vector<128xf32> to vector<1x1x128xf32>
      %236 = vector.broadcast %235 : vector<1x1x128xf32> to vector<8x16x128xf32>
      %237 = arith.addf %233, %236 : vector<8x16x128xf32>
      %cst_27 = arith.constant 5.000000e-01 : f32
      %238 = vector.broadcast %cst_27 : f32 to vector<8x16x128xf32>
      %239 = arith.mulf %238, %237 : vector<8x16x128xf32>
      %cst_28 = arith.constant 0.707106769 : f32
      %240 = vector.broadcast %cst_28 : f32 to vector<8x16x128xf32>
      %241 = arith.mulf %237, %240 : vector<8x16x128xf32>
      %242 = math.erf %241 : vector<8x16x128xf32>
      %cst_29 = arith.constant 1.000000e+00 : f32
      %243 = vector.broadcast %cst_29 : f32 to vector<8x16x128xf32>
      %244 = arith.addf %243, %242 : vector<8x16x128xf32>
      %245 = arith.mulf %239, %244 : vector<8x16x128xf32>
      %246 = vector.shape_cast %10 : vector<128xf32> to vector<1x1x128xf32>
      %247 = vector.broadcast %246 : vector<1x1x128xf32> to vector<8x16x128xf32>
      %248 = arith.mulf %245, %247 : vector<8x16x128xf32>
      %249 = vector.shape_cast %12 : vector<128xf32> to vector<1x1x128xf32>
      %250 = vector.broadcast %249 : vector<1x1x128xf32> to vector<8x16x128xf32>
      %251 = arith.addf %248, %250 : vector<8x16x128xf32>
      %252 = arith.addf %251, %234 : vector<8x16x128xf32>
      %253 = arith.index_cast %49 : i32 to index
      %c0_30 = arith.constant 0 : index
      %c0_31 = arith.constant 0 : index
      %254 = vector.load %arg12[%253, %c0_30, %c0_31] : memref<16x16x128xf32, #tpu.memory_space<vmem>>, vector<8x16x128xf32>
      tpu.vector_store %arg12[%253, %c0_30, %c0_31], %252 {strides = array<i32>} : memref<16x16x128xf32, #tpu.memory_space<vmem>>, vector<8x16x128xf32>,
    }
    %c2_i32_7 = arith.constant 2 : i32
    %c0_8 = arith.constant 0 : index
    %c0_9 = arith.constant 0 : index
    %c0_10 = arith.constant 0 : index
    %20 = vector.load %arg12[%c0_8, %c0_9, %c0_10] : memref<16x16x128xf32, #tpu.memory_space<vmem>>, vector<16x16x128xf32>
    %21 = vector.shape_cast %20 : vector<16x16x128xf32> to vector<256x128xf32>
    %c0_11 = arith.constant 0 : index
    %c0_12 = arith.constant 0 : index
    %c0_13 = arith.constant 0 : index
    %22 = vector.load %arg6[%c0_11, %c0_12, %c0_13] : memref<1x128x128xf32, #tpu.memory_space<vmem>>, vector<1x128x128xf32>
    %23 = vector.shape_cast %22 : vector<1x128x128xf32> to vector<128x128xf32>
    %cst = arith.constant dense<0.000000e+00> : vector<256x128xf32>
    %24 = tpu.matmul %21, %23, %cst {dimension_numbers = #tpu.dot_dimension_numbers<[1], [0], [0], [1], [0, 0, 1, 1], [], []>} : vector<256x128xf32>, vector<128x128xf32>, vector<256x128xf32> -> vector<256x128xf32>
    %25 = vector.shape_cast %14 : vector<128xf32> to vector<1x128xf32>
    %26 = vector.broadcast %25 : vector<1x128xf32> to vector<256x128xf32>
    %27 = arith.addf %24, %26 : vector<256x128xf32>
    %cst_14 = arith.constant 5.000000e-01 : f32
    %28 = vector.broadcast %cst_14 : f32 to vector<256x128xf32>
    %29 = arith.mulf %28, %27 : vector<256x128xf32>
    %cst_15 = arith.constant 0.707106769 : f32
    %30 = vector.broadcast %cst_15 : f32 to vector<256x128xf32>
    %31 = arith.mulf %27, %30 : vector<256x128xf32>
    %32 = math.erf %31 : vector<256x128xf32>
    %cst_16 = arith.constant 1.000000e+00 : f32
    %33 = vector.broadcast %cst_16 : f32 to vector<256x128xf32>
    %34 = arith.addf %33, %32 : vector<256x128xf32>
    %35 = arith.mulf %29, %34 : vector<256x128xf32>
    %36 = vector.shape_cast %16 : vector<128xf32> to vector<1x128xf32>
    %37 = vector.broadcast %36 : vector<1x128xf32> to vector<256x128xf32>
    %38 = arith.mulf %35, %37 : vector<256x128xf32>
    %39 = vector.shape_cast %18 : vector<128xf32> to vector<1x128xf32>
    %40 = vector.broadcast %39 : vector<1x128xf32> to vector<256x128xf32>
    %41 = arith.addf %38, %40 : vector<256x128xf32>
    %c1_i32_17 = arith.constant 1 : i32
    %42 = arith.cmpi slt, %arg1, %c1_i32_17 : i32
    %43 = arith.extui %42 : i1 to i32
    %c0_i32_18 = arith.constant 0 : i32
    %44 = arith.cmpi ne, %43, %c0_i32_18 : i32
    scf.if %44 {
      %48 = vector.shape_cast %41 : vector<256x128xf32> to vector<16x16x128xf32>
      %c2 = arith.constant 2 : index
      %c2_21 = arith.constant 2 : index
      %c0_22 = arith.constant 0 : index
      %49 = vector.load %arg11[%c2, %c2_21, %c0_22] : memref<20x20x128xf32, #tpu.memory_space<vmem>>, vector<16x16x128xf32>
      tpu.vector_store %arg11[%c2, %c2_21, %c0_22], %48 {strides = array<i32>} : memref<20x20x128xf32, #tpu.memory_space<vmem>>, vector<16x16x128xf32>,
    } else {
    }
    %c1_i32_19 = arith.constant 1 : i32
    %45 = arith.cmpi eq, %arg1, %c1_i32_19 : i32
    %46 = arith.extui %45 : i1 to i32
    %c0_i32_20 = arith.constant 0 : i32
    %47 = arith.cmpi ne, %46, %c0_i32_20 : i32
    scf.if %47 {
      %c0_21 = arith.constant 0 : index
      %c0_22 = arith.constant 0 : index
      %48 = vector.load %arg8[%c0_21, %c0_22] : memref<128x128xf32, #tpu.memory_space<vmem>>, vector<128x128xf32>
      %cst_23 = arith.constant dense<0.000000e+00> : vector<256x128xf32>
      %49 = tpu.matmul %41, %48, %cst_23 {dimension_numbers = #tpu.dot_dimension_numbers<[1], [0], [0], [1], [0, 0, 1, 1], [], []>} : vector<256x128xf32>, vector<128x128xf32>, vector<256x128xf32> -> vector<256x128xf32>
      %cst_24 = arith.constant dense<0.000000e+00> : vector<128xf32>
      %50 = vector.multi_reduction <add>, %49, %cst_24 [0] : vector<256x128xf32> to vector<128xf32>
      %51 = vector.shape_cast %50 : vector<128xf32> to vector<1x128xf32>
      %cst_25 = arith.constant 2.560000e+02 : f32
      %52 = vector.broadcast %cst_25 : f32 to vector<1x128xf32>
      %53 = arith.divf %51, %52 : vector<1x128xf32>
      %c0_26 = arith.constant 0 : index
      %c0_27 = arith.constant 0 : index
      %54 = vector.load %arg9[%c0_26, %c0_27] : memref<1x128xf32, #tpu.memory_space<vmem>>, vector<1x128xf32>
      %55 = arith.addf %53, %54 : vector<1x128xf32>
      %c0_28 = arith.constant 0 : index
      %c0_29 = arith.constant 0 : index
      %c0_30 = arith.constant 0 : index
      %56 = vector.load %arg10[%c0_28, %c0_29, %c0_30] : memref<1x1x128xf32, #tpu.memory_space<vmem>>, vector<1x1x128xf32>
      %57 = vector.shape_cast %56 : vector<1x1x128xf32> to vector<1x128xf32>
      %58 = vector.shape_cast %55 : vector<1x128xf32> to vector<1x1x128xf32>
      tpu.vector_store %arg10[%c0_28, %c0_29, %c0_30], %58 {strides = array<i32>} : memref<1x1x128xf32, #tpu.memory_space<vmem>>, vector<1x1x128xf32>,
    } else {
    }
    return
  }
  func.func @transform_0(%arg0: i32, %arg1: i32) -> (i32, i32, i32) {
    %c0_i32 = arith.constant 0 : i32
    %c0_i32_0 = arith.constant 0 : i32
    %c0_i32_1 = arith.constant 0 : i32
    return %arg0, %c0_i32, %c0_i32_0 : i32, i32, i32
  }
  func.func @transform_1(%arg0: i32, %arg1: i32) -> (i32, i32) {
    %c0_i32 = arith.constant 0 : i32
    %c0_i32_0 = arith.constant 0 : i32
    %c0_i32_1 = arith.constant 0 : i32
    return %c0_i32, %c0_i32_0 : i32, i32
  }
  func.func @transform_2(%arg0: i32, %arg1: i32) -> (i32, i32) {
    %c0_i32 = arith.constant 0 : i32
    %c0_i32_0 = arith.constant 0 : i32
    %c0_i32_1 = arith.constant 0 : i32
    return %c0_i32, %c0_i32_0 : i32, i32
  }
  func.func @transform_3(%arg0: i32, %arg1: i32) -> (i32, i32, i32) {
    %c0_i32 = arith.constant 0 : i32
    %c0_i32_0 = arith.constant 0 : i32
    %c0_i32_1 = arith.constant 0 : i32
    return %arg1, %c0_i32, %c0_i32_0 : i32, i32, i32
  }
  func.func @transform_4(%arg0: i32, %arg1: i32) -> (i32, i32, i32) {
    %c0_i32 = arith.constant 0 : i32
    %c0_i32_0 = arith.constant 0 : i32
    %c0_i32_1 = arith.constant 0 : i32
    return %arg1, %c0_i32, %c0_i32_0 : i32, i32, i32
  }
  func.func @transform_5(%arg0: i32, %arg1: i32) -> (i32, i32, i32) {
    %c0_i32 = arith.constant 0 : i32
    %c0_i32_0 = arith.constant 0 : i32
    %c0_i32_1 = arith.constant 0 : i32
    return %arg1, %c0_i32, %c0_i32_0 : i32, i32, i32
  }
  func.func @transform_6(%arg0: i32, %arg1: i32) -> (i32, i32) {
    %c0_i32 = arith.constant 0 : i32
    %c0_i32_0 = arith.constant 0 : i32
    %c0_i32_1 = arith.constant 0 : i32
    return %c0_i32, %c0_i32_0 : i32, i32
  }
  func.func @transform_7(%arg0: i32, %arg1: i32) -> (i32, i32) {
    %c0_i32 = arith.constant 0 : i32
    %c0_i32_0 = arith.constant 0 : i32
    %c0_i32_1 = arith.constant 0 : i32
    return %c0_i32, %c0_i32_0 : i32, i32
  }
  func.func @transform_8(%arg0: i32, %arg1: i32) -> (i32, i32, i32) {
    %c0_i32 = arith.constant 0 : i32
    %c0_i32_0 = arith.constant 0 : i32
    %c0_i32_1 = arith.constant 0 : i32
    return %arg0, %c0_i32, %c0_i32_0 : i32, i32, i32
  }
}

</mosaic_0001>

<bundles_post_ra>
// kernel: convmixer_forward.1
= control target key start
LH: loop header
LB: loop body
LE: loop exit
PB: predicated region body
PF: predicated region fallthrough
CT: control target
= control target key end

     0   :  { %13 = vsyncpa [#allocation5], 0  ;;  %s6074_s0 = inlined_call_operand.vmem [shape: f32[2,256,128], index: 0, kind: input, shape index: {}]   ;;  %s6075_s1 = inlined_call_operand.vmem [shape: f32[128,128], index: 1, kind: input, shape index: {}]   ;;  %s6076_s2 = inlined_call_operand.vmem [shape: f32[3,128], index: 2, kind: input, shape index: {}]   ;;  %s6077_s3 = inlined_call_operand.vmem [shape: f32[2,25,128], index: 3, kind: input, shape index: {}]   ;;  %s6078_s4 = inlined_call_operand.vmem [shape: f32[2,128,128], index: 4, kind: input, shape index: {}]   ;;  %s6079_s5 = inlined_call_operand.vmem [shape: f32[2,6,128], index: 5, kind: input, shape index: {}]   ;;  %s6080_s6 = inlined_call_operand.vmem [shape: f32[128,128], index: 6, kind: input, shape index: {}]   ;;  %s6081_s7 = inlined_call_operand.vmem [shape: f32[1,128], index: 7, kind: input, shape index: {}]   ;;  %s6082_s8 = inlined_call_operand.hbm [shape: f32[2,1,128], index: 8, kind: output, shape index: {}]  }
   0x1   :  { %15 = vsyncpa [#allocation5 + $0x1], 0  ;;  %s4066_s27 = smov 0   ;;  %s4068_s28 = smov 0  }
   0x2   :  { %s4070_s29 = smov 0   ;;  %s4072_s30 = smov 0  }
   0x3   :  { %s4074_s9 = smov 0   ;;  %s4076_s10 = smov 0  }
   0x4   :  { %s4078_s11 = smov 0   ;;  %s4080_s12 = smov 0  }
   0x5 LB: > { %6144 = sst [smem:[#allocation7_spill]] %s3985_s27  ;;  %s3121_s13 = sadd.s32 4294967295, %s4013_s12   ;;  %s4013_s12 = sphi %s4080_s12, %s21_s12   ;;  %s4009_s11 = sphi %s4078_s11, %s6263_s11   ;;  %s4005_s10 = sphi %s4076_s10, %s6262_s10   ;;  %s4001_s9 = sphi %s4074_s9, %s6261_s9   ;;  %s3997_s30 = sphi %s4072_s30, %s6260_s30   ;;  %s3993_s29 = sphi %s4070_s29, %s6259_s29   ;;  %s3989_s28 = sphi %s4068_s28, %s6265_s28   ;;  %s3985_s27 = sphi %s4066_s27, %s6264_s27  }
   0x6   : > { %6145 = sst [smem:[#allocation8_spill]] %s3993_s29  ;;  %s3122_s14 = sadd.s32 4294967294, %s4013_s12  }
   0x7   : > { %6146 = sst [smem:[#allocation9_spill]] %s4005_s10  ;;  %s30_s15 = sadd.s32 1, %s4005_s10 }
   0x8   : > { %6147 = sst [smem:[#allocation10_spill]] %s4009_s11  ;;  %p31_p0 = scmp.ge.s32.totalorder %s30_s15, 2 }
   0x9   : > { %s33_s16 = sadd.s32 1, %s4009_s11  ;;  %p238_p1 = scmp.ne.s32.totalorder %s3993_s29, %s3989_s28 }
   0xa   : > { %p239_p2 = scmp.eq.s32.totalorder %s3121_s13, 3  ;;  %s6267_s15 = smov (%p31_p0, %s30_s15), 0 }
   0xb   : > { %6148 = sst [smem:[#allocation11_spill]] %s6267_s15  ;;  %s6269_s16 = smov (!%p31_p0, %s33_s16), %s4009_s11 }
   0xc   : > { %p4115_p3 = por %p239_p2, %p238_p1  ;;  %p244_p4 = scmp.ne.s32.totalorder %s3989_s28, %s3985_s27 }
   0xd   : > { %p35_p5 = scmp.ge.s32.totalorder %s6269_s16, 2  ;;  %p245_p6 = scmp.eq.s32.totalorder %s3122_s14, 3 }
   0xe   : > { %p3125_p7 = scmp.ge.s32.totalorder %s4013_s12, 1  ;;  %p306_p8 = scmp.lt.s32.totalorder %s4013_s12, 5 }
   0xf   : > { %s6271_s16 = smov (%p35_p5, %s6269_s16), 0  ;;  %p4125_p9 = por %p245_p6, %p244_p4 }
  0x10   : > { %6150 = sst [smem:[#allocation12_spill]] %s6271_s16  ;;  %p307_p10 = pnand %p3125_p7, %p306_p8 }
  0x11   : > { %s6151_s18 = scalar_select %p4125_p9, 1, 0 }
  0x12   : > { %s225_s19 = ssub.s32 %s4009_s11, %s6271_s16  ;;  %s228_s20 = sadd.s32 1, %s3993_s29 }
  0x13   : > { %6152 = sst [smem:[#allocation13_spill]] %s6151_s18  ;;  %p226_p11 = scmp.eq.s32.totalorder %s225_s19, 0 }
  0x14   : > { %310 = sbr.rel (%p307_p10) target bundleno = 1277 (0x4fd), region = 52 }
  0x15   : > { %s4133_s21 = scalar_select %p226_p11, %s3993_s29, %s228_s20  }
  0x17   : > { %6153 = sst [smem:[#allocation14_spill]] %s4133_s21 }
  0x1b   : > { %p353_p12 = scmp.lt.s32.totalorder %s4001_s9, 1  ;;  %p358_p13 = scmp.lt.s32.totalorder %s3997_s30, 1 }
  0x1c   : > { %p3133_p0 = scmp.ne.s32.totalorder %s3997_s30, 0 }
  0x1d   : > { %s354_s23 = scalar_select %p353_p12, %s4001_s9, 1 }
  0x1e   : > { %s359_s24 = scalar_select %p358_p13, %s3997_s30, 1 }
  0x1f   : > { %s3143_s25 = sshll.u32 %s354_s23, 8  ;;  %375 = sbr.rel (%p3133_p0) target bundleno = 351 (0x15f), region = 56  ;;  %v462_v0 = vld [vmem:[%s6075_s1] sm:$0xff] (!%p3133_p0)  ;;  %v463_v1 = vld [vmem:[%s6075_s1 + $0x8] sm:$0xff] (!%p3133_p0)  ;;  %v464_v2 = vld [vmem:[%s6075_s1 + $0x10] sm:$0xff] (!%p3133_p0)  ;;  %v4019_v3 = vmov (!%p3133_p0), 0.0   ;;  %v478_v57 = vlaneseq (!%p3133_p0) }
  0x20   : > { %s4143_s14 = scalar_lea.vmem %s6074_s0, %s3143_s25  ;;  %s3144_s19 = sshll.u32 %s359_s24, 5  ;;  %376 = vst [vmem:[#allocation2] sm:$0xff] (!%p3133_p0), %v4019_v3  ;;  %377 = vst [vmem:[#allocation2 + $0x8] sm:$0xff] (!%p3133_p0), %v4019_v3  ;;  %v3531_v4 = vpack.c.bf16 (!%p3133_p0), %v463_v1, %v462_v0  ;;  %v465_v5 = vld [vmem:[%s6075_s1 + $0x18] sm:$0xff] (!%p3133_p0)  ;;  %v466_v7 = vld [vmem:[%s6075_s1 + $0x20] sm:$0xff] (!%p3133_p0) }
  0x21   : > { %s4148_s15 = scalar_lea.vmem %s6077_s3, %s3144_s19  ;;  %s3145_s11 = sshll.u32 %s359_s24, 7  ;;  %378 = vst [vmem:[#allocation2 + $0x10] sm:$0xf] (!%p3133_p0), %v4019_v3  ;;  %379 = vst [vmem:[#allocation2 + $0x18] sm:$0xff] (!%p3133_p0), %v4019_v3  ;;  %v3535_v6 = vpack.c.bf16 (!%p3133_p0), %v465_v5, %v464_v2  ;;  %v467_v8 = vld [vmem:[%s6075_s1 + $0x28] sm:$0xff] (!%p3133_p0)  ;;  %v430_v10 = vld [vmem:[%s4143_s14] sm:$0xff] (!%p3133_p0) }
  0x22   : > { %s4153_s22 = scalar_lea.vmem %s6078_s4, %s3145_s11  ;;  %s3132_s29 = sshll.u32 %s359_s24, 3  ;;  %380 = vst [vmem:[#allocation2 + $0x20] sm:$0xff] (!%p3133_p0), %v4019_v3  ;;  %381 = vst [vmem:[#allocation2 + $0x28] sm:$0xf] (!%p3133_p0), %v4019_v3  ;;  %3532 = vmatprep.subr.bf16.mxu0 (!%p3133_p0), %v3531_v4  ;;  %3627 = vmatprep.subr.bf16.mxu1 (!%p3133_p0), %v3531_v4  ;;  %v3539_v9 = vpack.c.bf16 (!%p3133_p0), %v467_v8, %v466_v7  ;;  %v446_v11 = vld [vmem:[%s4143_s14 + $0x80] sm:$0xff] (!%p3133_p0)  ;;  %v468_v12 = vld [vmem:[%s6075_s1 + $0x30] sm:$0xff] (!%p3133_p0) }
  0x23   : > { %s4158_s27 = scalar_lea.vmem %s6079_s5, %s3132_s29  ;;  %s6154_s25 = sand.u32 1, %s3989_s28   ;;  %383 = vst [vmem:[#allocation2 + $0x1b0] sm:$0xff] (!%p3133_p0), %v4019_v3  ;;  %384 = vst [vmem:[#allocation2 + $0x1b8] sm:$0xff] (!%p3133_p0), %v4019_v3  ;;  %3534 = vmatpush3.bf16.msra.mxu0 (!%p3133_p0), %v3531_v4  ;;  %3635 = vmatpush3.bf16.msra.mxu1 (!%p3133_p0), %v3531_v4  ;;  %v469_v13 = vld [vmem:[%s6075_s1 + $0x38] sm:$0xff] (!%p3133_p0)  ;;  %v470_v15 = vld [vmem:[%s6075_s1 + $0x40] sm:$0xff] (!%p3133_p0)  ;;  %v479_v58 = vshrl.u32 (!%p3133_p0), %v478_v57, 7 }
  0x24   : > { %s4162_s26 = scalar_lea.vmem [#allocation4], %s6154_s25  ;;  %385 = vst [vmem:[#allocation2 + $0x1c0] sm:$0xf] (!%p3133_p0), %v4019_v3  ;;  %386 = vst [vmem:[#allocation2 + $0x1c8] sm:$0xff] (!%p3133_p0), %v4019_v3  ;;  %3536 = vmatprep.subr.bf16.mxu0 (!%p3133_p0), %v3535_v6  ;;  %3628 = vmatprep.subr.bf16.mxu1 (!%p3133_p0), %v3535_v6  ;;  %v3543_v14 = vpack.c.bf16 (!%p3133_p0), %v469_v13, %v468_v12  ;;  %v471_v16 = vld [vmem:[%s6075_s1 + $0x48] sm:$0xff] (!%p3133_p0)  ;;  %v472_v18 = vld [vmem:[%s6075_s1 + $0x50] sm:$0xff] (!%p3133_p0) }
  0x25   : > { %387 = vst [vmem:[#allocation2 + $0x1d0] sm:$0xff] (!%p3133_p0), %v4019_v3  ;;  %388 = vst [vmem:[#allocation2 + $0x1d8] sm:$0xf] (!%p3133_p0), %v4019_v3  ;;  %3323 = vmatprep.mubr.f32.mxu0 (!%p3133_p0), %v430_v10  ;;  %3347 = vmatprep.mubr.f32.mxu1 (!%p3133_p0), %v446_v11  ;;  %v3547_v17 = vpack.c.bf16 (!%p3133_p0), %v471_v16, %v470_v15  ;;  %v473_v19 = vld [vmem:[%s6075_s1 + $0x58] sm:$0xff] (!%p3133_p0)  ;;  %v474_v21 = vld [vmem:[%s6075_s1 + $0x60] sm:$0xff] (!%p3133_p0)  ;;  %v480_v59 = vsub.s32 (!%p3133_p0), 0, %v479_v58 }
  0x26   : > { %391 = vst [vmem:[#allocation2 + $0x30] sm:$0x3] %v4019_v3  ;;  %392 = vst [vmem:[#allocation2 + $0x48] sm:$0x3] %v4019_v3  ;;  %v3551_v20 = vpack.c.bf16 %v473_v19, %v472_v18  ;;  %v475_v22 = vld [vmem:[%s6075_s1 + $0x68] sm:$0xff]  ;;  %v476_v24 = vld [vmem:[%s6075_s1 + $0x70] sm:$0xff] }
  0x27   : > { %393 = vst [vmem:[#allocation2 + $0x60] sm:$0x3] %v4019_v3  ;;  %394 = vst [vmem:[#allocation2 + $0x78] sm:$0x3] %v4019_v3  ;;  %3538 = vmatpush3.bf16.msra.mxu0 %v3535_v6  ;;  %3636 = vmatpush3.bf16.msra.mxu1 %v3535_v6  ;;  %v3555_v23 = vpack.c.bf16 %v475_v22, %v474_v21  ;;  %v477_v25 = vld [vmem:[%s6075_s1 + $0x78] sm:$0xff]  ;;  %v431_v27 = vld [vmem:[%s4143_s14 + $0x8] sm:$0xff] }
  0x28   : > { %395 = vst [vmem:[#allocation2 + $0x90] sm:$0x3] %v4019_v3  ;;  %396 = vst [vmem:[#allocation2 + $0xa8] sm:$0x3] %v4019_v3  ;;  %3540 = vmatprep.subr.bf16.mxu0 %v3539_v9  ;;  %3629 = vmatprep.subr.bf16.mxu1 %v3539_v9  ;;  %v3559_v26 = vpack.c.bf16 %v477_v25, %v476_v24  ;;  %v447_v28 = vld [vmem:[%s4143_s14 + $0x88] sm:$0xff]  ;;  %v432_v29 = vld [vmem:[%s4143_s14 + $0x10] sm:$0xff] }
  0x29   : > { %397 = vst [vmem:[#allocation2 + $0xc0] sm:$0x3] %v4019_v3  ;;  %398 = vst [vmem:[#allocation2 + $0xd8] sm:$0x3] %v4019_v3  ;;  %v448_v30 = vld [vmem:[%s4143_s14 + $0x90] sm:$0xff]  ;;  %v433_v31 = vld [vmem:[%s4143_s14 + $0x18] sm:$0xff] }
  0x2a   : > { %399 = vst [vmem:[#allocation2 + $0xf0] sm:$0x3] %v4019_v3  ;;  %400 = vst [vmem:[#allocation2 + $0x108] sm:$0x3] %v4019_v3  ;;  %v449_v32 = vld [vmem:[%s4143_s14 + $0x98] sm:$0xff]  ;;  %v434_v33 = vld [vmem:[%s4143_s14 + $0x20] sm:$0xff] }
  0x2b   : > { %401 = vst [vmem:[#allocation2 + $0x120] sm:$0x3] %v4019_v3  ;;  %402 = vst [vmem:[#allocation2 + $0x138] sm:$0x3] %v4019_v3  ;;  %3542 = vmatpush3.bf16.msra.mxu0 %v3539_v9  ;;  %3637 = vmatpush3.bf16.msra.mxu1 %v3539_v9  ;;  %v450_v34 = vld [vmem:[%s4143_s14 + $0xa0] sm:$0xff]  ;;  %v435_v35 = vld [vmem:[%s4143_s14 + $0x28] sm:$0xff] }
  0x2c   : > { %403 = vst [vmem:[#allocation2 + $0x150] sm:$0x3] %v4019_v3  ;;  %404 = vst [vmem:[#allocation2 + $0x168] sm:$0x3] %v4019_v3  ;;  %3544 = vmatprep.subr.bf16.mxu0 %v3543_v14  ;;  %3630 = vmatprep.subr.bf16.mxu1 %v3543_v14  ;;  %v451_v36 = vld [vmem:[%s4143_s14 + $0xa8] sm:$0xff]  ;;  %v436_v37 = vld [vmem:[%s4143_s14 + $0x30] sm:$0xff] }
  0x2d   : > { %405 = vst [vmem:[#allocation2 + $0x180] sm:$0x3] %v4019_v3  ;;  %406 = vst [vmem:[#allocation2 + $0x198] sm:$0x3] %v4019_v3  ;;  %v452_v38 = vld [vmem:[%s4143_s14 + $0xb0] sm:$0xff]  ;;  %v437_v39 = vld [vmem:[%s4143_s14 + $0x38] sm:$0xff] }
  0x2e   : > { %411 = vst [vmem:[#allocation2 + $0x42] sm:$0x3] %v4019_v3  ;;  %412 = vst [vmem:[#allocation2 + $0x5a] sm:$0x3] %v4019_v3  ;;  %v453_v40 = vld [vmem:[%s4143_s14 + $0xb8] sm:$0xff]  ;;  %v438_v41 = vld [vmem:[%s4143_s14 + $0x40] sm:$0xff] }
  0x2f   : > { %413 = vst [vmem:[#allocation2 + $0x72] sm:$0x3] %v4019_v3  ;;  %414 = vst [vmem:[#allocation2 + $0x8a] sm:$0x3] %v4019_v3  ;;  %3546 = vmatpush3.bf16.msra.mxu0 %v3543_v14  ;;  %3638 = vmatpush3.bf16.msra.mxu1 %v3543_v14  ;;  %v454_v42 = vld [vmem:[%s4143_s14 + $0xc0] sm:$0xff]  ;;  %v439_v43 = vld [vmem:[%s4143_s14 + $0x48] sm:$0xff] }
  0x30   : > { %415 = vst [vmem:[#allocation2 + $0xa2] sm:$0x3] %v4019_v3  ;;  %416 = vst [vmem:[#allocation2 + $0xba] sm:$0x3] %v4019_v3  ;;  %3548 = vmatprep.subr.bf16.mxu0 %v3547_v17  ;;  %3631 = vmatprep.subr.bf16.mxu1 %v3547_v17  ;;  %v455_v44 = vld [vmem:[%s4143_s14 + $0xc8] sm:$0xff]  ;;  %v440_v45 = vld [vmem:[%s4143_s14 + $0x50] sm:$0xff] }
  0x31   : > { %417 = vst [vmem:[#allocation2 + $0xd2] sm:$0x3] %v4019_v3  ;;  %418 = vst [vmem:[#allocation2 + $0xea] sm:$0x3] %v4019_v3  ;;  %v456_v46 = vld [vmem:[%s4143_s14 + $0xd0] sm:$0xff]  ;;  %v441_v47 = vld [vmem:[%s4143_s14 + $0x58] sm:$0xff] }
  0x32   : > { %419 = vst [vmem:[#allocation2 + $0x102] sm:$0x3] %v4019_v3  ;;  %420 = vst [vmem:[#allocation2 + $0x11a] sm:$0x3] %v4019_v3  ;;  %v457_v48 = vld [vmem:[%s4143_s14 + $0xd8] sm:$0xff]  ;;  %v442_v49 = vld [vmem:[%s4143_s14 + $0x60] sm:$0xff] }
  0x33   : > { %421 = vst [vmem:[#allocation2 + $0x132] sm:$0x3] %v4019_v3  ;;  %422 = vst [vmem:[#allocation2 + $0x14a] sm:$0x3] %v4019_v3  ;;  %3550 = vmatpush3.bf16.msra.mxu0 %v3547_v17  ;;  %3639 = vmatpush3.bf16.msra.mxu1 %v3547_v17  ;;  %v458_v50 = vld [vmem:[%s4143_s14 + $0xe0] sm:$0xff]  ;;  %v443_v51 = vld [vmem:[%s4143_s14 + $0x68] sm:$0xff] }
  0x34   : > { %423 = vst [vmem:[#allocation2 + $0x162] sm:$0x3] %v4019_v3  ;;  %424 = vst [vmem:[#allocation2 + $0x17a] sm:$0x3] %v4019_v3  ;;  %3552 = vmatprep.subr.bf16.mxu0 %v3551_v20  ;;  %3632 = vmatprep.subr.bf16.mxu1 %v3551_v20  ;;  %v459_v52 = vld [vmem:[%s4143_s14 + $0xe8] sm:$0xff]  ;;  %v444_v53 = vld [vmem:[%s4143_s14 + $0x70] sm:$0xff] }
  0x35   : > { %425 = vst [vmem:[#allocation2 + $0x192] sm:$0x3] %v4019_v3  ;;  %426 = vst [vmem:[#allocation2 + $0x1aa] sm:$0x3] %v4019_v3  ;;  %v460_v54 = vld [vmem:[%s4143_s14 + $0xf0] sm:$0xff]  ;;  %v445_v55 = vld [vmem:[%s4143_s14 + $0x78] sm:$0xff] }
  0x36   : > { %389 = vst [vmem:[#allocation2] sm:$0x3] %v4019_v3  ;;  %390 = vst [vmem:[#allocation2 + $0x18] sm:$0x3] %v4019_v3  ;;  %v461_v56 = vld [vmem:[%s4143_s14 + $0xf8] sm:$0xff]  ;;  %v869_v1 = vsub.s32 1, %v479_v58 }
  0x37   : > { %407 = vst [vmem:[#allocation2 + $0x1b0] sm:$0x3] %v4019_v3  ;;  %408 = vst [vmem:[#allocation2 + $0x1c8] sm:$0x3] %v4019_v3  ;;  %3554 = vmatpush3.bf16.msra.mxu0 %v3551_v20  ;;  %3640 = vmatpush3.bf16.msra.mxu1 %v3551_v20  ;;  %v429_v60 = vld [vmem:[%s6076_s2] sm:$0x7] }
  0x38   : > { %409 = vst [vmem:[#allocation2 + $0x12] sm:$0x3] %v4019_v3  ;;  %410 = vst [vmem:[#allocation2 + $0x2a] sm:$0x3] %v4019_v3  ;;  %3556 = vmatprep.subr.bf16.mxu0 %v3555_v23  ;;  %3633 = vmatprep.subr.bf16.mxu1 %v3555_v23  ;;  %v4248_v61 = vrot.slane %v429_v60, %v480_v59  ;;  %v905_v2 = vsub.s32 2, %v479_v58  ;;  %v4254_v12 = vrot.slane %v429_v60, %v869_v1 }
  0x39   : > { %427 = vst [vmem:[#allocation2 + $0x1c2] sm:$0x3] %v4019_v3  ;;  %428 = vst [vmem:[#allocation2 + $0x1da] sm:$0x3] %v4019_v3 }
  0x3a   : > { %v4256_v13 = vrot.slane %v429_v60, %v905_v2 }
  0x3b   : > { %3558 = vmatpush3.bf16.msra.mxu0 %v3555_v23  ;;  %3641 = vmatpush3.bf16.msra.mxu1 %v3555_v23 }
  0x3c   : > { %3560 = vmatprep.subr.bf16.mxu0 %v3559_v26  ;;  %3634 = vmatprep.subr.bf16.mxu1 %v3559_v26 }
  0x3f   : > { %3562 = vmatpush3.bf16.msra.mxu0 %v3559_v26  ;;  %3642 = vmatpush3.bf16.msra.mxu1 %v3559_v26 }
  0x42   : > { %3324 = vmatmul.mubr.f32.vlgmr.msra.gmra.mrb[0].mxu0 %v431_v27  ;;  %3348 = vmatmul.mubr.f32.vlgmr.msra.gmra.mrb[0].mxu1 %v447_v28 }
  0x43   : > { %3326 = vmatprep.mubr.f32.mxu0 %v432_v29  ;;  %3350 = vmatprep.mubr.f32.mxu1 %v448_v30 }
  0x46   : > { %3327 = vmatmul.mubr.f32.gmra.mrb[2].mxu0 %v433_v31  ;;  %3351 = vmatmul.mubr.f32.gmra.mrb[2].mxu1 %v449_v32 }
  0x47   : > { %3329 = vmatprep.mubr.f32.mxu0 %v434_v33  ;;  %3353 = vmatprep.mubr.f32.mxu1 %v450_v34 }
  0x4a   : > { %3330 = vmatmul.mubr.f32.gmra.mrb[4].mxu0 %v435_v35  ;;  %3354 = vmatmul.mubr.f32.gmra.mrb[4].mxu1 %v451_v36 }
  0x4b   : > { %3332 = vmatprep.mubr.f32.mxu0 %v436_v37  ;;  %3356 = vmatprep.mubr.f32.mxu1 %v452_v38 }
  0x4e   : > { %3333 = vmatmul.mubr.f32.gmra.mrb[6].mxu0 %v437_v39  ;;  %3357 = vmatmul.mubr.f32.gmra.mrb[6].mxu1 %v453_v40 }
  0x4f   : > { %3335 = vmatprep.mubr.f32.mxu0 %v438_v41  ;;  %3359 = vmatprep.mubr.f32.mxu1 %v454_v42 }
  0x52   : > { %3336 = vmatmul.mubr.f32.gmra.mrb[8].mxu0 %v439_v43  ;;  %3360 = vmatmul.mubr.f32.gmra.mrb[8].mxu1 %v455_v44 }
  0x53   : > { %3338 = vmatprep.mubr.f32.mxu0 %v440_v45  ;;  %3362 = vmatprep.mubr.f32.mxu1 %v456_v46 }
  0x56   : > { %3339 = vmatmul.mubr.f32.gmra.mrb[10].mxu0 %v441_v47  ;;  %3363 = vmatmul.mubr.f32.gmra.mrb[10].mxu1 %v457_v48 }
  0x57   : > { %3341 = vmatprep.mubr.f32.mxu0 %v442_v49  ;;  %3365 = vmatprep.mubr.f32.mxu1 %v458_v50 }
  0x5a   : > { %3342 = vmatmul.mubr.f32.gmra.mrb[12].mxu0 %v443_v51  ;;  %3366 = vmatmul.mubr.f32.gmra.mrb[12].mxu1 %v459_v52 }
  0x5b   : > { %3344 = vmatprep.mubr.f32.mxu0 %v444_v53  ;;  %3368 = vmatprep.mubr.f32.mxu1 %v460_v54 }
  0x5e   : > { %3345 = vmatmul.mubr.f32.gmra.mrb[14].mxu0 %v445_v55  ;;  %3369 = vmatmul.mubr.f32.gmra.mrb[14].mxu1 %v461_v56 }
 0x115   : > { %v3325_v62 = vpop.f32.mrb[0].mxu0  ;;  %v3349_v63 = vpop.f32.mrb[0].mxu1 }
 0x116   : > { %v554_v0 = vadd.f32 %v3325_v62, %v4248_v61  ;;  %v634_v3 = vadd.f32 %v3349_v63, %v4248_v61  ;;  %v548_v4 = vpop.f32.mrb[1].mxu0  ;;  %v628_v5 = vpop.f32.mrb[1].mxu1 }
 0x117   : > { %v549_v6 = vadd.f32 %v548_v4, %v4248_v61  ;;  %v629_v7 = vadd.f32 %v628_v5, %v4248_v61 }
 0x118   : > { %v740_v8 = vmul.f32 0.70710677, %v554_v0  ;;  %v756_v9 = vmul.f32 0.70710677, %v634_v3  ;;  %v4258_v16 = vmul.f32 0.5, %v554_v0  ;;  %v4262_v21 = vmul.f32 0.5, %v634_v3 }
 0x119   : > { %v739_v10 = vmul.f32 0.70710677, %v549_v6  ;;  %v755_v11 = vmul.f32 0.70710677, %v629_v7  ;;  %v3328_v14 = vpop.f32.mrb[2].mxu0  ;;  %v3352_v15 = vpop.f32.mrb[2].mxu1 }
 0x11a   : > { %3755 = verf.f32 %v740_v8  ;;  %v564_v17 = vadd.f32 %v3328_v14, %v4248_v61  ;;  %v644_v18 = vadd.f32 %v3352_v15, %v4248_v61  ;;  %v558_v19 = vpop.f32.mrb[3].mxu0  ;;  %v638_v20 = vpop.f32.mrb[3].mxu1  ;;  %v4266_v24 = vmul.f32 0.5, %v549_v6 }
 0x11b   : > { %3757 = verf.f32 %v756_v9  ;;  %v559_v22 = vadd.f32 %v558_v19, %v4248_v61  ;;  %v639_v23 = vadd.f32 %v638_v20, %v4248_v61  ;;  %v4268_v25 = vmul.f32 0.5, %v629_v7 }
 0x11c   : > { %3759 = verf.f32 %v739_v10  ;;  %v742_v26 = vmul.f32 0.70710677, %v564_v17  ;;  %v4270_v29 = vmul.f32 0.5, %v564_v17  ;;  %v4272_v30 = vmul.f32 0.5, %v644_v18 }
 0x11d   : > { %3761 = verf.f32 %v755_v11  ;;  %v3331_v27 = vpop.f32.mrb[4].mxu0  ;;  %v3355_v28 = vpop.f32.mrb[4].mxu1  ;;  %v758_v31 = vmul.f32 0.70710677, %v644_v18  ;;  %v741_v32 = vmul.f32 0.70710677, %v559_v22 }
 0x11e   : > { %3763 = verf.f32 %v742_v26  ;;  %v757_v33 = vmul.f32 0.70710677, %v639_v23  ;;  %v574_v34 = vadd.f32 %v3331_v27, %v4248_v61  ;;  %v654_v35 = vadd.f32 %v3355_v28, %v4248_v61  ;;  %v568_v36 = vpop.f32.mrb[5].mxu0  ;;  %v648_v37 = vpop.f32.mrb[5].mxu1 }
 0x11f   : > { %3765 = verf.f32 %v758_v31  ;;  %v4276_v38 = vmul.f32 0.5, %v559_v22  ;;  %v569_v39 = vadd.f32 %v568_v36, %v4248_v61  ;;  %v649_v40 = vadd.f32 %v648_v37, %v4248_v61 }
 0x120   : > { %3767 = verf.f32 %v741_v32  ;;  %v4280_v41 = vmul.f32 0.5, %v639_v23  ;;  %v4282_v42 = vmul.f32 0.5, %v574_v34  ;;  %v744_v43 = vmul.f32 0.70710677, %v574_v34 }
 0x121   : > { %v3334_v44 = vpop.f32.mrb[6].mxu0  ;;  %v3358_v45 = vpop.f32.mrb[6].mxu1  ;;  %3769 = verf.f32 %v757_v33  ;;  %v4284_v46 = vmul.f32 0.5, %v654_v35  ;;  %v760_v47 = vmul.f32 0.70710677, %v654_v35  ;;  %v4286_v50 = vmul.f32 0.5, %v569_v39 }
 0x122   : > { %v743_v48 = vmul.f32 0.70710677, %v569_v39  ;;  %v578_v49 = vpop.f32.mrb[7].mxu0  ;;  %3771 = verf.f32 %v744_v43  ;;  %v759_v51 = vmul.f32 0.70710677, %v649_v40  ;;  %v584_v52 = vadd.f32 %v3334_v44, %v4248_v61  ;;  %v658_v53 = vpop.f32.mrb[7].mxu1 }
 0x123   : > { %3773 = verf.f32 %v760_v47  ;;  %v4289_v55 = vmul.f32 0.5, %v649_v40  ;;  %v664_v56 = vadd.f32 %v3358_v45, %v4248_v61  ;;  %v579_v57 = vadd.f32 %v578_v49, %v4248_v61 }
 0x124   : > { %v3756_v54 = vpop.eup %3755  ;;  %3775 = verf.f32 %v743_v48  ;;  %v746_v60 = vmul.f32 0.70710677, %v584_v52  ;;  %v659_v62 = vadd.f32 %v658_v53, %v4248_v61  ;;  %v4298_v3 = vmul.f32 0.5, %v584_v52 }
 0x125   : > { %v3758_v58 = vpop.eup %3757  ;;  %v804_v59 = vadd.f32 1.0, %v3756_v54  ;;  %v4294_v63 = vpop.f32.mrb[8].mxu0  ;;  %3777 = verf.f32 %v759_v51  ;;  %v762_v4 = vmul.f32 0.70710677, %v664_v56  ;;  %v4305_v10 = vmul.f32 0.5, %v664_v56 }
 0x126   : > { %v4296_v0 = vpop.f32.mrb[8].mxu1  ;;  %v3760_v1 = vpop.eup %3759  ;;  %v820_v2 = vadd.f32 1.0, %v3758_v58  ;;  %3779 = verf.f32 %v746_v60  ;;  %v745_v15 = vmul.f32 0.70710677, %v579_v57  ;;  %v4310_v20 = vmul.f32 0.5, %v579_v57 }
 0x127   : > { %v4300_v5 = vpop.f32.mrb[9].mxu0  ;;  %v4302_v6 = vpop.f32.mrb[9].mxu1  ;;  %v836_v8 = vmul.f32 %v804_v59, %v4258_v16  ;;  %v803_v9 = vadd.f32 1.0, %v3760_v1  ;;  %3781 = verf.f32 %v762_v4  ;;  %v761_v22 = vmul.f32 0.70710677, %v659_v62 }
 0x128   : > { %v3762_v7 = vpop.eup %3761  ;;  %v852_v11 = vmul.f32 %v820_v2, %v4262_v21  ;;  %3783 = verf.f32 %v745_v15  ;;  %v4329_v48 = vmul.f32 0.5, %v659_v62  ;;  %v4346_v1 = vadd.f32 %v4294_v63, %v4248_v61 }
 0x129   : > { %v819_v14 = vadd.f32 1.0, %v3762_v7  ;;  %v3764_v17 = vpop.eup %3763  ;;  %v872_v18 = vmul.f32 %v4254_v12, %v836_v8  ;;  %v835_v19 = vmul.f32 %v803_v9, %v4266_v24  ;;  %v4312_v23 = vpop.f32.mrb[10].mxu0  ;;  %3785 = verf.f32 %v761_v22 }
 0x12a   : > { %v4314_v16 = vpop.f32.mrb[10].mxu1  ;;  %v3766_v26 = vpop.eup %3765  ;;  %v888_v27 = vmul.f32 %v4254_v12, %v852_v11  ;;  %v806_v28 = vadd.f32 1.0, %v3764_v17 }
 0x12b   : > { %v851_v21 = vmul.f32 %v819_v14, %v4268_v25  ;;  %v4318_v31 = vpop.f32.mrb[11].mxu0  ;;  %v4320_v32 = vpop.f32.mrb[11].mxu1  ;;  %v908_v24 = vadd.f32 %v4256_v13, %v872_v18  ;;  %v871_v34 = vmul.f32 %v4254_v12, %v835_v19  ;;  %v822_v35 = vadd.f32 1.0, %v3766_v26 }
 0x12c   : > { %v3768_v33 = vpop.eup %3767  ;;  %v924_v37 = vadd.f32 %v4256_v13, %v888_v27  ;;  %v838_v25 = vmul.f32 %v806_v28, %v4270_v29 }
 0x12d   : > { %v3770_v36 = vpop.eup %3769  ;;  %v887_v39 = vmul.f32 %v4254_v12, %v851_v21  ;;  %v805_v40 = vadd.f32 1.0, %v3768_v33  ;;  %941 = vst [vmem:[#allocation2 + $0x3a] sm:$0xff] %v908_v24  ;;  %v907_v44 = vadd.f32 %v4256_v13, %v871_v34  ;;  %v854_v45 = vmul.f32 %v822_v35, %v4272_v30  ;;  %v4331_v49 = vpop.f32.mrb[12].mxu0 }
 0x12e   : > { %v3772_v43 = vpop.eup %3771  ;;  %v821_v47 = vadd.f32 1.0, %v3770_v36  ;;  %v4333_v51 = vpop.f32.mrb[12].mxu1  ;;  %957 = vst [vmem:[#allocation2 + $0xfa] sm:$0xff] %v924_v37  ;;  %v874_v29 = vmul.f32 %v4254_v12, %v838_v25  ;;  %v748_v37 = vmul.f32 0.70710677, %v4346_v1 }
 0x12f   : > { %v3774_v52 = vpop.eup %3773  ;;  %v923_v53 = vadd.f32 %v4256_v13, %v887_v39  ;;  %v837_v54 = vmul.f32 %v805_v40, %v4276_v38  ;;  %v808_v56 = vadd.f32 1.0, %v3772_v43  ;;  %v4338_v57 = vpop.f32.mrb[13].mxu0  ;;  %940 = vst [vmem:[#allocation2 + $0x32] sm:$0xff] %v907_v44  ;;  %v890_v59 = vmul.f32 %v4254_v12, %v854_v45 }
 0x130   : > { %v4340_v58 = vpop.f32.mrb[13].mxu1  ;;  %v3776_v30 = vpop.eup %3775  ;;  %v853_v60 = vmul.f32 %v821_v47, %v4280_v41  ;;  %v824_v62 = vadd.f32 1.0, %v3774_v52  ;;  %v910_v38 = vadd.f32 %v4256_v13, %v874_v29  ;;  %3787 = verf.f32 %v748_v37 }
 0x131   : > { %v3778_v2 = vpop.eup %3777  ;;  %956 = vst [vmem:[#allocation2 + $0xf2] sm:$0xff] %v923_v53  ;;  %v873_v4 = vmul.f32 %v4254_v12, %v837_v54  ;;  %v840_v7 = vmul.f32 %v808_v56, %v4282_v42  ;;  %v807_v8 = vadd.f32 1.0, %v3776_v30  ;;  %v926_v11 = vadd.f32 %v4256_v13, %v890_v59  ;;  %v4354_v17 = vpop.f32.mrb[14].mxu0 }
 0x132   : > { %v3780_v9 = vpop.eup %3779  ;;  %v889_v14 = vmul.f32 %v4254_v12, %v853_v60  ;;  %v856_v41 = vmul.f32 %v824_v62, %v4284_v46  ;;  %v823_v15 = vadd.f32 1.0, %v3778_v2  ;;  %v4356_v63 = vpop.f32.mrb[14].mxu1  ;;  %943 = vst [vmem:[#allocation2 + $0x52] sm:$0xff] %v910_v38  ;;  %v674_v29 = vadd.f32 %v4296_v0, %v4248_v61 }
 0x133   : > { %v3782_v18 = vpop.eup %3781  ;;  %v909_v19 = vadd.f32 %v4256_v13, %v873_v4  ;;  %v876_v22 = vmul.f32 %v4254_v12, %v840_v7  ;;  %v839_v42 = vmul.f32 %v807_v8, %v4286_v50  ;;  %v810_v26 = vadd.f32 1.0, %v3780_v9  ;;  %v4361_v27 = vpop.f32.mrb[15].mxu0  ;;  %959 = vst [vmem:[#allocation2 + $0x112] sm:$0xff] %v926_v11 }
 0x134   : > { %v4363_v21 = vpop.f32.mrb[15].mxu1  ;;  %v925_v46 = vadd.f32 %v4256_v13, %v889_v14  ;;  %v892_v28 = vmul.f32 %v4254_v12, %v856_v41  ;;  %v855_v33 = vmul.f32 %v823_v15, %v4289_v55  ;;  %v826_v24 = vadd.f32 1.0, %v3782_v18  ;;  %v3784_v34 = vpop.eup %3783 }
 0x135   : > { %942 = vst [vmem:[#allocation2 + $0x4a] sm:$0xff] %v909_v19  ;;  %v912_v35 = vadd.f32 %v4256_v13, %v876_v22  ;;  %v875_v36 = vmul.f32 %v4254_v12, %v839_v42  ;;  %v842_v50 = vmul.f32 %v810_v26, %v4298_v3  ;;  %v3786_v39 = vpop.eup %3785  ;;  %v809_v55 = vadd.f32 1.0, %v3784_v34 }
 0x136   : > { %958 = vst [vmem:[#allocation2 + $0x10a] sm:$0xff] %v925_v46  ;;  %v928_v25 = vadd.f32 %v4256_v13, %v892_v28  ;;  %v891_v40 = vmul.f32 %v4254_v12, %v855_v33  ;;  %v858_v43 = vmul.f32 %v826_v24, %v4305_v10  ;;  %v825_v47 = vadd.f32 1.0, %v3786_v39 }
 0x137   : > { %945 = vst [vmem:[#allocation2 + $0x6a] sm:$0xff] %v912_v35  ;;  %v911_v44 = vadd.f32 %v4256_v13, %v875_v36  ;;  %v878_v45 = vmul.f32 %v4254_v12, %v842_v50  ;;  %v841_v53 = vmul.f32 %v809_v55, %v4310_v20  ;;  %v589_v56 = vadd.f32 %v4300_v5, %v4248_v61 }
 0x138   : > { %961 = vst [vmem:[#allocation2 + $0x12a] sm:$0xff] %v928_v25  ;;  %v927_v3 = vadd.f32 %v4256_v13, %v891_v40  ;;  %v894_v52 = vmul.f32 %v4254_v12, %v858_v43  ;;  %v857_v54 = vmul.f32 %v825_v47, %v4329_v48  ;;  %v669_v30 = vadd.f32 %v4302_v6, %v4248_v61 }
 0x139   : > { %944 = vst [vmem:[#allocation2 + $0x62] sm:$0xff] %v911_v44  ;;  %v914_v10 = vadd.f32 %v4256_v13, %v878_v45  ;;  %v877_v60 = vmul.f32 %v4254_v12, %v841_v53  ;;  %v764_v20 = vmul.f32 0.70710677, %v674_v29  ;;  %v747_v62 = vmul.f32 0.70710677, %v589_v56 }
 0x13a   : > { %960 = vst [vmem:[#allocation2 + $0x122] sm:$0xff] %v927_v3  ;;  %v930_v59 = vadd.f32 %v4256_v13, %v894_v52  ;;  %v893_v0 = vmul.f32 %v4254_v12, %v857_v54  ;;  %v763_v48 = vmul.f32 0.70710677, %v669_v30  ;;  %v604_v5 = vadd.f32 %v4312_v23, %v4248_v61  ;;  %v3788_v15 = vpop.eup %3787 }
 0x13b   : > { %947 = vst [vmem:[#allocation2 + $0x82] sm:$0xff] %v914_v10  ;;  %v913_v2 = vadd.f32 %v4256_v13, %v877_v60  ;;  %3789 = verf.f32 %v764_v20  ;;  %v684_v38 = vadd.f32 %v4314_v16, %v4248_v61  ;;  %v599_v4 = vadd.f32 %v4318_v31, %v4248_v61 }
 0x13c   : > { %963 = vst [vmem:[#allocation2 + $0x142] sm:$0xff] %v930_v59  ;;  %v929_v6 = vadd.f32 %v4256_v13, %v893_v0  ;;  %3791 = verf.f32 %v747_v62  ;;  %v750_v7 = vmul.f32 0.70710677, %v604_v5  ;;  %v679_v8 = vadd.f32 %v4320_v32, %v4248_v61 }
 0x13d   : > { %946 = vst [vmem:[#allocation2 + $0x7a] sm:$0xff] %v913_v2  ;;  %3793 = verf.f32 %v763_v48  ;;  %v716_v9 = vmul.f32 0.5, %v4346_v1  ;;  %v766_v11 = vmul.f32 0.70710677, %v684_v38  ;;  %v749_v23 = vmul.f32 0.70710677, %v599_v4 }
 0x13e   : > { %962 = vst [vmem:[#allocation2 + $0x13a] sm:$0xff] %v929_v6  ;;  %v732_v14 = vmul.f32 0.5, %v674_v29  ;;  %3795 = verf.f32 %v750_v7  ;;  %v765_v41 = vmul.f32 0.70710677, %v679_v8  ;;  %v614_v16 = vadd.f32 %v4331_v49, %v4248_v61 }
 0x13f   : > { %3797 = verf.f32 %v766_v11  ;;  %v694_v31 = vadd.f32 %v4333_v51, %v4248_v61  ;;  %v609_v18 = vadd.f32 %v4338_v57, %v4248_v61  ;;  %v4410_v32 = vadd.f32 %v4340_v58, %v4248_v61 }
 0x140   : > { %v812_v1 = vadd.f32 1.0, %v3788_v15  ;;  %v715_v19 = vmul.f32 0.5, %v589_v56  ;;  %3799 = verf.f32 %v749_v23  ;;  %v752_v22 = vmul.f32 0.70710677, %v614_v16 }
 0x141   : > { %v731_v42 = vmul.f32 0.5, %v669_v30  ;;  %v718_v26 = vmul.f32 0.5, %v604_v5  ;;  %3801 = verf.f32 %v765_v41  ;;  %v768_v49 = vmul.f32 0.70710677, %v694_v31 }
 0x142   : > { %v844_v46 = vmul.f32 %v812_v1, %v716_v9  ;;  %v734_v28 = vmul.f32 0.5, %v684_v38  ;;  %3803 = verf.f32 %v752_v22  ;;  %v751_v33 = vmul.f32 0.70710677, %v609_v18 }
 0x143   : > { %3805 = verf.f32 %v768_v49  ;;  %v767_v51 = vmul.f32 0.70710677, %v4410_v32  ;;  %v4415_v57 = vadd.f32 %v4354_v17, %v4248_v61  ;;  %v4419_v58 = vadd.f32 %v4356_v63, %v4248_v61 }
 0x144   : > { %v880_v34 = vmul.f32 %v4254_v12, %v844_v46  ;;  %v717_v35 = vmul.f32 0.5, %v599_v4  ;;  %3807 = verf.f32 %v751_v33  ;;  %v4424_v36 = vadd.f32 %v4361_v27, %v4248_v61 }
 0x145   : > { %v3790_v24 = vpop.eup %3789  ;;  %3809 = verf.f32 %v767_v51  ;;  %v754_v39 = vmul.f32 0.70710677, %v4415_v57  ;;  %v4429_v17 = vadd.f32 %v4363_v21, %v4248_v61  ;;  %v733_v43 = vmul.f32 0.5, %v679_v8 }
 0x146   : > { %v3792_v50 = vpop.eup %3791  ;;  %v828_v37 = vadd.f32 1.0, %v3790_v24  ;;  %v916_v25 = vadd.f32 %v4256_v13, %v880_v34  ;;  %v770_v55 = vmul.f32 0.70710677, %v4419_v58  ;;  %v720_v27 = vmul.f32 0.5, %v614_v16 }
 0x147   : > { %v3794_v63 = vpop.eup %3793  ;;  %v811_v40 = vadd.f32 1.0, %v3792_v50  ;;  %3811 = verf.f32 %v754_v39  ;;  %v736_v52 = vmul.f32 0.5, %v694_v31  ;;  %v753_v53 = vmul.f32 0.70710677, %v4424_v36 }
 0x148   : > { %v860_v44 = vmul.f32 %v828_v37, %v732_v14  ;;  %v827_v45 = vadd.f32 1.0, %v3794_v63  ;;  %v3796_v47 = vpop.eup %3795  ;;  %949 = vst [vmem:[#allocation2 + $0x9a] sm:$0xff] %v916_v25  ;;  %3813 = verf.f32 %v770_v55  ;;  %v769_v54 = vmul.f32 0.70710677, %v4429_v17 }
 0x149   : > { %v843_v3 = vmul.f32 %v811_v40, %v715_v19  ;;  %v3798_v61 = vpop.eup %3797  ;;  %v814_v10 = vadd.f32 1.0, %v3796_v47  ;;  %v719_v60 = vmul.f32 0.5, %v609_v18  ;;  %3815 = verf.f32 %v753_v53 }
 0x14a   : > { %v896_v21 = vmul.f32 %v4254_v12, %v860_v44  ;;  %v859_v29 = vmul.f32 %v827_v45, %v731_v42  ;;  %v3800_v56 = vpop.eup %3799  ;;  %v830_v59 = vadd.f32 1.0, %v3798_v61  ;;  %3817 = verf.f32 %v769_v54 }
 0x14b   : > { %v879_v30 = vmul.f32 %v4254_v12, %v843_v3  ;;  %v3802_v20 = vpop.eup %3801  ;;  %v846_v2 = vmul.f32 %v814_v10, %v718_v26  ;;  %v813_v48 = vadd.f32 1.0, %v3800_v56  ;;  %v735_v31 = vmul.f32 0.5, %v4410_v32 }
 0x14c   : > { %v932_v0 = vadd.f32 %v4256_v13, %v896_v21  ;;  %v895_v62 = vmul.f32 %v4254_v12, %v859_v29  ;;  %v3804_v5 = vpop.eup %3803  ;;  %v862_v38 = vmul.f32 %v830_v59, %v734_v28  ;;  %v829_v4 = vadd.f32 1.0, %v3802_v20 }
 0x14d   : > { %v915_v6 = vadd.f32 %v4256_v13, %v879_v30  ;;  %v3806_v7 = vpop.eup %3805  ;;  %v882_v9 = vmul.f32 %v4254_v12, %v846_v2  ;;  %v845_v11 = vmul.f32 %v813_v48, %v717_v35  ;;  %v816_v23 = vadd.f32 1.0, %v3804_v5 }
 0x14e   : > { %965 = vst [vmem:[#allocation2 + $0x15a] sm:$0xff] %v932_v0  ;;  %v931_v8 = vadd.f32 %v4256_v13, %v895_v62  ;;  %v3808_v14 = vpop.eup %3807  ;;  %v898_v41 = vmul.f32 %v4254_v12, %v862_v38  ;;  %v861_v16 = vmul.f32 %v829_v4, %v733_v43  ;;  %v832_v15 = vadd.f32 1.0, %v3806_v7 }
 0x14f   : > { %948 = vst [vmem:[#allocation2 + $0x92] sm:$0xff] %v915_v6  ;;  %v3810_v18 = vpop.eup %3809  ;;  %v918_v1 = vadd.f32 %v4256_v13, %v882_v9  ;;  %v881_v19 = vmul.f32 %v4254_v12, %v845_v11  ;;  %v848_v22 = vmul.f32 %v816_v23, %v720_v27  ;;  %v815_v42 = vadd.f32 1.0, %v3808_v14 }
 0x150   : > { %964 = vst [vmem:[#allocation2 + $0x152] sm:$0xff] %v931_v8  ;;  %v934_v26 = vadd.f32 %v4256_v13, %v898_v41  ;;  %v897_v49 = vmul.f32 %v4254_v12, %v861_v16  ;;  %v864_v46 = vmul.f32 %v832_v15, %v736_v52  ;;  %v831_v28 = vadd.f32 1.0, %v3810_v18 }
 0x151   : > { %v3812_v33 = vpop.eup %3811  ;;  %951 = vst [vmem:[#allocation2 + $0xb2] sm:$0xff] %v918_v1  ;;  %v917_v51 = vadd.f32 %v4256_v13, %v881_v19  ;;  %v884_v32 = vmul.f32 %v4254_v12, %v848_v22  ;;  %v847_v24 = vmul.f32 %v815_v42, %v719_v60  ;;  %v722_v34 = vmul.f32 0.5, %v4415_v57 }
 0x152   : > { %v3814_v35 = vpop.eup %3813  ;;  %967 = vst [vmem:[#allocation2 + $0x172] sm:$0xff] %v934_v26  ;;  %v933_v50 = vadd.f32 %v4256_v13, %v897_v49  ;;  %v900_v37 = vmul.f32 %v4254_v12, %v864_v46  ;;  %v863_v39 = vmul.f32 %v831_v28, %v735_v31  ;;  %v818_v63 = vadd.f32 1.0, %v3812_v33 }
 0x153   : > { %950 = vst [vmem:[#allocation2 + $0xaa] sm:$0xff] %v917_v51  ;;  %v920_v25 = vadd.f32 %v4256_v13, %v884_v32  ;;  %v883_v40 = vmul.f32 %v4254_v12, %v847_v24  ;;  %v738_v43 = vmul.f32 0.5, %v4419_v58  ;;  %v834_v55 = vadd.f32 1.0, %v3814_v35  ;;  %v3816_v44 = vpop.eup %3815 }
 0x154   : > { %966 = vst [vmem:[#allocation2 + $0x16a] sm:$0xff] %v933_v50  ;;  %v936_v57 = vadd.f32 %v4256_v13, %v900_v37  ;;  %v899_v45 = vmul.f32 %v4254_v12, %v863_v39  ;;  %v850_v27 = vmul.f32 %v818_v63, %v722_v34  ;;  %v721_v52 = vmul.f32 0.5, %v4424_v36  ;;  %v3818_v61 = vpop.eup %3817 }
 0x155   : > { %953 = vst [vmem:[#allocation2 + $0xca] sm:$0xff] %v920_v25  ;;  %v919_v47 = vadd.f32 %v4256_v13, %v883_v40  ;;  %v866_v3 = vmul.f32 %v834_v55, %v738_v43  ;;  %v817_v53 = vadd.f32 1.0, %v3816_v44  ;;  %v737_v54 = vmul.f32 0.5, %v4429_v17 }
 0x156   : > { %969 = vst [vmem:[#allocation2 + $0x18a] sm:$0xff] %v936_v57  ;;  %v935_v21 = vadd.f32 %v4256_v13, %v899_v45  ;;  %v886_v58 = vmul.f32 %v4254_v12, %v850_v27  ;;  %v833_v56 = vadd.f32 1.0, %v3818_v61 }
 0x157   : > { %952 = vst [vmem:[#allocation2 + $0xc2] sm:$0xff] %v919_v47  ;;  %v902_v29 = vmul.f32 %v4254_v12, %v866_v3  ;;  %v849_v10 = vmul.f32 %v817_v53, %v721_v52 }
 0x158   : > { %968 = vst [vmem:[#allocation2 + $0x182] sm:$0xff] %v935_v21  ;;  %v922_v30 = vadd.f32 %v4256_v13, %v886_v58  ;;  %v865_v60 = vmul.f32 %v833_v56, %v737_v54 }
 0x159   : > { %v938_v59 = vadd.f32 %v4256_v13, %v902_v29  ;;  %v885_v36 = vmul.f32 %v4254_v12, %v849_v10 }
 0x15a   : > { %955 = vst [vmem:[#allocation2 + $0xe2] sm:$0xff] %v922_v30  ;;  %v901_v0 = vmul.f32 %v4254_v12, %v865_v60 }
 0x15b   : > { %971 = vst [vmem:[#allocation2 + $0x1a2] sm:$0xff] %v938_v59  ;;  %v921_v20 = vadd.f32 %v4256_v13, %v885_v36 }
 0x15c   : > { %v937_v62 = vadd.f32 %v4256_v13, %v901_v0 }
 0x15d   : > { %954 = vst [vmem:[#allocation2 + $0xda] sm:$0xff] %v921_v20 }
 0x15e   : > { %970 = vst [vmem:[#allocation2 + $0x19a] sm:$0xff] %v937_v62 }
 0x15f PF: > { %v4471_v17 = vld [vmem:[%s4148_s15] sm:$0xff]  ;;  %v4474_v2 = vld [vmem:[%s4148_s15 + $0x8] sm:$0xff]  ;;  %v4477_v48 = vld [vmem:[%s4148_s15 + $0x10] sm:$0xff]  ;;  %s4485_s14 = smov 0  }
 0x160   : > { %6155 = vst [vmem:[#allocation15_spill] sm:$0xff] %v4471_v17  ;;  %6156 = vst [vmem:[#allocation16_spill] sm:$0xff] %v4474_v2  ;;  %v4480_v5 = vld [vmem:[%s4148_s15 + $0x18] ss:$0 sm:$0xff]  ;;  %v4483_v6 = vld [vmem:[%s4158_s27] sm:$0x3f] }
 0x161   : > { %6157 = vst [vmem:[#allocation17_spill] sm:$0xff] %v4477_v48  ;;  %6158 = vst [vmem:[#allocation18_spill] sm:$0xff] %v4480_v5 }
 0x162   : > { %6159 = vst [vmem:[#allocation19_spill] sm:$0xff] %v4483_v6 }
 0x163 LB: >> { %v1010_v12 = vlaneseq  ;;  %s3135_s23 = smul.u32 192, %s4017_s14  ;;  %s3146_s15 = sshll.u32 %s4017_s14, 7  ;;  %s4017_s14 = sphi %s4485_s14, %s982_s14  }
 0x164   : >> { %s5567_s25 = scalar_lea.vmem [#allocation3], %s3146_s15  ;;  %s982_s14 = sadd.s32 1, %s4017_s14  }
 0x165   : >> { %v1011_v13 = vshrl.u32 %v1010_v12, 7  ;;  %s4499_s27 = scalar_lea.vmem [#allocation2], %s3135_s23  ;;  %p979_p1 = scmp.ge.s32.totalorder %s982_s14, 2  }
 0x166   : >> { %v986_v9 = vld [vmem:[%s4499_s27] sm:$0xff]  ;;  %v987_v41 = vld [vmem:[%s4499_s27 + $0x8] sm:$0xff]  ;;  %v988_v16 = vld [vmem:[%s4499_s27 + $0x18] sm:$0xff]  ;;  %p3138_p2 = scmp.ge.s32.totalorder (%p979_p1), %s3997_s30, 1 }
 0x167   : >> { %v6160_v2 = vld [vmem:[#allocation16_spill] sm:$0xff]  ;;  %v6161_v17 = vld [vmem:[#allocation15_spill] sm:$0xff]  ;;  %v4491_v38 = vsub.s32 0, %v1011_v13  ;;  %v4493_v4 = vsub.s32 5, %v1011_v13  ;;  %v4495_v7 = vsub.s32 2, %v1011_v13  ;;  %v4497_v8 = vsub.s32 7, %v1011_v13 }
 0x168   : >> { %v4502_v11 = vsub.s32 4, %v1011_v13  ;;  %v4504_v23 = vsub.s32 1, %v1011_v13  ;;  %v4506_v14 = vsub.s32 6, %v1011_v13  ;;  %v989_v15 = vld [vmem:[%s4499_s27 + $0x20] sm:$0xff]  ;;  %v4514_v18 = vld [vmem:[%s4499_s27 + $0x30] sm:$0xff]  ;;  %v4517_v1 = vld [vmem:[%s4499_s27 + $0x38] sm:$0xff] }
 0x169   : >> { %6162 = vst [vmem:[#allocation20_spill] sm:$0xff] %v4491_v38  ;;  %6163 = vst [vmem:[#allocation21_spill] sm:$0xff] %v4493_v4  ;;  %v1013_v31 = vrot.slane %v6161_v17, %v4491_v38  ;;  %v4520_v19 = vld [vmem:[%s4499_s27 + $0x48] sm:$0xff]  ;;  %v4523_v22 = vld [vmem:[%s4499_s27 + $0x50] sm:$0xff]  ;;  %v1033_v49 = vrot.slane %v6161_v17, %v4493_v4  ;;  %v4535_v46 = vrot.slane %v6160_v2, %v4495_v7  ;;  %v4562_v50 = vsub.s32 3, %v1011_v13 }
 0x16a   : >> { %6164 = vst [vmem:[#allocation22_spill] sm:$0xff] %v4495_v7  ;;  %6165 = vst [vmem:[#allocation23_spill] sm:$0xff] %v4497_v8  ;;  %v4526_v42 = vld [vmem:[%s4499_s27 + $0x60] sm:$0xff]  ;;  %v4529_v26 = vld [vmem:[%s4499_s27 + $0x68] sm:$0xff]  ;;  %v4539_v28 = vrot.slane %v6160_v2, %v4497_v8  ;;  %v4556_v34 = vrot.slane %v6161_v17, %v4504_v23  ;;  %v4560_v35 = vrot.slane %v6161_v17, %v4506_v14 }
 0x16b   : >> { %6166 = vst [vmem:[#allocation24_spill] sm:$0xff] %v4502_v11  ;;  %6167 = vst [vmem:[#allocation25_spill] sm:$0xff] %v4504_v23  ;;  %v4542_v33 = vld [vmem:[%s4499_s27 + $0x78] sm:$0xff]  ;;  %v4545_v51 = vld [vmem:[%s4499_s27 + $0x80] sm:$0xff]  ;;  %v1014_v25 = vmul.f32 %v1013_v31, %v986_v9  ;;  %v1015_v40 = vmul.f32 %v1013_v31, %v987_v41  ;;  %v1016_v43 = vmul.f32 %v1013_v31, %v988_v16 }
 0x16c   : >> { %6168 = vst [vmem:[#allocation26_spill] sm:$0xff] %v4506_v14  ;;  %6169 = vst [vmem:[#allocation27_spill] sm:$0xff] %v4539_v28  ;;  %v4548_v32 = vld [vmem:[%s4499_s27 + $0x90] sm:$0xff]  ;;  %v4565_v37 = vld [vmem:[%s4499_s27 + $0x98] sm:$0xff]  ;;  %v1017_v55 = vmul.f32 %v1013_v31, %v989_v15  ;;  %v1018_v44 = vmul.f32 %v1013_v31, %v4514_v18  ;;  %v1019_v57 = vmul.f32 %v1013_v31, %v4517_v1 }
 0x16d   : >> { %v6170_v48 = vld [vmem:[#allocation17_spill] sm:$0xff]  ;;  %6172 = vst [vmem:[#allocation29_spill] sm:$0xff] %v4556_v34  ;;  %6173 = vst [vmem:[#allocation30_spill] sm:$0xff] %v4560_v35  ;;  %v4568_v39 = vld [vmem:[%s4499_s27 + $0xa8] sm:$0xff]  ;;  %v1020_v45 = vmul.f32 %v1013_v31, %v4520_v19  ;;  %v1021_v27 = vmul.f32 %v1013_v31, %v4523_v22  ;;  %v1022_v47 = vmul.f32 %v1013_v31, %v4526_v42 }
 0x16e   : >> { %v4552_v24 = vrot.slane %v6170_v48, %v4502_v11  ;;  %6174 = vst [vmem:[#allocation31_spill] sm:$0xff] %v4562_v50  ;;  %v4571_v63 = vld [vmem:[%s4499_s27 + $0xb0] sm:$0xff]  ;;  %v1023_v3 = vmul.f32 %v1013_v31, %v4529_v26  ;;  %v1024_v52 = vmul.f32 %v1013_v31, %v4542_v33  ;;  %v1025_v53 = vmul.f32 %v1013_v31, %v4545_v51  ;;  %v4586_v10 = vld [vmem:[%s4499_s27 + $0xc0] sm:$0xff]  ;;  %v4589_v54 = vld [vmem:[%s4499_s27 + $0xc8] sm:$0xff] }
 0x16f   : >> { %v1026_v61 = vmul.f32 %v1013_v31, %v4548_v32  ;;  %v1027_v21 = vmul.f32 %v1013_v31, %v4565_v37  ;;  %v1028_v58 = vmul.f32 %v1013_v31, %v4568_v39  ;;  %v1029_v29 = vmul.f32 %v1013_v31, %v4571_v63  ;;  %6175 = vst [vmem:[#allocation32_spill] sm:$0xff] %v4586_v10 }
 0x170   : >> { %6171 = vst [vmem:[#allocation28_spill] sm:$0xff] %v4552_v24  ;;  %v1034_v56 = vmul.f32 %v1033_v49, %v988_v16  ;;  %v1035_v30 = vmul.f32 %v1033_v49, %v989_v15  ;;  %v1036_v59 = vmul.f32 %v1033_v49, %v4514_v18  ;;  %v1037_v36 = vmul.f32 %v1033_v49, %v4517_v1 }
 0x171   : >> { %v1038_v60 = vmul.f32 %v1033_v49, %v4520_v19  ;;  %v1039_v20 = vmul.f32 %v1033_v49, %v4523_v22  ;;  %v1040_v0 = vmul.f32 %v1033_v49, %v4526_v42  ;;  %v1041_v62 = vmul.f32 %v1033_v49, %v4529_v26 }
 0x172   : >> { %v1042_v12 = vmul.f32 %v1033_v49, %v4542_v33  ;;  %v1043_v13 = vmul.f32 %v1033_v49, %v4545_v51  ;;  %v1044_v9 = vmul.f32 %v1033_v49, %v4548_v32  ;;  %v1045_v41 = vmul.f32 %v1033_v49, %v4565_v37 }
 0x173   : >> { %v1046_v16 = vmul.f32 %v1033_v49, %v4568_v39  ;;  %v1047_v15 = vmul.f32 %v1033_v49, %v4571_v63  ;;  %v1048_v31 = vmul.f32 %v1033_v49, %v4586_v10  ;;  %v1049_v6 = vmul.f32 %v1033_v49, %v4589_v54  ;;  %v4606_v10 = vld [vmem:[%s4499_s27 + $0xd8] sm:$0xff]  ;;  %v4609_v49 = vld [vmem:[%s4499_s27 + $0xe0] sm:$0xff] }
 0x174   : >> { %v1050_v5 = vadd.f32 %v1034_v56, %v1014_v25  ;;  %v1051_v14 = vadd.f32 %v1035_v30, %v1015_v40  ;;  %v1052_v23 = vadd.f32 %v1036_v59, %v1016_v43  ;;  %v1053_v11 = vadd.f32 %v1037_v36, %v1017_v55 }
 0x175   : >> { %v1054_v8 = vadd.f32 %v1038_v60, %v1018_v44  ;;  %v1055_v7 = vadd.f32 %v1039_v20, %v1019_v57  ;;  %v1056_v17 = vadd.f32 %v1040_v0, %v1020_v45  ;;  %v1057_v4 = vadd.f32 %v1041_v62, %v1021_v27 }
 0x176   : >> { %v1058_v48 = vadd.f32 %v1042_v12, %v1022_v47  ;;  %v1059_v38 = vadd.f32 %v1043_v13, %v1023_v3  ;;  %v1060_v2 = vadd.f32 %v1044_v9, %v1024_v52  ;;  %v1061_v50 = vadd.f32 %v1045_v41, %v1025_v53  ;;  %v6176_v3 = vld [vmem:[#allocation32_spill] sm:$0xff] }
 0x177   : >> { %v1062_v35 = vadd.f32 %v1046_v16, %v1026_v61  ;;  %v1063_v34 = vadd.f32 %v1047_v15, %v1027_v21  ;;  %v1064_v24 = vadd.f32 %v1048_v31, %v1028_v58  ;;  %v1065_v28 = vadd.f32 %v1049_v6, %v1029_v29  ;;  %v1006_v31 = vld [vmem:[%s4499_s27 + $0xf0] sm:$0xff] }
 0x178   : >> { %v1070_v25 = vmul.f32 %v4535_v46, %v4514_v18  ;;  %v1071_v40 = vmul.f32 %v4535_v46, %v4517_v1  ;;  %v1072_v43 = vmul.f32 %v4535_v46, %v4520_v19  ;;  %v1073_v55 = vmul.f32 %v4535_v46, %v4523_v22 }
 0x179   : >> { %v1074_v44 = vmul.f32 %v4535_v46, %v4526_v42  ;;  %v1075_v6 = vmul.f32 %v4535_v46, %v4529_v26  ;;  %v1076_v57 = vmul.f32 %v4535_v46, %v4542_v33  ;;  %v1077_v18 = vmul.f32 %v4535_v46, %v4545_v51 }
 0x17a   : >> { %v1078_v1 = vmul.f32 %v4535_v46, %v4548_v32  ;;  %v1079_v45 = vmul.f32 %v4535_v46, %v4565_v37  ;;  %v1080_v27 = vmul.f32 %v4535_v46, %v4568_v39  ;;  %v1081_v47 = vmul.f32 %v4535_v46, %v4571_v63 }
 0x17b   : >> { %v1082_v52 = vmul.f32 %v4535_v46, %v6176_v3  ;;  %v1083_v53 = vmul.f32 %v4535_v46, %v4589_v54  ;;  %v1084_v61 = vmul.f32 %v4535_v46, %v4606_v10  ;;  %v1085_v21 = vmul.f32 %v4535_v46, %v4609_v49  ;;  %v1007_v46 = vld [vmem:[%s4499_s27 + $0xf8] sm:$0xff] }
 0x17c   : >> { %v1086_v58 = vadd.f32 %v1070_v25, %v1050_v5  ;;  %v1087_v29 = vadd.f32 %v1071_v40, %v1051_v14  ;;  %v1088_v56 = vadd.f32 %v1072_v43, %v1052_v23  ;;  %v1089_v30 = vadd.f32 %v1073_v55, %v1053_v11  ;;  %v6177_v5 = vld [vmem:[#allocation27_spill] sm:$0xff] }
 0x17d   : >> { %v1090_v59 = vadd.f32 %v1074_v44, %v1054_v8  ;;  %v1091_v36 = vadd.f32 %v1075_v6, %v1055_v7  ;;  %v1092_v60 = vadd.f32 %v1076_v57, %v1056_v17  ;;  %v1093_v20 = vadd.f32 %v1077_v18, %v1057_v4 }
 0x17e   : >> { %v1094_v0 = vadd.f32 %v1078_v1, %v1058_v48  ;;  %v1095_v62 = vadd.f32 %v1079_v45, %v1059_v38  ;;  %v1096_v12 = vadd.f32 %v1080_v27, %v1060_v2  ;;  %v1097_v13 = vadd.f32 %v1081_v47, %v1061_v50 }
 0x17f   : >> { %v1098_v9 = vadd.f32 %v1082_v52, %v1062_v35  ;;  %v1099_v41 = vadd.f32 %v1083_v53, %v1063_v34  ;;  %v1100_v16 = vadd.f32 %v1084_v61, %v1064_v24  ;;  %v1101_v15 = vadd.f32 %v1085_v21, %v1065_v28  ;;  %v1008_v21 = vld [vmem:[%s4499_s27 + $0x108] sm:$0xff] }
 0x180   : >> { %v1106_v14 = vmul.f32 %v6177_v5, %v4520_v19  ;;  %v1107_v11 = vmul.f32 %v6177_v5, %v4523_v22  ;;  %v1108_v17 = vmul.f32 %v6177_v5, %v4526_v42  ;;  %v1109_v48 = vmul.f32 %v6177_v5, %v4529_v26 }
 0x181   : >> { %v1110_v2 = vmul.f32 %v6177_v5, %v4542_v33  ;;  %v1111_v38 = vmul.f32 %v6177_v5, %v4545_v51  ;;  %v1112_v4 = vmul.f32 %v6177_v5, %v4548_v32  ;;  %v1113_v7 = vmul.f32 %v6177_v5, %v4565_v37 }
 0x182   : >> { %v1114_v8 = vmul.f32 %v6177_v5, %v4568_v39  ;;  %v1115_v23 = vmul.f32 %v6177_v5, %v4571_v63  ;;  %v1116_v19 = vmul.f32 %v6177_v5, %v6176_v3  ;;  %v1117_v22 = vmul.f32 %v6177_v5, %v4589_v54 }
 0x183   : >> { %v1118_v28 = vmul.f32 %v6177_v5, %v4606_v10  ;;  %v1119_v24 = vmul.f32 %v6177_v5, %v4609_v49  ;;  %v1120_v34 = vmul.f32 %v6177_v5, %v1006_v31  ;;  %v1121_v35 = vmul.f32 %v6177_v5, %v1007_v46  ;;  %v1009_v5 = vld [vmem:[%s4499_s27 + $0x110] sm:$0xff] }
 0x184   : >> { %v1122_v50 = vadd.f32 %v1106_v14, %v1086_v58  ;;  %v1123_v25 = vadd.f32 %v1107_v11, %v1087_v29  ;;  %v1124_v40 = vadd.f32 %v1108_v17, %v1088_v56  ;;  %v1125_v43 = vadd.f32 %v1109_v48, %v1089_v30  ;;  %v6178_v58 = vld [vmem:[#allocation28_spill] sm:$0xff]  ;;  %v4716_v11 = vld [vmem:[%s4499_s27 + $0x49] sm:$0xff] }
 0x185   : >> { %v1126_v55 = vadd.f32 %v1110_v2, %v1090_v59  ;;  %v1127_v44 = vadd.f32 %v1111_v38, %v1091_v36  ;;  %v1128_v6 = vadd.f32 %v1112_v4, %v1092_v60  ;;  %v1129_v57 = vadd.f32 %v1113_v7, %v1093_v20  ;;  %v4713_v14 = vld [vmem:[%s4499_s27 + $0x39] sm:$0xff]  ;;  %v4719_v4 = vld [vmem:[%s4499_s27 + $0x51] sm:$0xff]  ;;  %v4722_v7 = vld [vmem:[%s4499_s27 + $0x61] sm:$0xff] }
 0x186   : >> { %v1130_v18 = vadd.f32 %v1114_v8, %v1094_v0  ;;  %v1131_v1 = vadd.f32 %v1115_v23, %v1095_v62  ;;  %v1132_v45 = vadd.f32 %v1116_v19, %v1096_v12  ;;  %v1133_v27 = vadd.f32 %v1117_v22, %v1097_v13  ;;  %v1174_v0 = vld [vmem:[%s4499_s27 + $0x1] sm:$0xff]  ;;  %v1175_v13 = vld [vmem:[%s4499_s27 + $0x9] sm:$0xff] }
 0x187   : >> { %v1134_v47 = vadd.f32 %v1118_v28, %v1098_v9  ;;  %v1135_v52 = vadd.f32 %v1119_v24, %v1099_v41  ;;  %v1136_v53 = vadd.f32 %v1120_v34, %v1100_v16  ;;  %v1137_v61 = vadd.f32 %v1121_v35, %v1101_v15  ;;  %v1177_v9 = vld [vmem:[%s4499_s27 + $0x21] sm:$0xff]  ;;  %v4725_v8 = vld [vmem:[%s4499_s27 + $0x69] sm:$0xff]  ;;  %v4728_v24 = vld [vmem:[%s4499_s27 + $0x79] sm:$0xff] }
 0x188   : >> { %v1142_v29 = vmul.f32 %v6178_v58, %v4526_v42  ;;  %v1143_v56 = vmul.f32 %v6178_v58, %v4529_v26  ;;  %v1144_v30 = vmul.f32 %v6178_v58, %v4542_v33  ;;  %v1145_v59 = vmul.f32 %v6178_v58, %v4545_v51  ;;  %v4731_v34 = vld [vmem:[%s4499_s27 + $0x81] sm:$0xff]  ;;  %v4734_v35 = vld [vmem:[%s4499_s27 + $0x91] sm:$0xff] }
 0x189   : >> { %v1146_v36 = vmul.f32 %v6178_v58, %v4548_v32  ;;  %v1147_v60 = vmul.f32 %v6178_v58, %v4565_v37  ;;  %v1148_v42 = vmul.f32 %v6178_v58, %v4568_v39  ;;  %v1149_v26 = vmul.f32 %v6178_v58, %v4571_v63 }
 0x18a   : >> { %v1150_v33 = vmul.f32 %v6178_v58, %v6176_v3  ;;  %v1151_v51 = vmul.f32 %v6178_v58, %v4589_v54  ;;  %v1152_v32 = vmul.f32 %v6178_v58, %v4606_v10  ;;  %v1153_v37 = vmul.f32 %v6178_v58, %v4609_v49  ;;  %v1176_v49 = vld [vmem:[%s4499_s27 + $0x19] sm:$0xff] }
 0x18b   : >> { %v1154_v20 = vmul.f32 %v6178_v58, %v1006_v31  ;;  %v1155_v39 = vmul.f32 %v6178_v58, %v1007_v46  ;;  %v1156_v63 = vmul.f32 %v6178_v58, %v1008_v21  ;;  %v1157_v3 = vmul.f32 %v6178_v58, %v1009_v5  ;;  %v4710_v46 = vld [vmem:[%s4499_s27 + $0x31] sm:$0xff] }
 0x18c   : >> { %v1158_v62 = vadd.f32 %v1142_v29, %v1122_v50  ;;  %v1159_v54 = vadd.f32 %v1143_v56, %v1123_v25  ;;  %v1160_v12 = vadd.f32 %v1144_v30, %v1124_v40  ;;  %v1161_v10 = vadd.f32 %v1145_v59, %v1125_v43  ;;  %v4737_v50 = vld [vmem:[%s4499_s27 + $0x99] sm:$0xff]  ;;  %v4740_v25 = vld [vmem:[%s4499_s27 + $0xa9] sm:$0xff]  ;;  %v4743_v40 = vld [vmem:[%s4499_s27 + $0xb1] sm:$0xff] }
 0x18d   : >> { %v1162_v41 = vadd.f32 %v1146_v36, %v1126_v55  ;;  %v1163_v16 = vadd.f32 %v1147_v60, %v1127_v44  ;;  %v1164_v15 = vadd.f32 %v1148_v42, %v1128_v6  ;;  %v1165_v31 = vadd.f32 %v1149_v26, %v1129_v57  ;;  %v6179_v43 = vld [vmem:[#allocation29_spill] sm:$0xff] }
 0x18e   : >> { %v1166_v17 = vadd.f32 %v1150_v33, %v1130_v18  ;;  %v1167_v48 = vadd.f32 %v1151_v51, %v1131_v1  ;;  %v1168_v2 = vadd.f32 %v1152_v32, %v1132_v45  ;;  %v1169_v38 = vadd.f32 %v1153_v37, %v1133_v27 }
 0x18f   : >> { %v1170_v23 = vadd.f32 %v1154_v20, %v1134_v47  ;;  %v1171_v19 = vadd.f32 %v1155_v39, %v1135_v52  ;;  %v1172_v22 = vadd.f32 %v1156_v63, %v1136_v53  ;;  %v1173_v28 = vadd.f32 %v1157_v3, %v1137_v61 }
 0x190   : >> { %v1202_v55 = vmul.f32 %v6179_v43, %v1174_v0  ;;  %v1203_v44 = vmul.f32 %v6179_v43, %v1175_v13  ;;  %v1204_v6 = vmul.f32 %v6179_v43, %v1176_v49  ;;  %v1205_v57 = vmul.f32 %v6179_v43, %v1177_v9  ;;  %v4774_v13 = vld [vmem:[%s4499_s27 + $0xc1] sm:$0xff] }
 0x191   : >> { %v1206_v18 = vmul.f32 %v6179_v43, %v4710_v46  ;;  %v1207_v1 = vmul.f32 %v6179_v43, %v4713_v14  ;;  %v1208_v45 = vmul.f32 %v6179_v43, %v4716_v11  ;;  %v1209_v27 = vmul.f32 %v6179_v43, %v4719_v4 }
 0x192   : >> { %v1210_v47 = vmul.f32 %v6179_v43, %v4722_v7  ;;  %v1211_v52 = vmul.f32 %v6179_v43, %v4725_v8  ;;  %v1212_v53 = vmul.f32 %v6179_v43, %v4728_v24  ;;  %v1213_v61 = vmul.f32 %v6179_v43, %v4731_v34 }
 0x193   : >> { %v1214_v21 = vmul.f32 %v6179_v43, %v4734_v35  ;;  %v1215_v5 = vmul.f32 %v6179_v43, %v4737_v50  ;;  %v1216_v58 = vmul.f32 %v6179_v43, %v4740_v25  ;;  %v1217_v29 = vmul.f32 %v6179_v43, %v4743_v40 }
 0x194   : >> { %v1218_v56 = vadd.f32 %v1202_v55, %v1158_v62  ;;  %v1219_v30 = vadd.f32 %v1203_v44, %v1159_v54  ;;  %v1220_v59 = vadd.f32 %v1204_v6, %v1160_v12  ;;  %v1221_v36 = vadd.f32 %v1205_v57, %v1161_v10  ;;  %v4777_v62 = vld [vmem:[%s4499_s27 + $0xc9] sm:$0xff] }
 0x195   : >> { %v1222_v60 = vadd.f32 %v1206_v18, %v1162_v41  ;;  %v1223_v42 = vadd.f32 %v1207_v1, %v1163_v16  ;;  %v1224_v26 = vadd.f32 %v1208_v45, %v1164_v15  ;;  %v1225_v33 = vadd.f32 %v1209_v27, %v1165_v31  ;;  %v6180_v54 = vld [vmem:[#allocation30_spill] sm:$0xff] }
 0x196   : >> { %v1226_v51 = vadd.f32 %v1210_v47, %v1166_v17  ;;  %v1227_v32 = vadd.f32 %v1211_v52, %v1167_v48  ;;  %v1228_v37 = vadd.f32 %v1212_v53, %v1168_v2  ;;  %v1229_v20 = vadd.f32 %v1213_v61, %v1169_v38  ;;  %v6181_v53 = vld [vmem:[#allocation31_spill] sm:$0xff]  ;;  %v6182_v61 = vld [vmem:[#allocation16_spill] sm:$0xff] }
 0x197   : >> { %v1230_v39 = vadd.f32 %v1214_v21, %v1170_v23  ;;  %v1231_v63 = vadd.f32 %v1215_v5, %v1171_v19  ;;  %v1232_v3 = vadd.f32 %v1216_v58, %v1172_v22  ;;  %v1233_v0 = vadd.f32 %v1217_v29, %v1173_v28 }
 0x198   : >> { %v1238_v43 = vmul.f32 %v6180_v54, %v1176_v49  ;;  %v1239_v12 = vmul.f32 %v6180_v54, %v1177_v9  ;;  %v1240_v10 = vmul.f32 %v6180_v54, %v4710_v46  ;;  %v1241_v41 = vmul.f32 %v6180_v54, %v4713_v14 }
 0x199   : >> { %v1242_v16 = vmul.f32 %v6180_v54, %v4716_v11  ;;  %v1243_v15 = vmul.f32 %v6180_v54, %v4719_v4  ;;  %v1244_v31 = vmul.f32 %v6180_v54, %v4722_v7  ;;  %v1245_v49 = vmul.f32 %v6180_v54, %v4725_v8 }
 0x19a   : >> { %v1246_v9 = vmul.f32 %v6180_v54, %v4728_v24  ;;  %v1247_v17 = vmul.f32 %v6180_v54, %v4731_v34  ;;  %v1248_v48 = vmul.f32 %v6180_v54, %v4734_v35  ;;  %v1249_v2 = vmul.f32 %v6180_v54, %v4737_v50 }
 0x19b   : >> { %v1250_v38 = vmul.f32 %v6180_v54, %v4740_v25  ;;  %v1251_v23 = vmul.f32 %v6180_v54, %v4743_v40  ;;  %v1252_v19 = vmul.f32 %v6180_v54, %v4774_v13  ;;  %v1253_v22 = vmul.f32 %v6180_v54, %v4777_v62 }
 0x19c   : >> { %v1254_v28 = vadd.f32 %v1238_v43, %v1218_v56  ;;  %v1255_v55 = vadd.f32 %v1239_v12, %v1219_v30  ;;  %v1256_v44 = vadd.f32 %v1240_v10, %v1220_v59  ;;  %v1257_v6 = vadd.f32 %v1241_v41, %v1221_v36  ;;  %v6183_v30 = vld [vmem:[#allocation20_spill] sm:$0xff]  ;;  %v6184_v59 = vld [vmem:[#allocation17_spill] sm:$0xff] }
 0x19d   : >> { %v1258_v57 = vadd.f32 %v1242_v16, %v1222_v60  ;;  %v1259_v18 = vadd.f32 %v1243_v15, %v1223_v42  ;;  %v1260_v1 = vadd.f32 %v1244_v31, %v1224_v26  ;;  %v1261_v45 = vadd.f32 %v1245_v49, %v1225_v33  ;;  %v6185_v60 = vld [vmem:[#allocation21_spill] sm:$0xff]  ;;  %v6187_v26 = vld [vmem:[#allocation15_spill] sm:$0xff] }
 0x19e   : >> { %v1262_v27 = vadd.f32 %v1246_v9, %v1226_v51  ;;  %v1263_v47 = vadd.f32 %v1247_v17, %v1227_v32  ;;  %v1264_v52 = vadd.f32 %v1248_v48, %v1228_v37  ;;  %v1273_v21 = vrot.slane %v6182_v61, %v6181_v53  ;;  %v6191_v37 = vld [vmem:[#allocation22_spill] sm:$0xff] }
 0x19f   : >> { %v1265_v5 = vadd.f32 %v1249_v2, %v1229_v20  ;;  %v1266_v58 = vadd.f32 %v1250_v38, %v1230_v39  ;;  %v1267_v29 = vadd.f32 %v1251_v23, %v1231_v63  ;;  %v1268_v54 = vadd.f32 %v1252_v19, %v1232_v3  ;;  %v6193_v39 = vld [vmem:[#allocation23_spill] sm:$0xff] }
 0x1a0   : >> { %v1269_v56 = vadd.f32 %v1253_v22, %v1233_v0  ;;  %v1309_v36 = vrot.slane %v6184_v59, %v6183_v30  ;;  %v4815_v42 = vrot.slane %v6184_v59, %v6185_v60  ;;  %v4819_v33 = vrot.slane %v6187_v26, %v6181_v53  ;;  %v4838_v3 = vld [vmem:[%s4499_s27 + $0xd9] sm:$0xff]  ;;  %v4841_v0 = vld [vmem:[%s4499_s27 + $0xe1] sm:$0xff] }
 0x1a1   : >> { %v4823_v51 = vrot.slane %v6182_v61, %v6183_v30  ;;  %v4827_v32 = vrot.slane %v6182_v61, %v6185_v60  ;;  %v4831_v20 = vrot.slane %v6184_v59, %v6191_v37  ;;  %v4835_v63 = vrot.slane %v6184_v59, %v6193_v39  ;;  %6195 = vst [vmem:[#allocation34_spill] sm:$0xff] %v4838_v3 }
 0x1a2   : >> { %6186 = vst [vmem:[#allocation32_spill] sm:$0xff] %v4815_v42  ;;  %6188 = vst [vmem:[#allocation27_spill] sm:$0xff] %v4819_v33  ;;  %v1274_v43 = vmul.f32 %v1273_v21, %v4710_v46  ;;  %v1275_v12 = vmul.f32 %v1273_v21, %v4713_v14  ;;  %v1276_v10 = vmul.f32 %v1273_v21, %v4716_v11 }
 0x1a3   : >> { %6189 = vst [vmem:[#allocation28_spill] sm:$0xff] %v4823_v51  ;;  %6190 = vst [vmem:[#allocation29_spill] sm:$0xff] %v4827_v32  ;;  %v1277_v41 = vmul.f32 %v1273_v21, %v4719_v4  ;;  %v1278_v16 = vmul.f32 %v1273_v21, %v4722_v7  ;;  %v1279_v15 = vmul.f32 %v1273_v21, %v4725_v8 }
 0x1a4   : >> { %6192 = vst [vmem:[#allocation30_spill] sm:$0xff] %v4831_v20  ;;  %6194 = vst [vmem:[#allocation33_spill] sm:$0xff] %v4835_v63  ;;  %v1280_v31 = vmul.f32 %v1273_v21, %v4728_v24  ;;  %v1281_v49 = vmul.f32 %v1273_v21, %v4731_v34  ;;  %v1282_v9 = vmul.f32 %v1273_v21, %v4734_v35 }
 0x1a5   : >> { %v1283_v17 = vmul.f32 %v1273_v21, %v4737_v50  ;;  %v1284_v46 = vmul.f32 %v1273_v21, %v4740_v25  ;;  %v1285_v14 = vmul.f32 %v1273_v21, %v4743_v40  ;;  %v1286_v48 = vmul.f32 %v1273_v21, %v4774_v13 }
 0x1a6   : >> { %v1287_v2 = vmul.f32 %v1273_v21, %v4777_v62  ;;  %v1288_v38 = vmul.f32 %v1273_v21, %v4838_v3  ;;  %v1289_v23 = vmul.f32 %v1273_v21, %v4841_v0  ;;  %v1290_v19 = vadd.f32 %v1274_v43, %v1254_v28  ;;  %v1194_v3 = vld [vmem:[%s4499_s27 + $0xf1] sm:$0xff]  ;;  %v1195_v21 = vld [vmem:[%s4499_s27 + $0xf9] sm:$0xff] }
 0x1a7   : >> { %v1291_v22 = vadd.f32 %v1275_v12, %v1255_v55  ;;  %v1292_v60 = vadd.f32 %v1276_v10, %v1256_v44  ;;  %v1293_v30 = vadd.f32 %v1277_v41, %v1257_v6  ;;  %v1294_v39 = vadd.f32 %v1278_v16, %v1258_v57 }
 0x1a8   : >> { %v1295_v37 = vadd.f32 %v1279_v15, %v1259_v18  ;;  %v1296_v59 = vadd.f32 %v1280_v31, %v1260_v1  ;;  %v1297_v53 = vadd.f32 %v1281_v49, %v1261_v45  ;;  %v1298_v61 = vadd.f32 %v1282_v9, %v1262_v27 }
 0x1a9   : >> { %v1299_v26 = vadd.f32 %v1283_v17, %v1263_v47  ;;  %v1300_v63 = vadd.f32 %v1284_v46, %v1264_v52  ;;  %v1301_v20 = vadd.f32 %v1285_v14, %v1265_v5  ;;  %v1302_v32 = vadd.f32 %v1286_v48, %v1266_v58  ;;  %v6196_v52 = vld [vmem:[#allocation34_spill] sm:$0xff] }
 0x1aa   : >> { %v1303_v51 = vadd.f32 %v1287_v2, %v1267_v29  ;;  %v1304_v33 = vadd.f32 %v1288_v38, %v1268_v54  ;;  %v1305_v42 = vadd.f32 %v1289_v23, %v1269_v56  ;;  %v1310_v28 = vmul.f32 %v1309_v36, %v4716_v11  ;;  %v1196_v23 = vld [vmem:[%s4499_s27 + $0x109] sm:$0xff] }
 0x1ab   : >> { %v1311_v55 = vmul.f32 %v1309_v36, %v4719_v4  ;;  %v1312_v44 = vmul.f32 %v1309_v36, %v4722_v7  ;;  %v1313_v6 = vmul.f32 %v1309_v36, %v4725_v8  ;;  %v1314_v57 = vmul.f32 %v1309_v36, %v4728_v24 }
 0x1ac   : >> { %v1315_v18 = vmul.f32 %v1309_v36, %v4731_v34  ;;  %v1316_v1 = vmul.f32 %v1309_v36, %v4734_v35  ;;  %v1317_v45 = vmul.f32 %v1309_v36, %v4737_v50  ;;  %v1318_v27 = vmul.f32 %v1309_v36, %v4740_v25 }
 0x1ad   : >> { %v1319_v47 = vmul.f32 %v1309_v36, %v4743_v40  ;;  %v1320_v11 = vmul.f32 %v1309_v36, %v4774_v13  ;;  %v1321_v4 = vmul.f32 %v1309_v36, %v4777_v62  ;;  %v1322_v5 = vmul.f32 %v1309_v36, %v6196_v52 }
 0x1ae   : >> { %v1323_v58 = vmul.f32 %v1309_v36, %v4841_v0  ;;  %v1324_v29 = vmul.f32 %v1309_v36, %v1194_v3  ;;  %v1325_v54 = vmul.f32 %v1309_v36, %v1195_v21  ;;  %v1326_v56 = vadd.f32 %v1310_v28, %v1290_v19  ;;  %v1197_v36 = vld [vmem:[%s4499_s27 + $0x111] sm:$0xff] }
 0x1af   : >> { %v1327_v43 = vadd.f32 %v1311_v55, %v1291_v22  ;;  %v1328_v12 = vadd.f32 %v1312_v44, %v1292_v60  ;;  %v1329_v10 = vadd.f32 %v1313_v6, %v1293_v30  ;;  %v1330_v41 = vadd.f32 %v1314_v57, %v1294_v39  ;;  %v6197_v19 = vld [vmem:[#allocation32_spill] sm:$0xff]  ;;  %v1380_v39 = vld [vmem:[%s4499_s27 + $0x1b] sm:$0xff]  ;;  %v4910_v28 = vld [vmem:[%s4499_s27 + $0x33] sm:$0xff] }
 0x1b0   : >> { %v1331_v16 = vadd.f32 %v1315_v18, %v1295_v37  ;;  %v1332_v15 = vadd.f32 %v1316_v1, %v1296_v59  ;;  %v1333_v31 = vadd.f32 %v1317_v45, %v1297_v53  ;;  %v1334_v49 = vadd.f32 %v1318_v27, %v1298_v61  ;;  %v4913_v55 = vld [vmem:[%s4499_s27 + $0x3b] sm:$0xff]  ;;  %v4916_v44 = vld [vmem:[%s4499_s27 + $0x4b] sm:$0xff]  ;;  %v4919_v45 = vld [vmem:[%s4499_s27 + $0x53] sm:$0xff] }
 0x1b1   : >> { %v1335_v9 = vadd.f32 %v1319_v47, %v1299_v26  ;;  %v1336_v17 = vadd.f32 %v1320_v11, %v1300_v63  ;;  %v1337_v46 = vadd.f32 %v1321_v4, %v1301_v20  ;;  %v1338_v14 = vadd.f32 %v1322_v5, %v1302_v32  ;;  %v1379_v20 = vld [vmem:[%s4499_s27 + $0xb] sm:$0xff]  ;;  %v1381_v63 = vld [vmem:[%s4499_s27 + $0x23] sm:$0xff] }
 0x1b2   : >> { %v1339_v48 = vadd.f32 %v1323_v58, %v1303_v51  ;;  %v1340_v2 = vadd.f32 %v1324_v29, %v1304_v33  ;;  %v1341_v38 = vadd.f32 %v1325_v54, %v1305_v42  ;;  %v1346_v22 = vmul.f32 %v6197_v19, %v4722_v7  ;;  %v1378_v33 = vld [vmem:[%s4499_s27 + $0x3] sm:$0xff]  ;;  %v4925_v47 = vld [vmem:[%s4499_s27 + $0x6b] sm:$0xff]  ;;  %v4928_v58 = vld [vmem:[%s4499_s27 + $0x7b] sm:$0xff] }
 0x1b3   : >> { %v1347_v30 = vmul.f32 %v6197_v19, %v4725_v8  ;;  %v1348_v53 = vmul.f32 %v6197_v19, %v4728_v24  ;;  %v1349_v61 = vmul.f32 %v6197_v19, %v4731_v34  ;;  %v1350_v59 = vmul.f32 %v6197_v19, %v4734_v35  ;;  %v4922_v27 = vld [vmem:[%s4499_s27 + $0x63] sm:$0xff]  ;;  %v4934_v54 = vld [vmem:[%s4499_s27 + $0x93] sm:$0xff] }
 0x1b4   : >> { %v1351_v42 = vmul.f32 %v6197_v19, %v4737_v50  ;;  %v1352_v7 = vmul.f32 %v6197_v19, %v4740_v25  ;;  %v1353_v8 = vmul.f32 %v6197_v19, %v4743_v40  ;;  %v1354_v24 = vmul.f32 %v6197_v19, %v4774_v13  ;;  %v4931_v29 = vld [vmem:[%s4499_s27 + $0x83] sm:$0xff] }
 0x1b5   : >> { %v1355_v34 = vmul.f32 %v6197_v19, %v4777_v62  ;;  %v1356_v35 = vmul.f32 %v6197_v19, %v6196_v52  ;;  %v1357_v50 = vmul.f32 %v6197_v19, %v4841_v0  ;;  %v1358_v26 = vmul.f32 %v6197_v19, %v1194_v3 }
 0x1b6   : >> { %v1359_v25 = vmul.f32 %v6197_v19, %v1195_v21  ;;  %v1360_v40 = vmul.f32 %v6197_v19, %v1196_v23  ;;  %v1361_v13 = vmul.f32 %v6197_v19, %v1197_v36  ;;  %v1362_v51 = vadd.f32 %v1346_v22, %v1326_v56  ;;  %v4937_v56 = vld [vmem:[%s4499_s27 + $0x9b] sm:$0xff] }
 0x1b7   : >> { %v1363_v62 = vadd.f32 %v1347_v30, %v1327_v43  ;;  %v1364_v32 = vadd.f32 %v1348_v53, %v1328_v12  ;;  %v1365_v37 = vadd.f32 %v1349_v61, %v1329_v10  ;;  %v1366_v3 = vadd.f32 %v1350_v59, %v1330_v41  ;;  %v4940_v43 = vld [vmem:[%s4499_s27 + $0xab] sm:$0xff]  ;;  %v4943_v12 = vld [vmem:[%s4499_s27 + $0xb3] sm:$0xff] }
 0x1b8   : >> { %v1367_v0 = vadd.f32 %v1351_v42, %v1331_v16  ;;  %v1368_v60 = vadd.f32 %v1352_v7, %v1332_v15  ;;  %v1369_v21 = vadd.f32 %v1353_v8, %v1333_v31  ;;  %v1370_v6 = vadd.f32 %v1354_v24, %v1334_v49  ;;  %v6198_v10 = vld [vmem:[#allocation27_spill] sm:$0xff] }
 0x1b9   : >> { %v1371_v57 = vadd.f32 %v1355_v34, %v1335_v9  ;;  %v1372_v18 = vadd.f32 %v1356_v35, %v1336_v17  ;;  %v1373_v1 = vadd.f32 %v1357_v50, %v1337_v46  ;;  %v1374_v11 = vadd.f32 %v1358_v26, %v1338_v14 }
 0x1ba   : >> { %v1375_v4 = vadd.f32 %v1359_v25, %v1339_v48  ;;  %v1376_v52 = vadd.f32 %v1360_v40, %v1340_v2  ;;  %v1377_v5 = vadd.f32 %v1361_v13, %v1341_v38  ;;  %v1406_v41 = vmul.f32 %v6198_v10, %v1378_v33 }
 0x1bb   : >> { %v1407_v16 = vmul.f32 %v6198_v10, %v1379_v20  ;;  %v1408_v15 = vmul.f32 %v6198_v10, %v1380_v39  ;;  %v1409_v31 = vmul.f32 %v6198_v10, %v1381_v63  ;;  %v1410_v49 = vmul.f32 %v6198_v10, %v4910_v28  ;;  %v4974_v20 = vld [vmem:[%s4499_s27 + $0xc3] sm:$0xff] }
 0x1bc   : >> { %v1411_v9 = vmul.f32 %v6198_v10, %v4913_v55  ;;  %v1412_v17 = vmul.f32 %v6198_v10, %v4916_v44  ;;  %v1413_v46 = vmul.f32 %v6198_v10, %v4919_v45  ;;  %v1414_v14 = vmul.f32 %v6198_v10, %v4922_v27 }
 0x1bd   : >> { %v1415_v48 = vmul.f32 %v6198_v10, %v4925_v47  ;;  %v1416_v2 = vmul.f32 %v6198_v10, %v4928_v58  ;;  %v1417_v38 = vmul.f32 %v6198_v10, %v4931_v29  ;;  %v1418_v23 = vmul.f32 %v6198_v10, %v4934_v54 }
 0x1be   : >> { %v1419_v36 = vmul.f32 %v6198_v10, %v4937_v56  ;;  %v1420_v19 = vmul.f32 %v6198_v10, %v4940_v43  ;;  %v1421_v22 = vmul.f32 %v6198_v10, %v4943_v12  ;;  %v1422_v30 = vadd.f32 %v1406_v41, %v1362_v51  ;;  %v4977_v51 = vld [vmem:[%s4499_s27 + $0xcb] sm:$0xff] }
 0x1bf   : >> { %v1423_v53 = vadd.f32 %v1407_v16, %v1363_v62  ;;  %v1424_v61 = vadd.f32 %v1408_v15, %v1364_v32  ;;  %v1425_v59 = vadd.f32 %v1409_v31, %v1365_v37  ;;  %v1426_v42 = vadd.f32 %v1410_v49, %v1366_v3  ;;  %v6199_v62 = vld [vmem:[#allocation28_spill] sm:$0xff] }
 0x1c0   : >> { %v1427_v7 = vadd.f32 %v1411_v9, %v1367_v0  ;;  %v1428_v8 = vadd.f32 %v1412_v17, %v1368_v60  ;;  %v1429_v24 = vadd.f32 %v1413_v46, %v1369_v21  ;;  %v1430_v34 = vadd.f32 %v1414_v14, %v1370_v6 }
 0x1c1   : >> { %v1431_v35 = vadd.f32 %v1415_v48, %v1371_v57  ;;  %v1432_v50 = vadd.f32 %v1416_v2, %v1372_v18  ;;  %v1433_v26 = vadd.f32 %v1417_v38, %v1373_v1  ;;  %v1434_v25 = vadd.f32 %v1418_v23, %v1374_v11 }
 0x1c2   : >> { %v1435_v40 = vadd.f32 %v1419_v36, %v1375_v4  ;;  %v1436_v13 = vadd.f32 %v1420_v19, %v1376_v52  ;;  %v1437_v33 = vadd.f32 %v1421_v22, %v1377_v5  ;;  %v1442_v10 = vmul.f32 %v6199_v62, %v1380_v39  ;;  %v5010_v22 = vld [vmem:[%s4499_s27 + $0xdb] sm:$0xff] }
 0x1c3   : >> { %v1443_v32 = vmul.f32 %v6199_v62, %v1381_v63  ;;  %v1444_v37 = vmul.f32 %v6199_v62, %v4910_v28  ;;  %v1445_v3 = vmul.f32 %v6199_v62, %v4913_v55  ;;  %v1446_v0 = vmul.f32 %v6199_v62, %v4916_v44 }
 0x1c4   : >> { %v1447_v60 = vmul.f32 %v6199_v62, %v4919_v45  ;;  %v1448_v21 = vmul.f32 %v6199_v62, %v4922_v27  ;;  %v1449_v39 = vmul.f32 %v6199_v62, %v4925_v47  ;;  %v1450_v63 = vmul.f32 %v6199_v62, %v4928_v58 }
 0x1c5   : >> { %v1451_v6 = vmul.f32 %v6199_v62, %v4931_v29  ;;  %v1452_v57 = vmul.f32 %v6199_v62, %v4934_v54  ;;  %v1453_v18 = vmul.f32 %v6199_v62, %v4937_v56  ;;  %v1454_v1 = vmul.f32 %v6199_v62, %v4940_v43 }
 0x1c6   : >> { %v1455_v11 = vmul.f32 %v6199_v62, %v4943_v12  ;;  %v1456_v4 = vmul.f32 %v6199_v62, %v4974_v20  ;;  %v1457_v52 = vmul.f32 %v6199_v62, %v4977_v51  ;;  %v1458_v5 = vadd.f32 %v1442_v10, %v1422_v30  ;;  %v5013_v30 = vld [vmem:[%s4499_s27 + $0xe3] sm:$0xff] }
 0x1c7   : >> { %v1459_v41 = vadd.f32 %v1443_v32, %v1423_v53  ;;  %v1460_v16 = vadd.f32 %v1444_v37, %v1424_v61  ;;  %v1461_v15 = vadd.f32 %v1445_v3, %v1425_v59  ;;  %v1462_v31 = vadd.f32 %v1446_v0, %v1426_v42  ;;  %v6200_v53 = vld [vmem:[#allocation29_spill] sm:$0xff] }
 0x1c8   : >> { %v1463_v49 = vadd.f32 %v1447_v60, %v1427_v7  ;;  %v1464_v9 = vadd.f32 %v1448_v21, %v1428_v8  ;;  %v1465_v17 = vadd.f32 %v1449_v39, %v1429_v24  ;;  %v1466_v46 = vadd.f32 %v1450_v63, %v1430_v34 }
 0x1c9   : >> { %v1467_v14 = vadd.f32 %v1451_v6, %v1431_v35  ;;  %v1468_v48 = vadd.f32 %v1452_v57, %v1432_v50  ;;  %v1469_v2 = vadd.f32 %v1453_v18, %v1433_v26  ;;  %v1470_v38 = vadd.f32 %v1454_v1, %v1434_v25 }
 0x1ca   : >> { %v1471_v23 = vadd.f32 %v1455_v11, %v1435_v40  ;;  %v1472_v36 = vadd.f32 %v1456_v4, %v1436_v13  ;;  %v1473_v19 = vadd.f32 %v1457_v52, %v1437_v33  ;;  %v1478_v61 = vmul.f32 %v6200_v53, %v4910_v28  ;;  %v1398_v52 = vld [vmem:[%s4499_s27 + $0xf3] sm:$0xff] }
 0x1cb   : >> { %v1479_v59 = vmul.f32 %v6200_v53, %v4913_v55  ;;  %v1480_v42 = vmul.f32 %v6200_v53, %v4916_v44  ;;  %v1481_v7 = vmul.f32 %v6200_v53, %v4919_v45  ;;  %v1482_v8 = vmul.f32 %v6200_v53, %v4922_v27 }
 0x1cc   : >> { %v1483_v24 = vmul.f32 %v6200_v53, %v4925_v47  ;;  %v1484_v34 = vmul.f32 %v6200_v53, %v4928_v58  ;;  %v1485_v28 = vmul.f32 %v6200_v53, %v4931_v29  ;;  %v1486_v55 = vmul.f32 %v6200_v53, %v4934_v54 }
 0x1cd   : >> { %v1487_v35 = vmul.f32 %v6200_v53, %v4937_v56  ;;  %v1488_v50 = vmul.f32 %v6200_v53, %v4940_v43  ;;  %v1489_v26 = vmul.f32 %v6200_v53, %v4943_v12  ;;  %v1490_v25 = vmul.f32 %v6200_v53, %v4974_v20 }
 0x1ce   : >> { %v1491_v40 = vmul.f32 %v6200_v53, %v4977_v51  ;;  %v1492_v13 = vmul.f32 %v6200_v53, %v5010_v22  ;;  %v1493_v33 = vmul.f32 %v6200_v53, %v5013_v30  ;;  %v1494_v62 = vadd.f32 %v1478_v61, %v1458_v5  ;;  %v1399_v53 = vld [vmem:[%s4499_s27 + $0xfb] sm:$0xff] }
 0x1cf   : >> { %v1495_v10 = vadd.f32 %v1479_v59, %v1459_v41  ;;  %v1496_v32 = vadd.f32 %v1480_v42, %v1460_v16  ;;  %v1497_v37 = vadd.f32 %v1481_v7, %v1461_v15  ;;  %v1498_v3 = vadd.f32 %v1482_v8, %v1462_v31  ;;  %v6201_v5 = vld [vmem:[#allocation30_spill] sm:$0xff] }
 0x1d0   : >> { %v1499_v0 = vadd.f32 %v1483_v24, %v1463_v49  ;;  %v1500_v60 = vadd.f32 %v1484_v34, %v1464_v9  ;;  %v1501_v21 = vadd.f32 %v1485_v28, %v1465_v17  ;;  %v1502_v39 = vadd.f32 %v1486_v55, %v1466_v46 }
 0x1d1   : >> { %v1503_v63 = vadd.f32 %v1487_v35, %v1467_v14  ;;  %v1504_v6 = vadd.f32 %v1488_v50, %v1468_v48  ;;  %v1505_v57 = vadd.f32 %v1489_v26, %v1469_v2  ;;  %v1506_v18 = vadd.f32 %v1490_v25, %v1470_v38 }
 0x1d2   : >> { %v1507_v1 = vadd.f32 %v1491_v40, %v1471_v23  ;;  %v1508_v11 = vadd.f32 %v1492_v13, %v1472_v36  ;;  %v1509_v4 = vadd.f32 %v1493_v33, %v1473_v19  ;;  %v1514_v41 = vmul.f32 %v6201_v5, %v4916_v44  ;;  %v1400_v33 = vld [vmem:[%s4499_s27 + $0x10b] sm:$0xff] }
 0x1d3   : >> { %v1515_v16 = vmul.f32 %v6201_v5, %v4919_v45  ;;  %v1516_v15 = vmul.f32 %v6201_v5, %v4922_v27  ;;  %v1517_v31 = vmul.f32 %v6201_v5, %v4925_v47  ;;  %v1518_v49 = vmul.f32 %v6201_v5, %v4928_v58 }
 0x1d4   : >> { %v1519_v9 = vmul.f32 %v6201_v5, %v4931_v29  ;;  %v1520_v17 = vmul.f32 %v6201_v5, %v4934_v54  ;;  %v1521_v44 = vmul.f32 %v6201_v5, %v4937_v56  ;;  %v1522_v45 = vmul.f32 %v6201_v5, %v4940_v43 }
 0x1d5   : >> { %v1523_v46 = vmul.f32 %v6201_v5, %v4943_v12  ;;  %v1524_v14 = vmul.f32 %v6201_v5, %v4974_v20  ;;  %v1525_v48 = vmul.f32 %v6201_v5, %v4977_v51  ;;  %v1526_v2 = vmul.f32 %v6201_v5, %v5010_v22 }
 0x1d6   : >> { %v1527_v38 = vmul.f32 %v6201_v5, %v5013_v30  ;;  %v1528_v23 = vmul.f32 %v6201_v5, %v1398_v52  ;;  %v1529_v36 = vmul.f32 %v6201_v5, %v1399_v53  ;;  %v1530_v19 = vadd.f32 %v1514_v41, %v1494_v62  ;;  %v1401_v5 = vld [vmem:[%s4499_s27 + $0x113] sm:$0xff] }
 0x1d7   : >> { %v1531_v61 = vadd.f32 %v1515_v16, %v1495_v10  ;;  %v1532_v59 = vadd.f32 %v1516_v15, %v1496_v32  ;;  %v1533_v42 = vadd.f32 %v1517_v31, %v1497_v37  ;;  %v1534_v7 = vadd.f32 %v1518_v49, %v1498_v3  ;;  %v6202_v62 = vld [vmem:[#allocation33_spill] sm:$0xff]  ;;  %v1585_v16 = vld [vmem:[%s4499_s27 + $0x24] sm:$0xff]  ;;  %v5119_v31 = vld [vmem:[%s4499_s27 + $0x3c] sm:$0xff] }
 0x1d8   : >> { %v1535_v8 = vadd.f32 %v1519_v9, %v1499_v0  ;;  %v1536_v24 = vadd.f32 %v1520_v17, %v1500_v60  ;;  %v1537_v34 = vadd.f32 %v1521_v44, %v1501_v21  ;;  %v1538_v28 = vadd.f32 %v1522_v45, %v1502_v39  ;;  %v5116_v15 = vld [vmem:[%s4499_s27 + $0x34] sm:$0xff]  ;;  %v6204_v9 = vld [vmem:[#allocation15_spill] sm:$0xff] }
 0x1d9   : >> { %v1539_v55 = vadd.f32 %v1523_v46, %v1503_v63  ;;  %v1540_v35 = vadd.f32 %v1524_v14, %v1504_v6  ;;  %v1541_v50 = vadd.f32 %v1525_v48, %v1505_v57  ;;  %v1542_v26 = vadd.f32 %v1526_v2, %v1506_v18  ;;  %v6203_v49 = vld [vmem:[#allocation24_spill] sm:$0xff] }
 0x1da   : >> { %v1543_v25 = vadd.f32 %v1527_v38, %v1507_v1  ;;  %v1544_v40 = vadd.f32 %v1528_v23, %v1508_v11  ;;  %v1545_v13 = vadd.f32 %v1529_v36, %v1509_v4  ;;  %v1550_v10 = vmul.f32 %v6202_v62, %v4922_v27  ;;  %v1582_v1 = vld [vmem:[%s4499_s27 + $0x4] sm:$0xff]  ;;  %v1583_v11 = vld [vmem:[%s4499_s27 + $0xc] sm:$0xff]  ;;  %v5112_v4 = vld [vmem:[%s4499_s27 + $0x1c] sm:$0xff] }
 0x1db   : >> { %v1551_v32 = vmul.f32 %v6202_v62, %v4925_v47  ;;  %v1552_v37 = vmul.f32 %v6202_v62, %v4928_v58  ;;  %v1553_v3 = vmul.f32 %v6202_v62, %v4931_v29  ;;  %v1554_v0 = vmul.f32 %v6202_v62, %v4934_v54  ;;  %v5124_v48 = vld [vmem:[%s4499_s27 + $0x4c] sm:$0xff]  ;;  %v5127_v2 = vld [vmem:[%s4499_s27 + $0x54] sm:$0xff]  ;;  %v5130_v38 = vld [vmem:[%s4499_s27 + $0x64] sm:$0xff] }
 0x1dc   : >> { %v1555_v60 = vmul.f32 %v6202_v62, %v4937_v56  ;;  %v1556_v21 = vmul.f32 %v6202_v62, %v4940_v43  ;;  %v1557_v27 = vmul.f32 %v6202_v62, %v4943_v12  ;;  %v1558_v47 = vmul.f32 %v6202_v62, %v4974_v20  ;;  %v5133_v36 = vld [vmem:[%s4499_s27 + $0x6c] sm:$0xff] }
 0x1dd   : >> { %v1559_v58 = vmul.f32 %v6202_v62, %v4977_v51  ;;  %v1560_v29 = vmul.f32 %v6202_v62, %v5010_v22  ;;  %v1561_v54 = vmul.f32 %v6202_v62, %v5013_v30  ;;  %v1562_v56 = vmul.f32 %v6202_v62, %v1398_v52 }
 0x1de   : >> { %v1563_v43 = vmul.f32 %v6202_v62, %v1399_v53  ;;  %v1564_v12 = vmul.f32 %v6202_v62, %v1400_v33  ;;  %v1565_v20 = vmul.f32 %v6202_v62, %v1401_v5  ;;  %v1566_v39 = vadd.f32 %v1550_v10, %v1530_v19  ;;  %v5136_v19 = vld [vmem:[%s4499_s27 + $0x7c] sm:$0xff]  ;;  %v5174_v5 = vld [vmem:[%s4499_s27 + $0xac] sm:$0xff]  ;;  %v5177_v62 = vld [vmem:[%s4499_s27 + $0xb4] sm:$0xff] }
 0x1df   : >> { %v1567_v51 = vadd.f32 %v1551_v32, %v1531_v61  ;;  %v1568_v63 = vadd.f32 %v1552_v37, %v1532_v59  ;;  %v1569_v6 = vadd.f32 %v1553_v3, %v1533_v42  ;;  %v1570_v22 = vadd.f32 %v1554_v0, %v1534_v7  ;;  %v5139_v61 = vld [vmem:[%s4499_s27 + $0x84] sm:$0xff]  ;;  %v6205_v59 = vld [vmem:[#allocation25_spill] sm:$0xff]  ;;  %6217 = vst [vmem:[#allocation33_spill] sm:$0xff] %v5174_v5 }
 0x1e0   : >> { %v1571_v57 = vadd.f32 %v1555_v60, %v1535_v8  ;;  %v1572_v18 = vadd.f32 %v1556_v21, %v1536_v24  ;;  %v1573_v30 = vadd.f32 %v1557_v27, %v1537_v34  ;;  %v1574_v52 = vadd.f32 %v1558_v47, %v1538_v28  ;;  %v6206_v42 = vld [vmem:[#allocation16_spill] sm:$0xff]  ;;  %v6207_v8 = vld [vmem:[#allocation26_spill] sm:$0xff]  ;;  %v6209_v34 = vld [vmem:[#allocation31_spill] sm:$0xff] }
 0x1e1   : >> { %v1575_v53 = vadd.f32 %v1559_v58, %v1539_v55  ;;  %v1576_v41 = vadd.f32 %v1560_v29, %v1540_v35  ;;  %v1609_v17 = vrot.slane %v6204_v9, %v6203_v49  ;;  %v1577_v44 = vadd.f32 %v1561_v54, %v1541_v50  ;;  %v6210_v28 = vld [vmem:[#allocation17_spill] sm:$0xff]  ;;  %v6212_v50 = vld [vmem:[#allocation18_spill] sm:$0xff] }
 0x1e2   : >> { %v1578_v45 = vadd.f32 %v1562_v56, %v1542_v26  ;;  %v1579_v46 = vadd.f32 %v1563_v43, %v1543_v25  ;;  %v1580_v14 = vadd.f32 %v1564_v12, %v1544_v40  ;;  %v1581_v23 = vadd.f32 %v1565_v20, %v1545_v13  ;;  %v5152_v35 = vld [vmem:[%s4499_s27 + $0x94] sm:$0xff]  ;;  %v5171_v33 = vld [vmem:[%s4499_s27 + $0x9c] sm:$0xff] }
 0x1e3   : >> { %v1645_v7 = vrot.slane %v6206_v42, %v6205_v59  ;;  %v5145_v24 = vrot.slane %v6206_v42, %v6207_v8  ;;  %v5149_v55 = vrot.slane %v6210_v28, %v6209_v34  ;;  %v5156_v26 = vmul.f32 %v6212_v50, %v5130_v38 }
 0x1e4   : >> { %v5160_v25 = vmul.f32 %v6212_v50, %v5133_v36  ;;  %v5164_v40 = vmul.f32 %v6212_v50, %v5136_v19  ;;  %v5168_v13 = vmul.f32 %v6212_v50, %v5139_v61  ;;  %v1610_v10 = vmul.f32 %v1609_v17, %v1582_v1 }
 0x1e5   : >> { %6208 = vst [vmem:[#allocation34_spill] sm:$0xff] %v5145_v24  ;;  %6211 = vst [vmem:[#allocation32_spill] sm:$0xff] %v5149_v55  ;;  %v1611_v32 = vmul.f32 %v1609_v17, %v1583_v11  ;;  %v1612_v37 = vmul.f32 %v1609_v17, %v5112_v4  ;;  %v1613_v3 = vmul.f32 %v1609_v17, %v1585_v16 }
 0x1e6   : >> { %6213 = vst [vmem:[#allocation27_spill] sm:$0xff] %v5156_v26  ;;  %6214 = vst [vmem:[#allocation28_spill] sm:$0xff] %v5160_v25  ;;  %v1614_v0 = vmul.f32 %v1609_v17, %v5116_v15  ;;  %v1615_v60 = vmul.f32 %v1609_v17, %v5119_v31  ;;  %v1616_v21 = vmul.f32 %v1609_v17, %v5124_v48 }
 0x1e7   : >> { %6215 = vst [vmem:[#allocation29_spill] sm:$0xff] %v5164_v40  ;;  %6216 = vst [vmem:[#allocation30_spill] sm:$0xff] %v5168_v13  ;;  %v1617_v27 = vmul.f32 %v1609_v17, %v5127_v2  ;;  %v1618_v47 = vmul.f32 %v1609_v17, %v5130_v38  ;;  %v1619_v58 = vmul.f32 %v1609_v17, %v5133_v36 }
 0x1e8   : >> { %v1620_v29 = vmul.f32 %v1609_v17, %v5136_v19  ;;  %v1621_v54 = vmul.f32 %v1609_v17, %v5139_v61  ;;  %v1622_v56 = vmul.f32 %v1609_v17, %v5152_v35  ;;  %v1623_v43 = vmul.f32 %v1609_v17, %v5171_v33 }
 0x1e9   : >> { %v1624_v12 = vmul.f32 %v1609_v17, %v5174_v5  ;;  %v1625_v20 = vmul.f32 %v1609_v17, %v5177_v62  ;;  %v1626_v1 = vadd.f32 %v1610_v10, %v1566_v39  ;;  %v1627_v11 = vadd.f32 %v1611_v32, %v1567_v51  ;;  %v5193_v5 = vld [vmem:[%s4499_s27 + $0xc4] sm:$0xff]  ;;  %v5196_v39 = vld [vmem:[%s4499_s27 + $0xcc] sm:$0xff] }
 0x1ea   : >> { %v1628_v34 = vadd.f32 %v1612_v37, %v1568_v63  ;;  %v1629_v8 = vadd.f32 %v1613_v3, %v1569_v6  ;;  %v1630_v28 = vadd.f32 %v1614_v0, %v1570_v22  ;;  %v1631_v59 = vadd.f32 %v1615_v60, %v1571_v57 }
 0x1eb   : >> { %v1632_v42 = vadd.f32 %v1616_v21, %v1572_v18  ;;  %v1633_v49 = vadd.f32 %v1617_v27, %v1573_v30  ;;  %v1634_v9 = vadd.f32 %v1618_v47, %v1574_v52  ;;  %v1635_v13 = vadd.f32 %v1619_v58, %v1575_v53 }
 0x1ec   : >> { %v1636_v40 = vadd.f32 %v1620_v29, %v1576_v41  ;;  %v1637_v25 = vadd.f32 %v1621_v54, %v1577_v44  ;;  %v1638_v26 = vadd.f32 %v1622_v56, %v1578_v45  ;;  %v1639_v50 = vadd.f32 %v1623_v43, %v1579_v46 }
 0x1ed   : >> { %v1640_v55 = vadd.f32 %v1624_v12, %v1580_v14  ;;  %v1641_v24 = vadd.f32 %v1625_v20, %v1581_v23  ;;  %v1646_v51 = vmul.f32 %v1645_v7, %v5112_v4  ;;  %v1647_v63 = vmul.f32 %v1645_v7, %v1585_v16  ;;  %v6218_v16 = vld [vmem:[#allocation33_spill] sm:$0xff]  ;;  %v5214_v20 = vld [vmem:[%s4499_s27 + $0xdc] sm:$0xff] }
 0x1ee   : >> { %v1648_v6 = vmul.f32 %v1645_v7, %v5116_v15  ;;  %v1649_v22 = vmul.f32 %v1645_v7, %v5119_v31  ;;  %v1650_v57 = vmul.f32 %v1645_v7, %v5124_v48  ;;  %v1651_v18 = vmul.f32 %v1645_v7, %v5127_v2 }
 0x1ef   : >> { %v1652_v30 = vmul.f32 %v1645_v7, %v5130_v38  ;;  %v1653_v52 = vmul.f32 %v1645_v7, %v5133_v36  ;;  %v1654_v53 = vmul.f32 %v1645_v7, %v5136_v19  ;;  %v1655_v41 = vmul.f32 %v1645_v7, %v5139_v61 }
 0x1f0   : >> { %v1656_v17 = vmul.f32 %v1645_v7, %v5152_v35  ;;  %v1657_v4 = vmul.f32 %v1645_v7, %v5171_v33  ;;  %v1658_v44 = vmul.f32 %v1645_v7, %v6218_v16  ;;  %v1659_v45 = vmul.f32 %v1645_v7, %v5177_v62 }
 0x1f1   : >> { %v1660_v46 = vmul.f32 %v1645_v7, %v5193_v5  ;;  %v1661_v14 = vmul.f32 %v1645_v7, %v5196_v39  ;;  %v1662_v23 = vadd.f32 %v1646_v51, %v1626_v1  ;;  %v1663_v10 = vadd.f32 %v1647_v63, %v1627_v11  ;;  %v5217_v7 = vld [vmem:[%s4499_s27 + $0xe4] sm:$0xff]  ;;  %v6219_v1 = vld [vmem:[#allocation34_spill] sm:$0xff] }
 0x1f2   : >> { %v1664_v32 = vadd.f32 %v1648_v6, %v1628_v34  ;;  %v1665_v37 = vadd.f32 %v1649_v22, %v1629_v8  ;;  %v1666_v3 = vadd.f32 %v1650_v57, %v1630_v28  ;;  %v1667_v0 = vadd.f32 %v1651_v18, %v1631_v59 }
 0x1f3   : >> { %v1668_v60 = vadd.f32 %v1652_v30, %v1632_v42  ;;  %v1669_v21 = vadd.f32 %v1653_v52, %v1633_v49  ;;  %v1670_v27 = vadd.f32 %v1654_v53, %v1634_v9  ;;  %v1671_v47 = vadd.f32 %v1655_v41, %v1635_v13 }
 0x1f4   : >> { %v1672_v58 = vadd.f32 %v1656_v17, %v1636_v40  ;;  %v1673_v29 = vadd.f32 %v1657_v4, %v1637_v25  ;;  %v1674_v54 = vadd.f32 %v1658_v44, %v1638_v26  ;;  %v1675_v56 = vadd.f32 %v1659_v45, %v1639_v50 }
 0x1f5   : >> { %v1676_v43 = vadd.f32 %v1660_v46, %v1640_v55  ;;  %v1677_v12 = vadd.f32 %v1661_v14, %v1641_v24  ;;  %v1682_v11 = vmul.f32 %v6219_v1, %v5116_v15  ;;  %v1683_v59 = vmul.f32 %v6219_v1, %v5119_v31  ;;  %v1602_v14 = vld [vmem:[%s4499_s27 + $0xf4] sm:$0xff] }
 0x1f6   : >> { %v1684_v49 = vmul.f32 %v6219_v1, %v5124_v48  ;;  %v1685_v9 = vmul.f32 %v6219_v1, %v5127_v2  ;;  %v1686_v42 = vmul.f32 %v6219_v1, %v5130_v38  ;;  %v1687_v8 = vmul.f32 %v6219_v1, %v5133_v36 }
 0x1f7   : >> { %v1688_v24 = vmul.f32 %v6219_v1, %v5136_v19  ;;  %v1689_v15 = vmul.f32 %v6219_v1, %v5139_v61  ;;  %v1690_v31 = vmul.f32 %v6219_v1, %v5152_v35  ;;  %v1691_v28 = vmul.f32 %v6219_v1, %v5171_v33 }
 0x1f8   : >> { %v1692_v55 = vmul.f32 %v6219_v1, %v6218_v16  ;;  %v1693_v50 = vmul.f32 %v6219_v1, %v5177_v62  ;;  %v1694_v26 = vmul.f32 %v6219_v1, %v5193_v5  ;;  %v1695_v25 = vmul.f32 %v6219_v1, %v5196_v39 }
 0x1f9   : >> { %v1696_v40 = vmul.f32 %v6219_v1, %v5214_v20  ;;  %v1697_v13 = vmul.f32 %v6219_v1, %v5217_v7  ;;  %v1698_v34 = vadd.f32 %v1682_v11, %v1662_v23  ;;  %v1699_v51 = vadd.f32 %v1683_v59, %v1663_v10  ;;  %v1603_v1 = vld [vmem:[%s4499_s27 + $0xfc] sm:$0xff]  ;;  %v6220_v23 = vld [vmem:[#allocation32_spill] sm:$0xff] }
 0x1fa   : >> { %v1700_v63 = vadd.f32 %v1684_v49, %v1664_v32  ;;  %v1701_v6 = vadd.f32 %v1685_v9, %v1665_v37  ;;  %v1702_v22 = vadd.f32 %v1686_v42, %v1666_v3  ;;  %v1703_v57 = vadd.f32 %v1687_v8, %v1667_v0 }
 0x1fb   : >> { %v1704_v18 = vadd.f32 %v1688_v24, %v1668_v60  ;;  %v1705_v30 = vadd.f32 %v1689_v15, %v1669_v21  ;;  %v1706_v52 = vadd.f32 %v1690_v31, %v1670_v27  ;;  %v1707_v53 = vadd.f32 %v1691_v28, %v1671_v47  ;;  %v1604_v15 = vld [vmem:[%s4499_s27 + $0x10c] sm:$0xff]  ;;  %v1605_v31 = vld [vmem:[%s4499_s27 + $0x114] sm:$0xff] }
 0x1fc   : >> { %v1708_v41 = vadd.f32 %v1692_v55, %v1672_v58  ;;  %v1709_v17 = vadd.f32 %v1693_v50, %v1673_v29  ;;  %v1710_v4 = vadd.f32 %v1694_v26, %v1674_v54  ;;  %v1711_v44 = vadd.f32 %v1695_v25, %v1675_v56  ;;  %v6221_v25 = vld [vmem:[#allocation18_spill] sm:$0xff] }
 0x1fd   : >> { %v1712_v45 = vadd.f32 %v1696_v40, %v1676_v43  ;;  %v1713_v46 = vadd.f32 %v1697_v13, %v1677_v12  ;;  %v1718_v10 = vmul.f32 %v6220_v23, %v5124_v48  ;;  %v1719_v32 = vmul.f32 %v6220_v23, %v5127_v2 }
 0x1fe   : >> { %v1720_v37 = vmul.f32 %v6220_v23, %v5130_v38  ;;  %v1721_v3 = vmul.f32 %v6220_v23, %v5133_v36  ;;  %v1722_v0 = vmul.f32 %v6220_v23, %v5136_v19  ;;  %v1723_v60 = vmul.f32 %v6220_v23, %v5139_v61 }
 0x1ff   : >> { %v1724_v21 = vmul.f32 %v6220_v23, %v5152_v35  ;;  %v1725_v48 = vmul.f32 %v6220_v23, %v5171_v33  ;;  %v1726_v2 = vmul.f32 %v6220_v23, %v6218_v16  ;;  %v1727_v38 = vmul.f32 %v6220_v23, %v5177_v62 }
 0x200   : >> { %v1728_v36 = vmul.f32 %v6220_v23, %v5193_v5  ;;  %v1729_v19 = vmul.f32 %v6220_v23, %v5196_v39  ;;  %v1730_v61 = vmul.f32 %v6220_v23, %v5214_v20  ;;  %v1731_v27 = vmul.f32 %v6220_v23, %v5217_v7 }
 0x201   : >> { %v1732_v47 = vmul.f32 %v6220_v23, %v1602_v14  ;;  %v1733_v58 = vmul.f32 %v6220_v23, %v1603_v1  ;;  %v1734_v29 = vadd.f32 %v1718_v10, %v1698_v34  ;;  %v1735_v54 = vadd.f32 %v1719_v32, %v1699_v51 }
 0x202   : >> { %v1736_v56 = vadd.f32 %v1720_v37, %v1700_v63  ;;  %v1737_v43 = vadd.f32 %v1721_v3, %v1701_v6  ;;  %v1738_v12 = vadd.f32 %v1722_v0, %v1702_v22  ;;  %v1739_v11 = vadd.f32 %v1723_v60, %v1703_v57  ;;  %v1788_v3 = vld [vmem:[%s4499_s27 + $0x1a] sm:$0xff]  ;;  %v1789_v0 = vld [vmem:[%s4499_s27 + $0x22] sm:$0xff]  ;;  %v5316_v60 = vld [vmem:[%s4499_s27 + $0x32] sm:$0xff] }
 0x203   : >> { %v1740_v59 = vadd.f32 %v1724_v21, %v1704_v18  ;;  %v1741_v49 = vadd.f32 %v1725_v48, %v1705_v30  ;;  %v1742_v9 = vadd.f32 %v1726_v2, %v1706_v52  ;;  %v1743_v42 = vadd.f32 %v1727_v38, %v1707_v53  ;;  %v6223_v30 = vld [vmem:[#allocation28_spill] sm:$0xff]  ;;  %v6224_v52 = vld [vmem:[#allocation29_spill] sm:$0xff]  ;;  %v6225_v53 = vld [vmem:[#allocation30_spill] sm:$0xff] }
 0x204   : >> { %v1744_v8 = vadd.f32 %v1728_v36, %v1708_v41  ;;  %v1745_v24 = vadd.f32 %v1729_v19, %v1709_v17  ;;  %v1746_v28 = vadd.f32 %v1730_v61, %v1710_v4  ;;  %v1747_v55 = vadd.f32 %v1731_v27, %v1711_v44  ;;  %v1786_v44 = vld [vmem:[%s4499_s27 + $0x2] sm:$0xff]  ;;  %v5319_v36 = vld [vmem:[%s4499_s27 + $0x3a] sm:$0xff]  ;;  %v5322_v19 = vld [vmem:[%s4499_s27 + $0x4a] sm:$0xff] }
 0x205   : >> { %v1748_v50 = vadd.f32 %v1732_v47, %v1712_v45  ;;  %v1749_v26 = vadd.f32 %v1733_v58, %v1713_v46  ;;  %v1758_v40 = vmul.f32 %v6221_v25, %v5152_v35  ;;  %v1759_v13 = vmul.f32 %v6221_v25, %v5171_v33  ;;  %v1787_v45 = vld [vmem:[%s4499_s27 + $0xa] sm:$0xff]  ;;  %6228 = vst [vmem:[#allocation33_spill] sm:$0xff] %v5319_v36  ;;  %v5325_v61 = vld [vmem:[%s4499_s27 + $0x52] sm:$0xff]  ;;  %v5328_v47 = vld [vmem:[%s4499_s27 + $0x62] sm:$0xff] }
 0x206   : >> { %v1760_v34 = vmul.f32 %v6221_v25, %v6218_v16  ;;  %v1761_v51 = vmul.f32 %v6221_v25, %v5177_v62  ;;  %v1762_v63 = vmul.f32 %v6221_v25, %v5193_v5  ;;  %v1763_v6 = vmul.f32 %v6221_v25, %v5196_v39  ;;  %v6222_v5 = vld [vmem:[#allocation27_spill] sm:$0xff] }
 0x207   : >> { %v1764_v35 = vmul.f32 %v6221_v25, %v5214_v20  ;;  %v1765_v33 = vmul.f32 %v6221_v25, %v5217_v7  ;;  %v1766_v22 = vmul.f32 %v6221_v25, %v1602_v14  ;;  %v1767_v16 = vmul.f32 %v6221_v25, %v1603_v1  ;;  %v6226_v46 = vld [vmem:[#allocation22_spill] sm:$0xff]  ;;  %v6227_v14 = vld [vmem:[#allocation15_spill] sm:$0xff] }
 0x208   : >> { %v1768_v62 = vmul.f32 %v6221_v25, %v1604_v15  ;;  %v1769_v57 = vmul.f32 %v6221_v25, %v1605_v31  ;;  %v1770_v18 = vadd.f32 %v6222_v5, %v1734_v29  ;;  %v1771_v39 = vadd.f32 %v6223_v30, %v1735_v54  ;;  %v5331_v58 = vld [vmem:[%s4499_s27 + $0x6a] sm:$0xff]  ;;  %v5334_v29 = vld [vmem:[%s4499_s27 + $0x7a] sm:$0xff]  ;;  %v6229_v54 = vld [vmem:[#allocation23_spill] sm:$0xff] }
 0x209   : >> { %v1772_v20 = vadd.f32 %v6224_v52, %v1736_v56  ;;  %v1773_v41 = vadd.f32 %v6225_v53, %v1737_v43  ;;  %v1774_v7 = vadd.f32 %v1758_v40, %v1738_v12  ;;  %v1775_v17 = vadd.f32 %v1759_v13, %v1739_v11  ;;  %v6230_v43 = vld [vmem:[#allocation24_spill] sm:$0xff]  ;;  %v6231_v12 = vld [vmem:[#allocation16_spill] sm:$0xff] }
 0x20a   : >> { %v1776_v4 = vadd.f32 %v1760_v34, %v1740_v59  ;;  %v1813_v1 = vrot.slane %v6227_v14, %v6226_v46  ;;  %v1777_v23 = vadd.f32 %v1761_v51, %v1741_v49  ;;  %v1778_v10 = vadd.f32 %v1762_v63, %v1742_v9  ;;  %v6233_v59 = vld [vmem:[#allocation25_spill] sm:$0xff]  ;;  %v6234_v49 = vld [vmem:[#allocation17_spill] sm:$0xff]  ;;  %v5364_v13 = vld [vmem:[%s4499_s27 + $0xaa] sm:$0xff] }
 0x20b   : >> { %v1779_v32 = vadd.f32 %v1763_v6, %v1743_v42  ;;  %v1780_v37 = vadd.f32 %v1764_v35, %v1744_v8  ;;  %v1781_v21 = vadd.f32 %v1765_v33, %v1745_v24  ;;  %v1782_v48 = vadd.f32 %v1766_v22, %v1746_v28  ;;  %v5347_v42 = vld [vmem:[%s4499_s27 + $0x82] sm:$0xff]  ;;  %v5350_v8 = vld [vmem:[%s4499_s27 + $0x92] sm:$0xff]  ;;  %v5353_v24 = vld [vmem:[%s4499_s27 + $0x9a] sm:$0xff]  ;;  %6241 = vst [vmem:[#allocation29_spill] sm:$0xff] %v5364_v13 }
 0x20c   : >> { %v1783_v2 = vadd.f32 %v1767_v16, %v1747_v55  ;;  %v1784_v38 = vadd.f32 %v1768_v62, %v1748_v50  ;;  %v1785_v27 = vadd.f32 %v1769_v57, %v1749_v26  ;;  %v1849_v56 = vrot.slane %v6227_v14, %v6229_v54  ;;  %v6236_v28 = vld [vmem:[#allocation26_spill] sm:$0xff]  ;;  %v5367_v34 = vld [vmem:[%s4499_s27 + $0xb2] sm:$0xff] }
 0x20d   : >> { %v5340_v11 = vrot.slane %v6231_v12, %v6230_v43  ;;  %v5344_v9 = vrot.slane %v6234_v49, %v6233_v59  ;;  %v1814_v15 = vmul.f32 %v1813_v1, %v1786_v44  ;;  %v1815_v31 = vmul.f32 %v1813_v1, %v1787_v45  ;;  %v6238_v50 = vld [vmem:[#allocation20_spill] sm:$0xff] }
 0x20e   : >> { %v5357_v55 = vrot.slane %v6234_v49, %v6236_v28  ;;  %v6239_v26 = vld [vmem:[#allocation19_spill] sm:$0xff]  ;;  %v1816_v51 = vmul.f32 %v1813_v1, %v1788_v3  ;;  %v1817_v63 = vmul.f32 %v1813_v1, %v1789_v0  ;;  %v1818_v6 = vmul.f32 %v1813_v1, %v5316_v60 }
 0x20f   : >> { %6232 = vst [vmem:[#allocation34_spill] sm:$0xff] %v5340_v11  ;;  %6235 = vst [vmem:[#allocation32_spill] sm:$0xff] %v5344_v9  ;;  %v5361_v40 = vrot.slane %v6239_v26, %v6238_v50  ;;  %v1819_v35 = vmul.f32 %v1813_v1, %v5319_v36  ;;  %v1820_v33 = vmul.f32 %v1813_v1, %v5322_v19 }
 0x210   : >> { %6237 = vst [vmem:[#allocation27_spill] sm:$0xff] %v5357_v55  ;;  %v1821_v22 = vmul.f32 %v1813_v1, %v5325_v61  ;;  %v1822_v16 = vmul.f32 %v1813_v1, %v5328_v47  ;;  %v1823_v62 = vmul.f32 %v1813_v1, %v5331_v58  ;;  %v1824_v57 = vmul.f32 %v1813_v1, %v5334_v29 }
 0x211   : >> { %6240 = vst [vmem:[#allocation28_spill] sm:$0xff] %v5361_v40  ;;  %v1825_v5 = vmul.f32 %v1813_v1, %v5347_v42  ;;  %v1826_v30 = vmul.f32 %v1813_v1, %v5350_v8  ;;  %v1827_v52 = vmul.f32 %v1813_v1, %v5353_v24  ;;  %v1828_v53 = vmul.f32 %v1813_v1, %v5364_v13 }
 0x212   : >> { %v1829_v44 = vmul.f32 %v1813_v1, %v5367_v34  ;;  %v1830_v45 = vadd.f32 %v1814_v15, %v1770_v18  ;;  %v1831_v14 = vadd.f32 %v1815_v31, %v1771_v39  ;;  %v1832_v54 = vadd.f32 %v1816_v51, %v1772_v20  ;;  %v5382_v18 = vld [vmem:[%s4499_s27 + $0xc2] sm:$0xff]  ;;  %v5385_v39 = vld [vmem:[%s4499_s27 + $0xca] sm:$0xff] }
 0x213   : >> { %v1833_v43 = vadd.f32 %v1817_v63, %v1773_v41  ;;  %v1834_v12 = vadd.f32 %v1818_v6, %v1774_v7  ;;  %v1835_v49 = vadd.f32 %v1819_v35, %v1775_v17  ;;  %v1836_v28 = vadd.f32 %v1820_v33, %v1776_v4 }
 0x214   : >> { %v1837_v50 = vadd.f32 %v1821_v22, %v1777_v23  ;;  %v1838_v25 = vadd.f32 %v1822_v16, %v1778_v10  ;;  %v1839_v46 = vadd.f32 %v1823_v62, %v1779_v32  ;;  %v1840_v26 = vadd.f32 %v1824_v57, %v1780_v37 }
 0x215   : >> { %v1841_v59 = vadd.f32 %v1825_v5, %v1781_v21  ;;  %v1842_v40 = vadd.f32 %v1826_v30, %v1782_v48  ;;  %v1843_v55 = vadd.f32 %v1827_v52, %v1783_v2  ;;  %v1844_v9 = vadd.f32 %v1828_v53, %v1784_v38 }
 0x216   : >> { %v1845_v11 = vadd.f32 %v1829_v44, %v1785_v27  ;;  %v1850_v13 = vmul.f32 %v1849_v56, %v1788_v3  ;;  %v1851_v1 = vmul.f32 %v1849_v56, %v1789_v0  ;;  %v1852_v20 = vmul.f32 %v1849_v56, %v5316_v60  ;;  %v6242_v0 = vld [vmem:[#allocation29_spill] sm:$0xff] }
 0x217   : >> { %v1853_v41 = vmul.f32 %v1849_v56, %v5319_v36  ;;  %v1854_v7 = vmul.f32 %v1849_v56, %v5322_v19  ;;  %v1855_v17 = vmul.f32 %v1849_v56, %v5325_v61  ;;  %v1856_v4 = vmul.f32 %v1849_v56, %v5328_v47 }
 0x218   : >> { %v1857_v23 = vmul.f32 %v1849_v56, %v5331_v58  ;;  %v1858_v10 = vmul.f32 %v1849_v56, %v5334_v29  ;;  %v1859_v32 = vmul.f32 %v1849_v56, %v5347_v42  ;;  %v1860_v37 = vmul.f32 %v1849_v56, %v5350_v8 }
 0x219   : >> { %v1861_v3 = vmul.f32 %v1849_v56, %v5353_v24  ;;  %v1862_v21 = vmul.f32 %v1849_v56, %v6242_v0  ;;  %v1863_v48 = vmul.f32 %v1849_v56, %v5367_v34  ;;  %v1864_v2 = vmul.f32 %v1849_v56, %v5382_v18 }
 0x21a   : >> { %v1865_v38 = vmul.f32 %v1849_v56, %v5385_v39  ;;  %v1866_v27 = vadd.f32 %v1850_v13, %v1830_v45  ;;  %v1867_v15 = vadd.f32 %v1851_v1, %v1831_v14  ;;  %v1868_v31 = vadd.f32 %v1852_v20, %v1832_v54  ;;  %v6243_v56 = vld [vmem:[#allocation34_spill] sm:$0xff]  ;;  %v5409_v14 = vld [vmem:[%s4499_s27 + $0xe2] sm:$0xff] }
 0x21b   : >> { %v1869_v51 = vadd.f32 %v1853_v41, %v1833_v43  ;;  %v1870_v63 = vadd.f32 %v1854_v7, %v1834_v12  ;;  %v1871_v6 = vadd.f32 %v1855_v17, %v1835_v49  ;;  %v1872_v35 = vadd.f32 %v1856_v4, %v1836_v28  ;;  %v5406_v45 = vld [vmem:[%s4499_s27 + $0xda] sm:$0xff] }
 0x21c   : >> { %v1873_v33 = vadd.f32 %v1857_v23, %v1837_v50  ;;  %v1874_v22 = vadd.f32 %v1858_v10, %v1838_v25  ;;  %v1875_v16 = vadd.f32 %v1859_v32, %v1839_v46  ;;  %v1876_v62 = vadd.f32 %v1860_v37, %v1840_v26 }
 0x21d   : >> { %v1877_v57 = vadd.f32 %v1861_v3, %v1841_v59  ;;  %v1878_v5 = vadd.f32 %v1862_v21, %v1842_v40  ;;  %v1879_v30 = vadd.f32 %v1863_v48, %v1843_v55  ;;  %v1880_v52 = vadd.f32 %v1864_v2, %v1844_v9 }
 0x21e   : >> { %v1881_v53 = vadd.f32 %v1865_v38, %v1845_v11  ;;  %v1886_v13 = vmul.f32 %v6243_v56, %v5316_v60  ;;  %v1887_v44 = vmul.f32 %v6243_v56, %v5319_v36  ;;  %v1888_v25 = vmul.f32 %v6243_v56, %v5322_v19 }
 0x21f   : >> { %v1889_v46 = vmul.f32 %v6243_v56, %v5325_v61  ;;  %v1890_v59 = vmul.f32 %v6243_v56, %v5328_v47  ;;  %v1891_v11 = vmul.f32 %v6243_v56, %v5331_v58  ;;  %v1892_v9 = vmul.f32 %v6243_v56, %v5334_v29 }
 0x220   : >> { %v1893_v55 = vmul.f32 %v6243_v56, %v5347_v42  ;;  %v1894_v26 = vmul.f32 %v6243_v56, %v5350_v8  ;;  %v1895_v40 = vmul.f32 %v6243_v56, %v5353_v24  ;;  %v1896_v54 = vmul.f32 %v6243_v56, %v6242_v0 }
 0x221   : >> { %v1897_v43 = vmul.f32 %v6243_v56, %v5367_v34  ;;  %v1898_v12 = vmul.f32 %v6243_v56, %v5382_v18  ;;  %v1899_v49 = vmul.f32 %v6243_v56, %v5385_v39  ;;  %v1900_v28 = vmul.f32 %v6243_v56, %v5406_v45 }
 0x222   : >> { %v1901_v50 = vmul.f32 %v6243_v56, %v5409_v14  ;;  %v1902_v1 = vadd.f32 %v1886_v13, %v1866_v27  ;;  %v1903_v20 = vadd.f32 %v1887_v44, %v1867_v15  ;;  %v1904_v41 = vadd.f32 %v1888_v25, %v1868_v31  ;;  %v6244_v56 = vld [vmem:[#allocation32_spill] sm:$0xff]  ;;  %v1806_v31 = vld [vmem:[%s4499_s27 + $0xf2] sm:$0xff] }
 0x223   : >> { %v1905_v7 = vadd.f32 %v1889_v46, %v1869_v51  ;;  %v1906_v17 = vadd.f32 %v1890_v59, %v1870_v63  ;;  %v1907_v4 = vadd.f32 %v1891_v11, %v1871_v6  ;;  %v1908_v23 = vadd.f32 %v1892_v9, %v1872_v35  ;;  %v1807_v51 = vld [vmem:[%s4499_s27 + $0xfa] sm:$0xff]  ;;  %v6245_v11 = vld [vmem:[#allocation27_spill] sm:$0xff] }
 0x224   : >> { %v1909_v10 = vadd.f32 %v1893_v55, %v1873_v33  ;;  %v1910_v32 = vadd.f32 %v1894_v26, %v1874_v22  ;;  %v1911_v37 = vadd.f32 %v1895_v40, %v1875_v16  ;;  %v1912_v3 = vadd.f32 %v1896_v54, %v1876_v62 }
 0x225   : >> { %v1913_v21 = vadd.f32 %v1897_v43, %v1877_v57  ;;  %v1914_v48 = vadd.f32 %v1898_v12, %v1878_v5  ;;  %v1915_v2 = vadd.f32 %v1899_v49, %v1879_v30  ;;  %v1916_v38 = vadd.f32 %v1900_v28, %v1880_v52 }
 0x226   : >> { %v1917_v36 = vadd.f32 %v1901_v50, %v1881_v53  ;;  %v1922_v27 = vmul.f32 %v6244_v56, %v5322_v19  ;;  %v1923_v15 = vmul.f32 %v6244_v56, %v5325_v61  ;;  %v1924_v63 = vmul.f32 %v6244_v56, %v5328_v47 }
 0x227   : >> { %v1925_v6 = vmul.f32 %v6244_v56, %v5331_v58  ;;  %v1926_v35 = vmul.f32 %v6244_v56, %v5334_v29  ;;  %v1927_v33 = vmul.f32 %v6244_v56, %v5347_v42  ;;  %v1928_v22 = vmul.f32 %v6244_v56, %v5350_v8 }
 0x228   : >> { %v1929_v16 = vmul.f32 %v6244_v56, %v5353_v24  ;;  %v1930_v62 = vmul.f32 %v6244_v56, %v6242_v0  ;;  %v1931_v57 = vmul.f32 %v6244_v56, %v5367_v34  ;;  %v1932_v5 = vmul.f32 %v6244_v56, %v5382_v18 }
 0x229   : >> { %v1933_v30 = vmul.f32 %v6244_v56, %v5385_v39  ;;  %v1934_v52 = vmul.f32 %v6244_v56, %v5406_v45  ;;  %v1935_v53 = vmul.f32 %v6244_v56, %v5409_v14  ;;  %v1936_v13 = vmul.f32 %v6244_v56, %v1806_v31 }
 0x22a   : >> { %v1937_v44 = vmul.f32 %v6244_v56, %v1807_v51  ;;  %v1938_v25 = vadd.f32 %v1922_v27, %v1902_v1  ;;  %v1939_v46 = vadd.f32 %v1923_v15, %v1903_v20  ;;  %v1940_v59 = vadd.f32 %v1924_v63, %v1904_v41 }
 0x22b   : >> { %v1958_v9 = vmul.f32 %v6245_v11, %v5328_v47  ;;  %v1959_v55 = vmul.f32 %v6245_v11, %v5331_v58  ;;  %v1960_v26 = vmul.f32 %v6245_v11, %v5334_v29  ;;  %v1941_v40 = vadd.f32 %v1925_v6, %v1905_v7 }
 0x22c   : >> { %v1942_v54 = vadd.f32 %v1926_v35, %v1906_v17  ;;  %v1943_v43 = vadd.f32 %v1927_v33, %v1907_v4  ;;  %v1961_v12 = vmul.f32 %v6245_v11, %v5347_v42  ;;  %v1944_v49 = vadd.f32 %v1928_v22, %v1908_v23  ;;  %v1808_v35 = vld [vmem:[%s4499_s27 + $0x10a] sm:$0xff]  ;;  %v1809_v33 = vld [vmem:[%s4499_s27 + $0x112] sm:$0xff] }
 0x22d   : >> { %v1945_v28 = vadd.f32 %v1929_v16, %v1909_v10  ;;  %v1946_v50 = vadd.f32 %v1930_v62, %v1910_v32  ;;  %v1962_v1 = vmul.f32 %v6245_v11, %v5350_v8  ;;  %v1947_v20 = vadd.f32 %v1931_v57, %v1911_v37  ;;  %v6246_v57 = vld [vmem:[#allocation28_spill] sm:$0xff] }
 0x22e   : >> { %v1948_v41 = vadd.f32 %v1932_v5, %v1912_v3  ;;  %v1949_v56 = vadd.f32 %v1933_v30, %v1913_v21  ;;  %v1963_v27 = vmul.f32 %v6245_v11, %v5353_v24  ;;  %v1964_v7 = vmul.f32 %v6245_v11, %v6242_v0 }
 0x22f   : >> { %v1974_v17 = vadd.f32 %v1958_v9, %v1938_v25  ;;  %v1975_v4 = vadd.f32 %v1959_v55, %v1939_v46  ;;  %v1976_v15 = vadd.f32 %v1960_v26, %v1940_v59  ;;  %v1950_v23 = vadd.f32 %v1934_v52, %v1914_v48 }
 0x230   : >> { %v1951_v10 = vadd.f32 %v1935_v53, %v1915_v2  ;;  %v1965_v32 = vmul.f32 %v6245_v11, %v5367_v34  ;;  %v1977_v63 = vadd.f32 %v1961_v12, %v1941_v40  ;;  %v1952_v37 = vadd.f32 %v1936_v13, %v1916_v38 }
 0x231   : >> { %v1953_v6 = vadd.f32 %v1937_v44, %v1917_v36  ;;  %v1966_v3 = vmul.f32 %v6245_v11, %v5382_v18  ;;  %v1978_v21 = vadd.f32 %v1962_v1, %v1942_v54  ;;  %v1967_v22 = vmul.f32 %v6245_v11, %v5385_v39 }
 0x232   : >> { %v1968_v16 = vmul.f32 %v6245_v11, %v5406_v45  ;;  %v1969_v48 = vmul.f32 %v6245_v11, %v5409_v14  ;;  %v1979_v2 = vadd.f32 %v1963_v27, %v1943_v43  ;;  %v1980_v62 = vadd.f32 %v1964_v7, %v1944_v49 }
 0x233   : >> { %v1994_v38 = vadd.f32 %v6246_v57, %v1974_v17  ;;  %v1995_v36 = vadd.f32 %v6246_v57, %v1975_v4  ;;  %v1996_v5 = vadd.f32 %v6246_v57, %v1976_v15  ;;  %v1970_v30 = vmul.f32 %v6245_v11, %v1806_v31  ;;  %v6247_v4 = vld [vmem:[#allocation25_spill] sm:$0xff]  ;;  %v6248_v15 = vld [vmem:[#allocation19_spill] sm:$0xff] }
 0x234   : >> { %v1971_v52 = vmul.f32 %v6245_v11, %v1807_v51  ;;  %v1981_v53 = vadd.f32 %v1965_v32, %v1945_v28  ;;  %v1997_v13 = vadd.f32 %v6246_v57, %v1977_v63  ;;  %v1972_v44 = vmul.f32 %v6245_v11, %v1808_v35  ;;  %v6249_v63 = vld [vmem:[#allocation22_spill] sm:$0xff] }
 0x235   : >> { %v1973_v25 = vmul.f32 %v6245_v11, %v1809_v33  ;;  %v1982_v46 = vadd.f32 %v1966_v3, %v1946_v50  ;;  %v1998_v59 = vadd.f32 %v6246_v57, %v1978_v21  ;;  %v1983_v9 = vadd.f32 %v1967_v22, %v1947_v20 }
 0x236   : >> { %v1984_v55 = vadd.f32 %v1968_v16, %v1948_v41  ;;  %v1985_v26 = vadd.f32 %v1969_v48, %v1949_v56  ;;  %v1999_v40 = vadd.f32 %v6246_v57, %v1979_v2  ;;  %v2000_v54 = vadd.f32 %v6246_v57, %v1980_v62 }
 0x237   : >> { %v2026_v31 = vmul.f32 0.70710677, %v1994_v38  ;;  %v2027_v43 = vmul.f32 0.70710677, %v1995_v36  ;;  %v2028_v51 = vmul.f32 0.70710677, %v1996_v5  ;;  %v1986_v12 = vadd.f32 %v1970_v30, %v1950_v23 }
 0x238   : >> { %v1987_v49 = vadd.f32 %v1971_v52, %v1951_v10  ;;  %v2001_v28 = vadd.f32 %v6246_v57, %v1981_v53  ;;  %v2029_v1 = vmul.f32 0.70710677, %v1997_v13  ;;  %v1988_v27 = vadd.f32 %v1972_v44, %v1952_v37 }
 0x239   : >> { %v2002_v11 = vadd.f32 %v6246_v57, %v1982_v46  ;;  %v2030_v50 = vmul.f32 0.70710677, %v1998_v59  ;;  %3819 = verf.f32 %v2026_v31  ;;  %v1989_v20 = vadd.f32 %v1973_v25, %v1953_v6 }
 0x23a   : >> { %v2003_v41 = vadd.f32 %v6246_v57, %v1983_v9  ;;  %v2031_v56 = vmul.f32 0.70710677, %v1999_v40  ;;  %3821 = verf.f32 %v2027_v43  ;;  %v2004_v7 = vadd.f32 %v6246_v57, %v1984_v55 }
 0x23b   : >> { %v2032_v17 = vmul.f32 0.70710677, %v2000_v54  ;;  %3823 = verf.f32 %v2028_v51  ;;  %v5514_v23 = vrot.slane %v6248_v15, %v6247_v4  ;;  %v2005_v10 = vadd.f32 %v6246_v57, %v1985_v26 }
 0x23c   : >> { %v2033_v32 = vmul.f32 0.70710677, %v2001_v28  ;;  %3825 = verf.f32 %v2029_v1  ;;  %v5519_v37 = vrot.slane %v6248_v15, %v6249_v63  ;;  %v2006_v6 = vadd.f32 %v6246_v57, %v1986_v12 }
 0x23d   : >> { %v2007_v3 = vadd.f32 %v6246_v57, %v1987_v49  ;;  %v2034_v21 = vmul.f32 0.70710677, %v2002_v11  ;;  %3827 = verf.f32 %v2030_v50  ;;  %v2008_v35 = vadd.f32 %v6246_v57, %v1988_v27 }
 0x23e   : >> { %v2009_v33 = vadd.f32 %v6246_v57, %v1989_v20  ;;  %v2035_v22 = vmul.f32 0.70710677, %v2003_v41  ;;  %3829 = verf.f32 %v2031_v56  ;;  %v2010_v16 = vmul.f32 0.5, %v1994_v38 }
 0x23f   : >> { %v2011_v48 = vmul.f32 0.5, %v1995_v36  ;;  %v2036_v2 = vmul.f32 0.70710677, %v2004_v7  ;;  %3831 = verf.f32 %v2032_v17  ;;  %v2012_v62 = vmul.f32 0.5, %v1996_v5 }
 0x240   : >> { %v2013_v30 = vmul.f32 0.5, %v1997_v13  ;;  %v2037_v52 = vmul.f32 0.70710677, %v2005_v10  ;;  %3833 = verf.f32 %v2033_v32  ;;  %v2014_v53 = vmul.f32 0.5, %v1998_v59 }
 0x241   : >> { %v2015_v44 = vmul.f32 0.5, %v1999_v40  ;;  %v2038_v25 = vmul.f32 0.70710677, %v2006_v6  ;;  %3835 = verf.f32 %v2034_v21  ;;  %v2016_v46 = vmul.f32 0.5, %v2000_v54 }
 0x242   : >> { %v2017_v9 = vmul.f32 0.5, %v2001_v28  ;;  %v2039_v55 = vmul.f32 0.70710677, %v2007_v3  ;;  %3837 = verf.f32 %v2035_v22  ;;  %v2018_v57 = vmul.f32 0.5, %v2002_v11 }
 0x243   : >> { %v3820_v26 = vpop.eup %3819  ;;  %v2019_v31 = vmul.f32 0.5, %v2003_v41  ;;  %v2040_v43 = vmul.f32 0.70710677, %v2008_v35  ;;  %3839 = verf.f32 %v2036_v2  ;;  %v2020_v36 = vmul.f32 0.5, %v2004_v7 }
 0x244   : >> { %v3822_v38 = vpop.eup %3821  ;;  %v2041_v51 = vmul.f32 0.70710677, %v2009_v33  ;;  %3841 = verf.f32 %v2037_v52  ;;  %v2058_v5 = vadd.f32 1.0, %v3820_v26  ;;  %v2021_v12 = vmul.f32 0.5, %v2005_v10 }
 0x245   : >> { %v3824_v13 = vpop.eup %3823  ;;  %v5525_v59 = vmul.f32 0.5, %v2006_v6  ;;  %3843 = verf.f32 %v2038_v25  ;;  %v2059_v40 = vadd.f32 1.0, %v3822_v38  ;;  %v5527_v49 = vmul.f32 0.5, %v2007_v3 }
 0x246   : >> { %v3826_v54 = vpop.eup %3825  ;;  %3845 = verf.f32 %v2039_v55  ;;  %v2060_v28 = vadd.f32 1.0, %v3824_v13  ;;  %v2074_v1 = vmul.f32 %v2058_v5, %v2010_v16  ;;  %v5529_v11 = vmul.f32 0.5, %v2008_v35 }
 0x247   : >> { %v3828_v27 = vpop.eup %3827  ;;  %3847 = verf.f32 %v2040_v43  ;;  %v2061_v50 = vadd.f32 1.0, %v3826_v54  ;;  %v2075_v20 = vmul.f32 %v2059_v40, %v2011_v48  ;;  %v2025_v15 = vmul.f32 0.5, %v2009_v33 }
 0x248   : >> { %v3830_v41 = vpop.eup %3829  ;;  %3849 = verf.f32 %v2041_v51  ;;  %v2062_v56 = vadd.f32 1.0, %v3828_v27  ;;  %v2076_v7 = vmul.f32 %v2060_v28, %v2012_v62  ;;  %v2094_v17 = vmul.f32 %v5514_v23, %v2074_v1 }
 0x249   : >> { %v3832_v4 = vpop.eup %3831  ;;  %v2063_v10 = vadd.f32 1.0, %v3830_v41  ;;  %v2077_v32 = vmul.f32 %v2061_v50, %v2013_v30  ;;  %v2095_v63 = vmul.f32 %v5514_v23, %v2075_v20 }
 0x24a   : >> { %v3834_v6 = vpop.eup %3833  ;;  %v2064_v3 = vadd.f32 1.0, %v3832_v4  ;;  %v2078_v21 = vmul.f32 %v2062_v56, %v2014_v53  ;;  %v2096_v35 = vmul.f32 %v5514_v23, %v2076_v7  ;;  %v2114_v22 = vadd.f32 %v5519_v37, %v2094_v17 }
 0x24b   : >> { %v3836_v16 = vpop.eup %3835  ;;  %v2065_v48 = vadd.f32 1.0, %v3834_v6  ;;  %v2079_v2 = vmul.f32 %v2063_v10, %v2015_v44  ;;  %v2097_v62 = vmul.f32 %v5514_v23, %v2077_v32  ;;  %v2115_v52 = vadd.f32 %v5519_v37, %v2095_v63 }
 0x24c   : >> { %v3838_v25 = vpop.eup %3837  ;;  %v2066_v33 = vadd.f32 1.0, %v3836_v16  ;;  %v2080_v55 = vmul.f32 %v2064_v3, %v2016_v46  ;;  %v2098_v30 = vmul.f32 %v5514_v23, %v2078_v21  ;;  %v2116_v26 = vadd.f32 %v5519_v37, %v2096_v35 }
 0x24d   : >> { %v3840_v43 = vpop.eup %3839  ;;  %v2067_v53 = vadd.f32 1.0, %v3838_v25  ;;  %v2081_v38 = vmul.f32 %v2065_v48, %v2017_v9  ;;  %v2099_v51 = vmul.f32 %v5514_v23, %v2079_v2  ;;  %v2117_v5 = vadd.f32 %v5519_v37, %v2097_v62 }
 0x24e   : >> { %v3842_v44 = vpop.eup %3841  ;;  %v2068_v13 = vadd.f32 1.0, %v3840_v43  ;;  %v2082_v40 = vmul.f32 %v2066_v33, %v2018_v57  ;;  %v2100_v54 = vmul.f32 %v5514_v23, %v2080_v55  ;;  %v2118_v28 = vadd.f32 %v5519_v37, %v2098_v30  ;;  %v6250_v43 = vld [vmem:[#allocation33_spill] sm:$0xff] }
 0x24f   : >> { %v3844_v46 = vpop.eup %3843  ;;  %v2069_v1 = vadd.f32 1.0, %v3842_v44  ;;  %v2083_v27 = vmul.f32 %v2067_v53, %v2019_v31  ;;  %v2101_v50 = vmul.f32 %v5514_v23, %v2081_v38  ;;  %v2119_v20 = vadd.f32 %v5519_v37, %v2099_v51 }
 0x250   : >> { %v3846_v9 = vpop.eup %3845  ;;  %v2070_v41 = vadd.f32 1.0, %v3844_v46  ;;  %v2084_v56 = vmul.f32 %v2068_v13, %v2020_v36  ;;  %v2102_v7 = vmul.f32 %v5514_v23, %v2082_v40  ;;  %v2120_v17 = vadd.f32 %v5519_v37, %v2100_v54  ;;  %v2201_v13 = vld [vmem:[%s4153_s22 + $0x28] sm:$0xff] (%p979_p1)  ;;  %v2202_v46 = vld [vmem:[%s4153_s22 + $0x30] sm:$0xff] (%p979_p1) }
 0x251   : >> { %v3848_v57 = vpop.eup %3847  ;;  %v2071_v4 = vadd.f32 1.0, %v3846_v9  ;;  %v2085_v10 = vmul.f32 %v2069_v1, %v2021_v12  ;;  %v2103_v32 = vmul.f32 %v5514_v23, %v2083_v27  ;;  %v2121_v63 = vadd.f32 %v5519_v37, %v2101_v50  ;;  %v2203_v1 = vld [vmem:[%s4153_s22 + $0x38] sm:$0xff] (%p979_p1)  ;;  %v2204_v50 = vld [vmem:[%s4153_s22 + $0x40] sm:$0xff] (%p979_p1) }
 0x252   : >> { %v3850_v31 = vpop.eup %3849  ;;  %v2072_v6 = vadd.f32 1.0, %v3848_v57  ;;  %v2086_v3 = vmul.f32 %v2070_v41, %v5525_v59  ;;  %v2104_v21 = vmul.f32 %v5514_v23, %v2084_v56  ;;  %v2122_v36 = vadd.f32 %v5519_v37, %v2102_v7  ;;  %v2206_v41 = vld [vmem:[%s4153_s22 + $0x50] sm:$0xff] (%p979_p1)  ;;  %v2207_v56 = vld [vmem:[%s4153_s22 + $0x58] sm:$0xff] (%p979_p1)  ;;  %v2209_v57 = vld [vmem:[%s4153_s22 + $0x68] sm:$0xff] (%p979_p1) }
 0x253   : >> { %v2073_v35 = vadd.f32 1.0, %v3850_v31  ;;  %v2087_v16 = vmul.f32 %v2071_v4, %v5527_v49  ;;  %v2105_v48 = vmul.f32 %v5514_v23, %v2085_v10  ;;  %v2123_v2 = vadd.f32 %v5519_v37, %v2103_v32  ;;  %v2210_v10 = vld [vmem:[%s4153_s22 + $0x70] sm:$0xff] (%p979_p1)  ;;  %v2211_v32 = vld [vmem:[%s4153_s22 + $0x78] sm:$0xff] (%p979_p1) }
 0x254   : >> { %v2088_v12 = vmul.f32 %v2072_v6, %v5529_v11  ;;  %v2106_v62 = vmul.f32 %v5514_v23, %v2086_v3  ;;  %v2124_v25 = vadd.f32 %v5519_v37, %v2104_v21  ;;  %v2130_v33 = vadd.f32 %v2114_v22, %v5316_v60 }
 0x255   : >> { %v2089_v59 = vmul.f32 %v2073_v35, %v2025_v15  ;;  %v2107_v55 = vmul.f32 %v5514_v23, %v2087_v16  ;;  %v2125_v30 = vadd.f32 %v5519_v37, %v2105_v48  ;;  %v2131_v53 = vadd.f32 %v2115_v52, %v6250_v43 }
 0x256   : >> { %v2108_v49 = vmul.f32 %v5514_v23, %v2088_v12  ;;  %v2126_v38 = vadd.f32 %v5519_v37, %v2106_v62  ;;  %v2132_v51 = vadd.f32 %v2116_v26, %v5322_v19  ;;  %v2133_v11 = vadd.f32 %v2117_v5, %v5325_v61  ;;  %2148 = vst [vmem:[%s5567_s25] sm:$0xff] %v2130_v33 }
 0x257   : >> { %v2109_v60 = vmul.f32 %v5514_v23, %v2089_v59  ;;  %v2127_v15 = vadd.f32 %v5519_v37, %v2107_v55  ;;  %v2134_v22 = vadd.f32 %v2118_v28, %v5328_v47  ;;  %v2135_v52 = vadd.f32 %v2119_v20, %v5331_v58  ;;  %2149 = vst [vmem:[%s5567_s25 + $0x8] sm:$0xff] %v2131_v53  ;;  %v2205_v20 = vld [vmem:[%s4153_s22 + $0x48] sm:$0xff] (%p979_p1) }
 0x258   : >> { %v2128_v19 = vadd.f32 %v5519_v37, %v2108_v49  ;;  %v2136_v61 = vadd.f32 %v2120_v17, %v5334_v29  ;;  %v2137_v26 = vadd.f32 %v2121_v63, %v5347_v42  ;;  %v2138_v5 = vadd.f32 %v2122_v36, %v5350_v8  ;;  %2150 = vst [vmem:[%s5567_s25 + $0x10] sm:$0xff] %v2132_v51  ;;  %v2208_v17 = vld [vmem:[%s4153_s22 + $0x60] sm:$0xff] (%p979_p1) }
 0x259   : >> { %2151 = vst [vmem:[%s5567_s25 + $0x18] sm:$0xff] %v2133_v11  ;;  %v2129_v47 = vadd.f32 %v5519_v37, %v2109_v60  ;;  %v2139_v58 = vadd.f32 %v2123_v2, %v5353_v24  ;;  %v2140_v23 = vadd.f32 %v2124_v25, %v6242_v0  ;;  %v2141_v29 = vadd.f32 %v2125_v30, %v5367_v34  ;;  %981 = sbr.rel (!%p979_p1) target bundleno = 355 (0x163), region = 120  ;;  %v2196_v34 = vld [vmem:[%s4153_s22] sm:$0xff] (%p979_p1) }
 0x25a   : >> { %2152 = vst [vmem:[%s5567_s25 + $0x20] sm:$0xff] %v2134_v22  ;;  %2153 = vst [vmem:[%s5567_s25 + $0x28] sm:$0xff] %v2135_v52  ;;  %v2142_v42 = vadd.f32 %v2126_v38, %v5382_v18  ;;  %v2143_v8 = vadd.f32 %v2127_v15, %v5385_v39  ;;  %v2144_v44 = vadd.f32 %v2128_v19, %v5406_v45  ;;  %v2197_v18 = vld [vmem:[%s4153_s22 + $0x8] sm:$0xff] (%p979_p1)  ;;  %v2198_v39 = vld [vmem:[%s4153_s22 + $0x10] sm:$0xff] (%p979_p1) }
 0x25b   : >> { %2154 = vst [vmem:[%s5567_s25 + $0x30] sm:$0xff] %v2136_v61  ;;  %2155 = vst [vmem:[%s5567_s25 + $0x38] sm:$0xff] %v2137_v26  ;;  %v2145_v24 = vadd.f32 %v2129_v47, %v5409_v14  ;;  %v3563_v0 = vpack.c.bf16 (%p979_p1), %v2197_v18, %v2196_v34  ;;  %v2199_v45 = vld [vmem:[%s4153_s22 + $0x18] sm:$0xff] (%p979_p1)  ;;  %v2200_v37 = vld [vmem:[%s4153_s22 + $0x20] sm:$0xff] (%p979_p1)  ;;  %v3575_v27 = vpack.c.bf16 (%p979_p1), %v2203_v1, %v2202_v46 }
 0x25c   : >> { %2156 = vst [vmem:[%s5567_s25 + $0x40] sm:$0xff] %v2138_v5  ;;  %2157 = vst [vmem:[%s5567_s25 + $0x48] sm:$0xff] %v2139_v58  ;;  %v3567_v14 = vpack.c.bf16 (%p979_p1), %v2199_v45, %v2198_v39  ;;  %v3571_v40 = vpack.c.bf16 (%p979_p1), %v2201_v13, %v2200_v37  ;;  %v3579_v9 = vpack.c.bf16 (%p979_p1), %v2205_v20, %v2204_v50  ;;  %v6251_v47 = vld [vmem:[#allocation31_spill] sm:$0xff] (%p979_p1)  ;;  %v6252_v58 = vld [vmem:[#allocation19_spill] sm:$0xff] (%p979_p1) }
 0x25d   : >> { %2158 = vst [vmem:[%s5567_s25 + $0x50] sm:$0xff] %v2140_v23  ;;  %2159 = vst [vmem:[%s5567_s25 + $0x58] sm:$0xff] %v2141_v29  ;;  %3564 = vmatprep.subr.bf16.mxu0 (%p979_p1), %v3563_v0  ;;  %3643 = vmatprep.subr.bf16.mxu1 (%p979_p1), %v3563_v0  ;;  %v3583_v7 = vpack.c.bf16 (%p979_p1), %v2207_v56, %v2206_v41  ;;  %v3587_v4 = vpack.c.bf16 (%p979_p1), %v2209_v57, %v2208_v17  ;;  %v6253_v13 = vld [vmem:[#allocation24_spill] sm:$0xff] (%p979_p1) }
 0x25e   : >> { %2160 = vst [vmem:[%s5567_s25 + $0x60] sm:$0xff] %v2142_v42  ;;  %2161 = vst [vmem:[%s5567_s25 + $0x68] sm:$0xff] %v2143_v8  ;;  %3566 = vmatpush3.bf16.msra.mxu0 (%p979_p1), %v3563_v0  ;;  %3651 = vmatpush3.bf16.msra.mxu1 (%p979_p1), %v3563_v0  ;;  %v3591_v63 = vpack.c.bf16 (%p979_p1), %v2211_v32, %v2210_v10  ;;  %v5622_v23 = vrot.slane (%p979_p1), %v6252_v58, %v6251_v47 }
 0x25f   : >> { %2162 = vst [vmem:[%s5567_s25 + $0x70] sm:$0xff] %v2144_v44  ;;  %2163 = vst [vmem:[%s5567_s25 + $0x78] sm:$0xff] %v2145_v24  ;;  %3568 = vmatprep.subr.bf16.mxu0 (%p979_p1), %v3567_v14  ;;  %3644 = vmatprep.subr.bf16.mxu1 (%p979_p1), %v3567_v14 }
 0x262   : > { %3570 = vmatpush3.bf16.msra.mxu0 %v3567_v14  ;;  %3652 = vmatpush3.bf16.msra.mxu1 %v3567_v14 }
 0x263   : > { %3572 = vmatprep.subr.bf16.mxu0 %v3571_v40  ;;  %3645 = vmatprep.subr.bf16.mxu1 %v3571_v40 }
 0x266   : > { %v2164_v54 = vld [vmem:[#allocation3] sm:$0xff]  ;;  %3574 = vmatpush3.bf16.msra.mxu0 %v3571_v40  ;;  %3653 = vmatpush3.bf16.msra.mxu1 %v3571_v40  ;;  %v2165_v31 = vld [vmem:[#allocation3 + $0x8] sm:$0xff]  ;;  %v2166_v3 = vld [vmem:[#allocation3 + $0x10] sm:$0xff]  ;;  %v5630_v40 = vrot.slane %v6252_v58, %v6253_v13 }
 0x267   : > { %v2180_v28 = vld [vmem:[#allocation3 + $0x80] sm:$0xff]  ;;  %3403 = vmatprep.mubr.f32.mxu0 %v2164_v54  ;;  %3576 = vmatprep.subr.bf16.mxu0 %v3575_v27  ;;  %v2181_v6 = vld [vmem:[#allocation3 + $0x88] sm:$0xff]  ;;  %v2182_v21 = vld [vmem:[#allocation3 + $0x90] sm:$0xff] }
 0x268   : > { %3427 = vmatprep.mubr.f32.mxu1 %v2180_v28  ;;  %3646 = vmatprep.subr.bf16.mxu1 %v3575_v27  ;;  %v2167_v36 = vld [vmem:[#allocation3 + $0x18] sm:$0xff]  ;;  %v2168_v16 = vld [vmem:[#allocation3 + $0x20] sm:$0xff]  ;;  %v2169_v2 = vld [vmem:[#allocation3 + $0x28] sm:$0xff] }
 0x269   : > { %v2183_v35 = vld [vmem:[#allocation3 + $0x98] sm:$0xff]  ;;  %v2184_v48 = vld [vmem:[#allocation3 + $0xa0] sm:$0xff]  ;;  %v2185_v12 = vld [vmem:[#allocation3 + $0xa8] sm:$0xff] }
 0x26a   : > { %3578 = vmatpush3.bf16.msra.mxu0 %v3575_v27  ;;  %3654 = vmatpush3.bf16.msra.mxu1 %v3575_v27  ;;  %v2170_v62 = vld [vmem:[#allocation3 + $0x30] sm:$0xff]  ;;  %v2171_v33 = vld [vmem:[#allocation3 + $0x38] sm:$0xff]  ;;  %v2172_v55 = vld [vmem:[#allocation3 + $0x40] sm:$0xff] }
 0x26b   : > { %3580 = vmatprep.subr.bf16.mxu0 %v3579_v9  ;;  %3647 = vmatprep.subr.bf16.mxu1 %v3579_v9  ;;  %v2186_v25 = vld [vmem:[#allocation3 + $0xb0] sm:$0xff]  ;;  %v2187_v59 = vld [vmem:[#allocation3 + $0xb8] sm:$0xff]  ;;  %v2188_v30 = vld [vmem:[#allocation3 + $0xc0] sm:$0xff] }
 0x26c   : > { %v2173_v43 = vld [vmem:[#allocation3 + $0x48] sm:$0xff]  ;;  %v2174_v49 = vld [vmem:[#allocation3 + $0x50] sm:$0xff]  ;;  %v2175_v51 = vld [vmem:[#allocation3 + $0x58] sm:$0xff] }
 0x26d   : > { %v2189_v53 = vld [vmem:[#allocation3 + $0xc8] sm:$0xff]  ;;  %v2190_v38 = vld [vmem:[#allocation3 + $0xd0] sm:$0xff]  ;;  %v2191_v11 = vld [vmem:[#allocation3 + $0xd8] sm:$0xff] }
 0x26e   : > { %3582 = vmatpush3.bf16.msra.mxu0 %v3579_v9  ;;  %3655 = vmatpush3.bf16.msra.mxu1 %v3579_v9  ;;  %v2176_v60 = vld [vmem:[#allocation3 + $0x60] sm:$0xff]  ;;  %v2177_v22 = vld [vmem:[#allocation3 + $0x68] sm:$0xff]  ;;  %v2178_v19 = vld [vmem:[#allocation3 + $0x70] sm:$0xff] }
 0x26f   : > { %3584 = vmatprep.subr.bf16.mxu0 %v3583_v7  ;;  %3648 = vmatprep.subr.bf16.mxu1 %v3583_v7  ;;  %v2192_v15 = vld [vmem:[#allocation3 + $0xe0] sm:$0xff]  ;;  %v2193_v52 = vld [vmem:[#allocation3 + $0xe8] sm:$0xff]  ;;  %v2194_v61 = vld [vmem:[#allocation3 + $0xf0] sm:$0xff] }
 0x270   : > { %v2179_v26 = vld [vmem:[#allocation3 + $0x78] sm:$0xff]  ;;  %v6254_v54 = vld [vmem:[#allocation21_spill] sm:$0xff] }
 0x271   : > { %v2195_v5 = vld [vmem:[#allocation3 + $0xf8] sm:$0xff]  ;;  %v5634_v28 = vrot.slane %v6252_v58, %v6254_v54 }
 0x272   : > { %3586 = vmatpush3.bf16.msra.mxu0 %v3583_v7  ;;  %3656 = vmatpush3.bf16.msra.mxu1 %v3583_v7 }
 0x273   : > { %3588 = vmatprep.subr.bf16.mxu0 %v3587_v4  ;;  %3649 = vmatprep.subr.bf16.mxu1 %v3587_v4 }
 0x276   : > { %3590 = vmatpush3.bf16.msra.mxu0 %v3587_v4  ;;  %3657 = vmatpush3.bf16.msra.mxu1 %v3587_v4 }
 0x277   : > { %3592 = vmatprep.subr.bf16.mxu0 %v3591_v63  ;;  %3650 = vmatprep.subr.bf16.mxu1 %v3591_v63 }
 0x27a   : > { %3594 = vmatpush3.bf16.msra.mxu0 %v3591_v63  ;;  %3658 = vmatpush3.bf16.msra.mxu1 %v3591_v63 }
 0x27d   : > { %3404 = vmatmul.mubr.f32.vlgmr.msra.gmra.mrb[0].mxu0 %v2165_v31  ;;  %3428 = vmatmul.mubr.f32.vlgmr.msra.gmra.mrb[0].mxu1 %v2181_v6 }
 0x27e   : > { %3406 = vmatprep.mubr.f32.mxu0 %v2166_v3  ;;  %3430 = vmatprep.mubr.f32.mxu1 %v2182_v21 }
 0x281   : > { %3407 = vmatmul.mubr.f32.gmra.mrb[2].mxu0 %v2167_v36  ;;  %3431 = vmatmul.mubr.f32.gmra.mrb[2].mxu1 %v2183_v35 }
 0x282   : > { %3409 = vmatprep.mubr.f32.mxu0 %v2168_v16  ;;  %3433 = vmatprep.mubr.f32.mxu1 %v2184_v48 }
 0x285   : > { %3410 = vmatmul.mubr.f32.gmra.mrb[4].mxu0 %v2169_v2  ;;  %3434 = vmatmul.mubr.f32.gmra.mrb[4].mxu1 %v2185_v12 }
 0x286   : > { %3412 = vmatprep.mubr.f32.mxu0 %v2170_v62  ;;  %3436 = vmatprep.mubr.f32.mxu1 %v2186_v25 }
 0x289   : > { %3413 = vmatmul.mubr.f32.gmra.mrb[6].mxu0 %v2171_v33  ;;  %3437 = vmatmul.mubr.f32.gmra.mrb[6].mxu1 %v2187_v59 }
 0x28a   : > { %3415 = vmatprep.mubr.f32.mxu0 %v2172_v55  ;;  %3439 = vmatprep.mubr.f32.mxu1 %v2188_v30 }
 0x28d   : > { %3416 = vmatmul.mubr.f32.gmra.mrb[8].mxu0 %v2173_v43  ;;  %3440 = vmatmul.mubr.f32.gmra.mrb[8].mxu1 %v2189_v53 }
 0x28e   : > { %3418 = vmatprep.mubr.f32.mxu0 %v2174_v49  ;;  %3442 = vmatprep.mubr.f32.mxu1 %v2190_v38 }
 0x291   : > { %3419 = vmatmul.mubr.f32.gmra.mrb[10].mxu0 %v2175_v51  ;;  %3443 = vmatmul.mubr.f32.gmra.mrb[10].mxu1 %v2191_v11 }
 0x292   : > { %3421 = vmatprep.mubr.f32.mxu0 %v2176_v60  ;;  %3445 = vmatprep.mubr.f32.mxu1 %v2192_v15 }
 0x295   : > { %3422 = vmatmul.mubr.f32.gmra.mrb[12].mxu0 %v2177_v22  ;;  %3446 = vmatmul.mubr.f32.gmra.mrb[12].mxu1 %v2193_v52 }
 0x296   : > { %3424 = vmatprep.mubr.f32.mxu0 %v2178_v19  ;;  %3448 = vmatprep.mubr.f32.mxu1 %v2194_v61 }
 0x299   : > { %3425 = vmatmul.mubr.f32.gmra.mrb[14].mxu0 %v2179_v26  ;;  %3449 = vmatmul.mubr.f32.gmra.mrb[14].mxu1 %v2195_v5 }
 0x350   : > { %v3405_v29 = vpop.f32.mrb[0].mxu0  ;;  %v3429_v42 = vpop.f32.mrb[0].mxu1 }
 0x351   : > { %v2288_v8 = vadd.f32 %v3405_v29, %v5622_v23  ;;  %v2368_v44 = vadd.f32 %v3429_v42, %v5622_v23  ;;  %v2282_v24 = vpop.f32.mrb[1].mxu0  ;;  %v2362_v34 = vpop.f32.mrb[1].mxu1 }
 0x352   : > { %v2283_v18 = vadd.f32 %v2282_v24, %v5622_v23  ;;  %v2363_v39 = vadd.f32 %v2362_v34, %v5622_v23 }
 0x353   : > { %v2474_v0 = vmul.f32 0.70710677, %v2288_v8  ;;  %v2490_v45 = vmul.f32 0.70710677, %v2368_v44  ;;  %v5636_v27 = vmul.f32 0.5, %v2288_v8  ;;  %v5640_v56 = vmul.f32 0.5, %v2368_v44 }
 0x354   : > { %v2473_v14 = vmul.f32 0.70710677, %v2283_v18  ;;  %v2489_v37 = vmul.f32 0.70710677, %v2363_v39  ;;  %v3408_v46 = vpop.f32.mrb[2].mxu0  ;;  %v3432_v1 = vpop.f32.mrb[2].mxu1 }
 0x355   : > { %3851 = verf.f32 %v2474_v0  ;;  %v2298_v50 = vadd.f32 %v3408_v46, %v5622_v23  ;;  %v2378_v20 = vadd.f32 %v3432_v1, %v5622_v23  ;;  %v2292_v9 = vpop.f32.mrb[3].mxu0  ;;  %v2372_v41 = vpop.f32.mrb[3].mxu1  ;;  %v5644_v57 = vmul.f32 0.5, %v2283_v18 }
 0x356   : > { %3853 = verf.f32 %v2490_v45  ;;  %v2293_v7 = vadd.f32 %v2292_v9, %v5622_v23  ;;  %v2373_v17 = vadd.f32 %v2372_v41, %v5622_v23  ;;  %v5646_v4 = vmul.f32 0.5, %v2363_v39 }
 0x357   : > { %3855 = verf.f32 %v2473_v14  ;;  %v2476_v10 = vmul.f32 0.70710677, %v2298_v50  ;;  %v5648_v31 = vmul.f32 0.5, %v2298_v50  ;;  %v5650_v6 = vmul.f32 0.5, %v2378_v20 }
 0x358   : > { %3857 = verf.f32 %v2489_v37  ;;  %v3411_v32 = vpop.f32.mrb[4].mxu0  ;;  %v3435_v63 = vpop.f32.mrb[4].mxu1  ;;  %v2492_v3 = vmul.f32 0.70710677, %v2378_v20  ;;  %v2475_v21 = vmul.f32 0.70710677, %v2293_v7 }
 0x359   : > { %3859 = verf.f32 %v2476_v10  ;;  %v2491_v36 = vmul.f32 0.70710677, %v2373_v17  ;;  %v2308_v35 = vadd.f32 %v3411_v32, %v5622_v23  ;;  %v2388_v16 = vadd.f32 %v3435_v63, %v5622_v23  ;;  %v2302_v48 = vpop.f32.mrb[5].mxu0  ;;  %v2382_v2 = vpop.f32.mrb[5].mxu1 }
 0x35a   : > { %3861 = verf.f32 %v2492_v3  ;;  %v5654_v12 = vmul.f32 0.5, %v2293_v7  ;;  %v2303_v62 = vadd.f32 %v2302_v48, %v5622_v23  ;;  %v2383_v25 = vadd.f32 %v2382_v2, %v5622_v23 }
 0x35b   : > { %3863 = verf.f32 %v2475_v21  ;;  %v5658_v33 = vmul.f32 0.5, %v2373_v17  ;;  %v5660_v59 = vmul.f32 0.5, %v2308_v35  ;;  %v2478_v55 = vmul.f32 0.70710677, %v2308_v35 }
 0x35c   : > { %v3414_v30 = vpop.f32.mrb[6].mxu0  ;;  %v3438_v43 = vpop.f32.mrb[6].mxu1  ;;  %3865 = verf.f32 %v2491_v36  ;;  %v5662_v53 = vmul.f32 0.5, %v2388_v16  ;;  %v2494_v49 = vmul.f32 0.70710677, %v2388_v16  ;;  %v5664_v11 = vmul.f32 0.5, %v2303_v62 }
 0x35d   : > { %v2477_v38 = vmul.f32 0.70710677, %v2303_v62  ;;  %v2312_v51 = vpop.f32.mrb[7].mxu0  ;;  %3867 = verf.f32 %v2478_v55  ;;  %v2493_v60 = vmul.f32 0.70710677, %v2383_v25  ;;  %v2318_v15 = vadd.f32 %v3414_v30, %v5622_v23  ;;  %v2392_v22 = vpop.f32.mrb[7].mxu1 }
 0x35e   : > { %3869 = verf.f32 %v2494_v49  ;;  %v5667_v19 = vmul.f32 0.5, %v2383_v25  ;;  %v2398_v61 = vadd.f32 %v3438_v43, %v5622_v23  ;;  %v2313_v26 = vadd.f32 %v2312_v51, %v5622_v23 }
 0x35f   : > { %v3852_v52 = vpop.eup %3851  ;;  %3871 = verf.f32 %v2477_v38  ;;  %v2480_v58 = vmul.f32 0.70710677, %v2318_v15  ;;  %v2393_v29 = vadd.f32 %v2392_v22, %v5622_v23  ;;  %v5674_v34 = vmul.f32 0.5, %v2318_v15 }
 0x360   : > { %v3854_v5 = vpop.eup %3853  ;;  %v2538_v47 = vadd.f32 1.0, %v3852_v52  ;;  %v3417_v42 = vpop.f32.mrb[8].mxu0  ;;  %3873 = verf.f32 %v2493_v60  ;;  %v2496_v18 = vmul.f32 0.70710677, %v2398_v61  ;;  %v5681_v13 = vmul.f32 0.5, %v2398_v61 }
 0x361   : > { %v5672_v8 = vpop.f32.mrb[8].mxu1  ;;  %v3856_v44 = vpop.eup %3855  ;;  %v2554_v24 = vadd.f32 1.0, %v3854_v5  ;;  %3875 = verf.f32 %v2480_v58  ;;  %v2479_v1 = vmul.f32 0.70710677, %v2313_v26  ;;  %v5686_v41 = vmul.f32 0.5, %v2313_v26 }
 0x362   : > { %v5676_v39 = vpop.f32.mrb[9].mxu0  ;;  %v5678_v0 = vpop.f32.mrb[9].mxu1  ;;  %v2570_v14 = vmul.f32 %v2538_v47, %v5636_v27  ;;  %v2537_v37 = vadd.f32 1.0, %v3856_v44  ;;  %3877 = verf.f32 %v2496_v18  ;;  %v2495_v7 = vmul.f32 0.70710677, %v2393_v29 }
 0x363   : > { %v3858_v45 = vpop.eup %3857  ;;  %v2586_v54 = vmul.f32 %v2554_v24, %v5640_v56  ;;  %3879 = verf.f32 %v2479_v1  ;;  %v2463_v38 = vmul.f32 0.5, %v2393_v29  ;;  %v2328_v44 = vadd.f32 %v3417_v42, %v5622_v23 }
 0x364   : > { %v2553_v46 = vadd.f32 1.0, %v3858_v45  ;;  %v3860_v50 = vpop.eup %3859  ;;  %v2606_v20 = vmul.f32 %v5630_v40, %v2570_v14  ;;  %v2569_v9 = vmul.f32 %v2537_v37, %v5644_v57  ;;  %v5688_v17 = vpop.f32.mrb[10].mxu0  ;;  %3881 = verf.f32 %v2495_v7 }
 0x365   : > { %v5690_v27 = vpop.f32.mrb[10].mxu1  ;;  %v3862_v10 = vpop.eup %3861  ;;  %v2622_v32 = vmul.f32 %v5630_v40, %v2586_v54  ;;  %v2540_v63 = vadd.f32 1.0, %v3860_v50 }
 0x366   : > { %v2585_v56 = vmul.f32 %v2553_v46, %v5646_v4  ;;  %v5694_v3 = vpop.f32.mrb[11].mxu0  ;;  %v5696_v21 = vpop.f32.mrb[11].mxu1  ;;  %v5699_v57 = vadd.f32 %v5634_v28, %v2606_v20  ;;  %v2605_v35 = vmul.f32 %v5630_v40, %v2569_v9  ;;  %v2556_v16 = vadd.f32 1.0, %v3862_v10 }
 0x367   : > { %v3864_v36 = vpop.eup %3863  ;;  %v5703_v2 = vadd.f32 %v5634_v28, %v2622_v32  ;;  %v2572_v62 = vmul.f32 %v2540_v63, %v5648_v31 }
 0x368   : > { %v3866_v48 = vpop.eup %3865  ;;  %v2621_v4 = vmul.f32 %v5630_v40, %v2585_v56  ;;  %v2539_v25 = vadd.f32 1.0, %v3864_v36  ;;  %v5708_v30 = vadd.f32 %v5634_v28, %v2605_v35  ;;  %v2588_v43 = vmul.f32 %v2556_v16, %v5650_v6  ;;  %v5711_v51 = vpop.f32.mrb[12].mxu0  ;;  %2679 = vst [vmem:[#allocation2 + $0x3a] sm:$0xff] (!%p3138_p2), %v5699_v57 }
 0x369   : > { %v3868_v55 = vpop.eup %3867  ;;  %v2555_v49 = vadd.f32 1.0, %v3866_v48  ;;  %v5713_v60 = vpop.f32.mrb[12].mxu1  ;;  %v2608_v52 = vmul.f32 %v5630_v40, %v2572_v62  ;;  %v2482_v62 = vmul.f32 0.70710677, %v2328_v44  ;;  %2695 = vst [vmem:[#allocation2 + $0xfa] sm:$0xff] (!%p3138_p2), %v5703_v2 }
 0x36a   : > { %v3870_v15 = vpop.eup %3869  ;;  %v5716_v22 = vadd.f32 %v5634_v28, %v2621_v4  ;;  %v2571_v31 = vmul.f32 %v2539_v25, %v5654_v12  ;;  %v2542_v61 = vadd.f32 1.0, %v3868_v55  ;;  %v5720_v26 = vpop.f32.mrb[13].mxu0  ;;  %v2624_v47 = vmul.f32 %v5630_v40, %v2588_v43  ;;  %2678 = vst [vmem:[#allocation2 + $0x32] sm:$0xff] (!%p3138_p2), %v5708_v30 }
 0x36b   : > { %v5722_v5 = vpop.f32.mrb[13].mxu1  ;;  %v3872_v6 = vpop.eup %3871  ;;  %v2587_v58 = vmul.f32 %v2555_v49, %v5658_v33  ;;  %v2558_v29 = vadd.f32 1.0, %v3870_v15  ;;  %v5728_v18 = vadd.f32 %v5634_v28, %v2608_v52  ;;  %3883 = verf.f32 %v2482_v62 }
 0x36c   : > { %v3874_v24 = vpop.eup %3873  ;;  %v2607_v45 = vmul.f32 %v5630_v40, %v2571_v31  ;;  %v2574_v12 = vmul.f32 %v2542_v61, %v5660_v59  ;;  %v2541_v14 = vadd.f32 1.0, %v3872_v6  ;;  %v5733_v54 = vadd.f32 %v5634_v28, %v2624_v47  ;;  %v5737_v50 = vpop.f32.mrb[14].mxu0  ;;  %2694 = vst [vmem:[#allocation2 + $0xf2] sm:$0xff] (!%p3138_p2), %v5716_v22 }
 0x36d   : > { %v3876_v37 = vpop.eup %3875  ;;  %v2623_v46 = vmul.f32 %v5630_v40, %v2587_v58  ;;  %v2590_v33 = vmul.f32 %v2558_v29, %v5662_v53  ;;  %v2557_v1 = vadd.f32 1.0, %v3874_v24  ;;  %v5739_v42 = vpop.f32.mrb[14].mxu1  ;;  %v2408_v47 = vadd.f32 %v5672_v8, %v5622_v23  ;;  %2681 = vst [vmem:[#allocation2 + $0x52] sm:$0xff] (!%p3138_p2), %v5728_v18 }
 0x36e   : > { %v3878_v20 = vpop.eup %3877  ;;  %v5742_v9 = vadd.f32 %v5634_v28, %v2607_v45  ;;  %v2610_v59 = vmul.f32 %v5630_v40, %v2574_v12  ;;  %v2573_v7 = vmul.f32 %v2541_v14, %v5664_v11  ;;  %v2544_v10 = vadd.f32 1.0, %v3876_v37  ;;  %v5746_v32 = vpop.f32.mrb[15].mxu0  ;;  %2697 = vst [vmem:[#allocation2 + $0x112] sm:$0xff] (!%p3138_p2), %v5733_v54 }
 0x36f   : > { %v5748_v56 = vpop.f32.mrb[15].mxu1  ;;  %v5751_v53 = vadd.f32 %v5634_v28, %v2623_v46  ;;  %v2626_v63 = vmul.f32 %v5630_v40, %v2590_v33  ;;  %v2589_v36 = vmul.f32 %v2557_v1, %v5667_v19  ;;  %v2560_v35 = vadd.f32 1.0, %v3878_v20  ;;  %v3880_v16 = vpop.eup %3879 }
 0x370   : > { %v5756_v48 = vadd.f32 %v5634_v28, %v2610_v59  ;;  %v2609_v4 = vmul.f32 %v5630_v40, %v2573_v7  ;;  %v2576_v11 = vmul.f32 %v2544_v10, %v5674_v34  ;;  %v3882_v25 = vpop.eup %3881  ;;  %v2543_v15 = vadd.f32 1.0, %v3880_v16  ;;  %2680 = vst [vmem:[#allocation2 + $0x4a] sm:$0xff] (!%p3138_p2), %v5742_v9 }
 0x371   : > { %v5761_v55 = vadd.f32 %v5634_v28, %v2626_v63  ;;  %v2625_v43 = vmul.f32 %v5630_v40, %v2589_v36  ;;  %v2592_v49 = vmul.f32 %v2560_v35, %v5681_v13  ;;  %v2559_v31 = vadd.f32 1.0, %v3882_v25  ;;  %2696 = vst [vmem:[#allocation2 + $0x10a] sm:$0xff] (!%p3138_p2), %v5751_v53 }
 0x372   : > { %v5766_v19 = vadd.f32 %v5634_v28, %v2609_v4  ;;  %v2612_v52 = vmul.f32 %v5630_v40, %v2576_v11  ;;  %v2575_v6 = vmul.f32 %v2543_v15, %v5686_v41  ;;  %v2323_v29 = vadd.f32 %v5676_v39, %v5622_v23  ;;  %2683 = vst [vmem:[#allocation2 + $0x6a] sm:$0xff] (!%p3138_p2), %v5756_v48 }
 0x373   : > { %v5770_v61 = vadd.f32 %v5634_v28, %v2625_v43  ;;  %v2628_v34 = vmul.f32 %v5630_v40, %v2592_v49  ;;  %v2591_v58 = vmul.f32 %v2559_v31, %v2463_v38  ;;  %v2403_v24 = vadd.f32 %v5678_v0, %v5622_v23  ;;  %2699 = vst [vmem:[#allocation2 + $0x12a] sm:$0xff] (!%p3138_p2), %v5761_v55 }
 0x374   : > { %v5777_v13 = vadd.f32 %v5634_v28, %v2612_v52  ;;  %v2611_v12 = vmul.f32 %v5630_v40, %v2575_v6  ;;  %v2498_v14 = vmul.f32 0.70710677, %v2408_v47  ;;  %v2481_v37 = vmul.f32 0.70710677, %v2323_v29  ;;  %2682 = vst [vmem:[#allocation2 + $0x62] sm:$0xff] (!%p3138_p2), %v5766_v19 }
 0x375   : > { %v5784_v45 = vadd.f32 %v5634_v28, %v2628_v34  ;;  %v2627_v41 = vmul.f32 %v5630_v40, %v2591_v58  ;;  %v2497_v38 = vmul.f32 0.70710677, %v2403_v24  ;;  %v2338_v39 = vadd.f32 %v5688_v17, %v5622_v23  ;;  %v3884_v35 = vpop.eup %3883  ;;  %2698 = vst [vmem:[#allocation2 + $0x122] sm:$0xff] (!%p3138_p2), %v5770_v61 }
 0x376   : > { %v5789_v8 = vadd.f32 %v5634_v28, %v2611_v12  ;;  %3885 = verf.f32 %v2498_v14  ;;  %v2418_v0 = vadd.f32 %v5690_v27, %v5622_v23  ;;  %v2333_v33 = vadd.f32 %v5694_v3, %v5622_v23  ;;  %2685 = vst [vmem:[#allocation2 + $0x82] sm:$0xff] (!%p3138_p2), %v5777_v13 }
 0x377   : > { %v5794_v46 = vadd.f32 %v5634_v28, %v2627_v41  ;;  %3887 = verf.f32 %v2481_v37  ;;  %v2484_v1 = vmul.f32 0.70710677, %v2338_v39  ;;  %v2413_v20 = vadd.f32 %v5696_v21, %v5622_v23  ;;  %2701 = vst [vmem:[#allocation2 + $0x142] sm:$0xff] (!%p3138_p2), %v5784_v45 }
 0x378   : > { %3889 = verf.f32 %v2497_v38  ;;  %v2450_v59 = vmul.f32 0.5, %v2328_v44  ;;  %v2500_v7 = vmul.f32 0.70710677, %v2418_v0  ;;  %v2483_v10 = vmul.f32 0.70710677, %v2333_v33  ;;  %2684 = vst [vmem:[#allocation2 + $0x7a] sm:$0xff] (!%p3138_p2), %v5789_v8 }
 0x379   : > { %v2466_v63 = vmul.f32 0.5, %v2408_v47  ;;  %3891 = verf.f32 %v2484_v1  ;;  %v2499_v17 = vmul.f32 0.70710677, %v2413_v20  ;;  %v2348_v36 = vadd.f32 %v5711_v51, %v5622_v23  ;;  %2700 = vst [vmem:[#allocation2 + $0x13a] sm:$0xff] (!%p3138_p2), %v5794_v46 }
 0x37a   : > { %3893 = verf.f32 %v2500_v7  ;;  %v2428_v27 = vadd.f32 %v5713_v60, %v5622_v23  ;;  %v2343_v3 = vadd.f32 %v5720_v26, %v5622_v23  ;;  %v5810_v21 = vadd.f32 %v5722_v5, %v5622_v23 }
 0x37b   : > { %v2546_v44 = vadd.f32 1.0, %v3884_v35  ;;  %v2449_v16 = vmul.f32 0.5, %v2323_v29  ;;  %3895 = verf.f32 %v2483_v10  ;;  %v2486_v4 = vmul.f32 0.70710677, %v2348_v36 }
 0x37c   : > { %v2465_v11 = vmul.f32 0.5, %v2403_v24  ;;  %v2452_v62 = vmul.f32 0.5, %v2338_v39  ;;  %3897 = verf.f32 %v2499_v17  ;;  %v2502_v51 = vmul.f32 0.70710677, %v2428_v27 }
 0x37d   : > { %v2578_v25 = vmul.f32 %v2546_v44, %v2450_v59  ;;  %v2468_v43 = vmul.f32 0.5, %v2418_v0  ;;  %3899 = verf.f32 %v2486_v4  ;;  %v2485_v49 = vmul.f32 0.70710677, %v2343_v3 }
 0x37e   : > { %3901 = verf.f32 %v2502_v51  ;;  %v2501_v60 = vmul.f32 0.70710677, %v5810_v21  ;;  %v5815_v26 = vadd.f32 %v5737_v50, %v5622_v23  ;;  %v5819_v5 = vadd.f32 %v5739_v42, %v5622_v23 }
 0x37f   : > { %v2614_v52 = vmul.f32 %v5630_v40, %v2578_v25  ;;  %v2451_v31 = vmul.f32 0.5, %v2333_v33  ;;  %3903 = verf.f32 %v2485_v49  ;;  %v5824_v34 = vadd.f32 %v5746_v32, %v5622_v23 }
 0x380   : > { %v3886_v15 = vpop.eup %3885  ;;  %3905 = verf.f32 %v2501_v60  ;;  %v2488_v58 = vmul.f32 0.70710677, %v5815_v26  ;;  %v5829_v50 = vadd.f32 %v5748_v56, %v5622_v23  ;;  %v2467_v12 = vmul.f32 0.5, %v2413_v20 }
 0x381   : > { %v3888_v6 = vpop.eup %3887  ;;  %v2562_v47 = vadd.f32 1.0, %v3886_v15  ;;  %v5832_v29 = vadd.f32 %v5634_v28, %v2614_v52  ;;  %v2504_v14 = vmul.f32 0.70710677, %v5819_v5  ;;  %v2454_v37 = vmul.f32 0.5, %v2348_v36 }
 0x382   : > { %v3890_v42 = vpop.eup %3889  ;;  %v2545_v24 = vadd.f32 1.0, %v3888_v6  ;;  %3907 = verf.f32 %v2488_v58  ;;  %v2470_v0 = vmul.f32 0.5, %v2428_v27  ;;  %v2487_v33 = vmul.f32 0.70710677, %v5824_v34 }
 0x383   : > { %v2594_v41 = vmul.f32 %v2562_v47, %v2466_v63  ;;  %v2561_v32 = vadd.f32 1.0, %v3890_v42  ;;  %v3892_v38 = vpop.eup %3891  ;;  %3909 = verf.f32 %v2504_v14  ;;  %v2503_v7 = vmul.f32 0.70710677, %v5829_v50  ;;  %2687 = vst [vmem:[#allocation2 + $0x9a] sm:$0xff] (!%p3138_p2), %v5832_v29 }
 0x384   : > { %v2577_v39 = vmul.f32 %v2545_v24, %v2449_v16  ;;  %v3894_v23 = vpop.eup %3893  ;;  %v2548_v59 = vadd.f32 1.0, %v3892_v38  ;;  %v2453_v17 = vmul.f32 0.5, %v2343_v3  ;;  %3911 = verf.f32 %v2487_v33 }
 0x385   : > { %v2630_v56 = vmul.f32 %v5630_v40, %v2594_v41  ;;  %v2593_v1 = vmul.f32 %v2561_v32, %v2465_v11  ;;  %v3896_v20 = vpop.eup %3895  ;;  %v2564_v63 = vadd.f32 1.0, %v3894_v23  ;;  %3913 = verf.f32 %v2503_v7 }
 0x386   : > { %v2613_v10 = vmul.f32 %v5630_v40, %v2577_v39  ;;  %v3898_v36 = vpop.eup %3897  ;;  %v2580_v44 = vmul.f32 %v2548_v59, %v2452_v62  ;;  %v2547_v16 = vadd.f32 1.0, %v3896_v20  ;;  %v2469_v42 = vmul.f32 0.5, %v5810_v21 }
 0x387   : > { %v5840_v35 = vadd.f32 %v5634_v28, %v2630_v56  ;;  %v2629_v27 = vmul.f32 %v5630_v40, %v2593_v1  ;;  %v3900_v4 = vpop.eup %3899  ;;  %v2596_v51 = vmul.f32 %v2564_v63, %v2468_v43  ;;  %v2563_v25 = vadd.f32 1.0, %v3898_v36 }
 0x388   : > { %v5844_v11 = vadd.f32 %v5634_v28, %v2613_v10  ;;  %v3902_v49 = vpop.eup %3901  ;;  %v2616_v3 = vmul.f32 %v5630_v40, %v2580_v44  ;;  %v2579_v15 = vmul.f32 %v2547_v16, %v2451_v31  ;;  %v2550_v52 = vadd.f32 1.0, %v3900_v4 }
 0x389   : > { %v5847_v60 = vadd.f32 %v5634_v28, %v2629_v27  ;;  %v3904_v6 = vpop.eup %3903  ;;  %v2632_v47 = vmul.f32 %v5630_v40, %v2596_v51  ;;  %v2595_v62 = vmul.f32 %v2563_v25, %v2467_v12  ;;  %v2566_v58 = vadd.f32 1.0, %v3902_v49  ;;  %2703 = vst [vmem:[#allocation2 + $0x15a] sm:$0xff] (!%p3138_p2), %v5840_v35 }
 0x38a   : > { %v3906_v24 = vpop.eup %3905  ;;  %v5853_v43 = vadd.f32 %v5634_v28, %v2616_v3  ;;  %v2615_v14 = vmul.f32 %v5630_v40, %v2579_v15  ;;  %v2582_v41 = vmul.f32 %v2550_v52, %v2454_v37  ;;  %v2549_v32 = vadd.f32 1.0, %v3904_v6  ;;  %2686 = vst [vmem:[#allocation2 + $0x92] sm:$0xff] (!%p3138_p2), %v5844_v11 }
 0x38b   : > { %v5857_v38 = vadd.f32 %v5634_v28, %v2632_v47  ;;  %v2631_v31 = vmul.f32 %v5630_v40, %v2595_v62  ;;  %v2598_v39 = vmul.f32 %v2566_v58, %v2470_v0  ;;  %v2565_v33 = vadd.f32 1.0, %v3906_v24  ;;  %2702 = vst [vmem:[#allocation2 + $0x152] sm:$0xff] (!%p3138_p2), %v5847_v60 }
 0x38c   : > { %v3908_v23 = vpop.eup %3907  ;;  %v5861_v12 = vadd.f32 %v5634_v28, %v2615_v14  ;;  %v2618_v21 = vmul.f32 %v5630_v40, %v2582_v41  ;;  %v2581_v56 = vmul.f32 %v2549_v32, %v2453_v17  ;;  %v2456_v1 = vmul.f32 0.5, %v5815_v26  ;;  %2689 = vst [vmem:[#allocation2 + $0xb2] sm:$0xff] (!%p3138_p2), %v5853_v43 }
 0x38d   : > { %v3910_v59 = vpop.eup %3909  ;;  %v5866_v37 = vadd.f32 %v5634_v28, %v2631_v31  ;;  %v2634_v7 = vmul.f32 %v5630_v40, %v2598_v39  ;;  %v2597_v20 = vmul.f32 %v2565_v33, %v2469_v42  ;;  %v2552_v10 = vadd.f32 1.0, %v3908_v23  ;;  %2705 = vst [vmem:[#allocation2 + $0x172] sm:$0xff] (!%p3138_p2), %v5857_v38 }
 0x38e   : > { %v5870_v0 = vadd.f32 %v5634_v28, %v2618_v21  ;;  %v2617_v63 = vmul.f32 %v5630_v40, %v2581_v56  ;;  %v2472_v36 = vmul.f32 0.5, %v5819_v5  ;;  %v2568_v27 = vadd.f32 1.0, %v3910_v59  ;;  %v3912_v44 = vpop.eup %3911  ;;  %2688 = vst [vmem:[#allocation2 + $0xaa] sm:$0xff] (!%p3138_p2), %v5861_v12 }
 0x38f   : > { %v5875_v17 = vadd.f32 %v5634_v28, %v2634_v7  ;;  %v2633_v26 = vmul.f32 %v5630_v40, %v2597_v20  ;;  %v2584_v16 = vmul.f32 %v2552_v10, %v2456_v1  ;;  %v2455_v25 = vmul.f32 0.5, %v5824_v34  ;;  %v3914_v3 = vpop.eup %3913  ;;  %2704 = vst [vmem:[#allocation2 + $0x16a] sm:$0xff] (!%p3138_p2), %v5866_v37 }
 0x390   : > { %v5879_v4 = vadd.f32 %v5634_v28, %v2617_v63  ;;  %v2600_v51 = vmul.f32 %v2568_v27, %v2472_v36  ;;  %v2551_v49 = vadd.f32 1.0, %v3912_v44  ;;  %v2471_v47 = vmul.f32 0.5, %v5829_v50  ;;  %2691 = vst [vmem:[#allocation2 + $0xca] sm:$0xff] (!%p3138_p2), %v5870_v0 }
 0x391   : > { %v5883_v15 = vadd.f32 %v5634_v28, %v2633_v26  ;;  %v2620_v5 = vmul.f32 %v5630_v40, %v2584_v16  ;;  %v2567_v62 = vadd.f32 1.0, %v3914_v3  ;;  %2676 = sbr.rel (%p3138_p2) target bundleno = 922 (0x39a), region = 67  ;;  %2707 = vst [vmem:[#allocation2 + $0x18a] sm:$0xff] (!%p3138_p2), %v5875_v17 }
 0x392   : > { %v2636_v52 = vmul.f32 %v5630_v40, %v2600_v51  ;;  %v2583_v6 = vmul.f32 %v2551_v49, %v2455_v25  ;;  %2690 = vst [vmem:[#allocation2 + $0xc2] sm:$0xff] (!%p3138_p2), %v5879_v4 }
 0x393   : > { %v5889_v58 = vadd.f32 %v5634_v28, %v2620_v5  ;;  %v2599_v24 = vmul.f32 %v2567_v62, %v2471_v47  ;;  %2706 = vst [vmem:[#allocation2 + $0x182] sm:$0xff] (!%p3138_p2), %v5883_v15 }
 0x394   : > { %v5892_v42 = vadd.f32 %v5634_v28, %v2636_v52  ;;  %v2619_v34 = vmul.f32 %v5630_v40, %v2583_v6 }
 0x395   : > { %v2635_v41 = vmul.f32 %v5630_v40, %v2599_v24  ;;  %2693 = vst [vmem:[#allocation2 + $0xe2] sm:$0xff] (!%p3138_p2), %v5889_v58 }
 0x396   : > { %v5896_v14 = vadd.f32 %v5634_v28, %v2619_v34  ;;  %2709 = vst [vmem:[#allocation2 + $0x1a2] sm:$0xff] (!%p3138_p2), %v5892_v42 }
 0x397   : > { %v5900_v32 = vadd.f32 %v5634_v28, %v2635_v41 }
 0x398   : > { %2692 = vst [vmem:[#allocation2 + $0xda] sm:$0xff] %v5896_v14 }
 0x399   : > { %2708 = vst [vmem:[#allocation2 + $0x19a] sm:$0xff] %v5900_v32 }
 0x39a PF: > { %p3139_p4 = scmp.ne.s32.totalorder %s3997_s30, 1 }
 0x39b   : > { %v2714_v40 = vld [vmem:[%s6080_s6] sm:$0xff] (!%p3139_p4)  ;;  %v2715_v28 = vld [vmem:[%s6080_s6 + $0x8] sm:$0xff] (!%p3139_p4)  ;;  %v2716_v50 = vld [vmem:[%s6080_s6 + $0x10] sm:$0xff] (!%p3139_p4)  ;;  %3483 = vmatprep.mubr.f32.mxu0 (!%p3139_p4), %v5708_v30  ;;  %3507 = vmatprep.mubr.f32.mxu1 (!%p3139_p4), %v5716_v22 }
 0x39c   : > { %2713 = sbr.rel (%p3139_p4) target bundleno = 1252 (0x4e4), region = 71  ;;  %v3595_v31 = vpack.c.bf16 (!%p3139_p4), %v2715_v28, %v2714_v40  ;;  %v2717_v39 = vld [vmem:[%s6080_s6 + $0x18] sm:$0xff] (!%p3139_p4)  ;;  %v2718_v23 = vld [vmem:[%s6080_s6 + $0x20] sm:$0xff] (!%p3139_p4)  ;;  %v2719_v21 = vld [vmem:[%s6080_s6 + $0x28] sm:$0xff] (!%p3139_p4) }
 0x39d   : > { %v3599_v33 = vpack.c.bf16 (!%p3139_p4), %v2717_v39, %v2716_v50  ;;  %v3603_v30 = vpack.c.bf16 (!%p3139_p4), %v2719_v21, %v2718_v23  ;;  %v2720_v22 = vld [vmem:[%s6080_s6 + $0x30] sm:$0xff] (!%p3139_p4)  ;;  %v2721_v56 = vld [vmem:[%s6080_s6 + $0x38] sm:$0xff] (!%p3139_p4)  ;;  %v2722_v59 = vld [vmem:[%s6080_s6 + $0x40] sm:$0xff] (!%p3139_p4) }
 0x39e   : > { %3596 = vmatprep.subr.bf16.mxu0 (!%p3139_p4), %v3595_v31  ;;  %3659 = vmatprep.subr.bf16.mxu1 (!%p3139_p4), %v3595_v31  ;;  %v3607_v1 = vpack.c.bf16 (!%p3139_p4), %v2721_v56, %v2720_v22  ;;  %v2723_v7 = vld [vmem:[%s6080_s6 + $0x48] sm:$0xff] (!%p3139_p4)  ;;  %v2724_v10 = vld [vmem:[%s6080_s6 + $0x50] sm:$0xff] (!%p3139_p4)  ;;  %v2725_v63 = vld [vmem:[%s6080_s6 + $0x58] sm:$0xff] (!%p3139_p4) }
 0x39f   : > { %3598 = vmatpush3.bf16.msra.mxu0 (!%p3139_p4), %v3595_v31  ;;  %3667 = vmatpush3.bf16.msra.mxu1 (!%p3139_p4), %v3595_v31  ;;  %v3611_v20 = vpack.c.bf16 (!%p3139_p4), %v2723_v7, %v2722_v59  ;;  %v3615_v36 = vpack.c.bf16 (!%p3139_p4), %v2725_v63, %v2724_v10  ;;  %v2726_v27 = vld [vmem:[%s6080_s6 + $0x60] sm:$0xff] (!%p3139_p4)  ;;  %v2727_v44 = vld [vmem:[%s6080_s6 + $0x68] sm:$0xff] (!%p3139_p4)  ;;  %v2728_v16 = vld [vmem:[%s6080_s6 + $0x70] sm:$0xff] (!%p3139_p4) }
 0x3a0   : > { %3600 = vmatprep.subr.bf16.mxu0 (!%p3139_p4), %v3599_v33  ;;  %3660 = vmatprep.subr.bf16.mxu1 (!%p3139_p4), %v3599_v33  ;;  %v3619_v26 = vpack.c.bf16 (!%p3139_p4), %v2727_v44, %v2726_v27  ;;  %v2729_v51 = vld [vmem:[%s6080_s6 + $0x78] sm:$0xff] (!%p3139_p4) }
 0x3a1   : > { %v3623_v25 = vpack.c.bf16 (!%p3139_p4), %v2729_v51, %v2728_v16 }
 0x3a3   : > { %3602 = vmatpush3.bf16.msra.mxu0 %v3599_v33  ;;  %3668 = vmatpush3.bf16.msra.mxu1 %v3599_v33 }
 0x3a4   : > { %3604 = vmatprep.subr.bf16.mxu0 %v3603_v30  ;;  %3661 = vmatprep.subr.bf16.mxu1 %v3603_v30 }
 0x3a7   : > { %3606 = vmatpush3.bf16.msra.mxu0 %v3603_v30  ;;  %3669 = vmatpush3.bf16.msra.mxu1 %v3603_v30 }
 0x3a8   : > { %3608 = vmatprep.subr.bf16.mxu0 %v3607_v1  ;;  %3662 = vmatprep.subr.bf16.mxu1 %v3607_v1 }
 0x3ab   : > { %3610 = vmatpush3.bf16.msra.mxu0 %v3607_v1  ;;  %3670 = vmatpush3.bf16.msra.mxu1 %v3607_v1 }
 0x3ac   : > { %3612 = vmatprep.subr.bf16.mxu0 %v3611_v20  ;;  %3663 = vmatprep.subr.bf16.mxu1 %v3611_v20 }
 0x3af   : > { %3614 = vmatpush3.bf16.msra.mxu0 %v3611_v20  ;;  %3671 = vmatpush3.bf16.msra.mxu1 %v3611_v20 }
 0x3b0   : > { %3616 = vmatprep.subr.bf16.mxu0 %v3615_v36  ;;  %3664 = vmatprep.subr.bf16.mxu1 %v3615_v36 }
 0x3b3   : > { %3618 = vmatpush3.bf16.msra.mxu0 %v3615_v36  ;;  %3672 = vmatpush3.bf16.msra.mxu1 %v3615_v36 }
 0x3b4   : > { %3620 = vmatprep.subr.bf16.mxu0 %v3619_v26  ;;  %3665 = vmatprep.subr.bf16.mxu1 %v3619_v26 }
 0x3b7   : > { %3622 = vmatpush3.bf16.msra.mxu0 %v3619_v26  ;;  %3673 = vmatpush3.bf16.msra.mxu1 %v3619_v26 }
 0x3b8   : > { %3624 = vmatprep.subr.bf16.mxu0 %v3623_v25  ;;  %3666 = vmatprep.subr.bf16.mxu1 %v3623_v25 }
 0x3bb   : > { %3626 = vmatpush3.bf16.msra.mxu0 %v3623_v25  ;;  %3674 = vmatpush3.bf16.msra.mxu1 %v3623_v25 }
 0x3be   : > { %3484 = vmatmul.mubr.f32.vlgmr.msra.gmra.mrb[0].mxu0 %v5699_v57  ;;  %3508 = vmatmul.mubr.f32.vlgmr.msra.gmra.mrb[0].mxu1 %v5703_v2 }
 0x3bf   : > { %3486 = vmatprep.mubr.f32.mxu0 %v5742_v9  ;;  %3510 = vmatprep.mubr.f32.mxu1 %v5751_v53 }
 0x3c2   : > { %3487 = vmatmul.mubr.f32.gmra.mrb[2].mxu0 %v5728_v18  ;;  %3511 = vmatmul.mubr.f32.gmra.mrb[2].mxu1 %v5733_v54 }
 0x3c3   : > { %3489 = vmatprep.mubr.f32.mxu0 %v5766_v19  ;;  %3513 = vmatprep.mubr.f32.mxu1 %v5770_v61 }
 0x3c6   : > { %3490 = vmatmul.mubr.f32.gmra.mrb[4].mxu0 %v5756_v48  ;;  %3514 = vmatmul.mubr.f32.gmra.mrb[4].mxu1 %v5761_v55 }
 0x3c7   : > { %3492 = vmatprep.mubr.f32.mxu0 %v5789_v8  ;;  %3516 = vmatprep.mubr.f32.mxu1 %v5794_v46 }
 0x3ca   : > { %3493 = vmatmul.mubr.f32.gmra.mrb[6].mxu0 %v5777_v13  ;;  %3517 = vmatmul.mubr.f32.gmra.mrb[6].mxu1 %v5784_v45 }
 0x3cb   : > { %3495 = vmatprep.mubr.f32.mxu0 %v5844_v11  ;;  %3519 = vmatprep.mubr.f32.mxu1 %v5847_v60 }
 0x3ce   : > { %3496 = vmatmul.mubr.f32.gmra.mrb[8].mxu0 %v5832_v29  ;;  %3520 = vmatmul.mubr.f32.gmra.mrb[8].mxu1 %v5840_v35 }
 0x3cf   : > { %3498 = vmatprep.mubr.f32.mxu0 %v5861_v12  ;;  %3522 = vmatprep.mubr.f32.mxu1 %v5866_v37 }
 0x3d2   : > { %3499 = vmatmul.mubr.f32.gmra.mrb[10].mxu0 %v5853_v43  ;;  %3523 = vmatmul.mubr.f32.gmra.mrb[10].mxu1 %v5857_v38 }
 0x3d3   : > { %3501 = vmatprep.mubr.f32.mxu0 %v5879_v4  ;;  %3525 = vmatprep.mubr.f32.mxu1 %v5883_v15 }
 0x3d6   : > { %3502 = vmatmul.mubr.f32.gmra.mrb[12].mxu0 %v5870_v0  ;;  %3526 = vmatmul.mubr.f32.gmra.mrb[12].mxu1 %v5875_v17 }
 0x3d7   : > { %3504 = vmatprep.mubr.f32.mxu0 %v5896_v14  ;;  %3528 = vmatprep.mubr.f32.mxu1 %v5900_v32 }
 0x3da   : > { %3505 = vmatmul.mubr.f32.gmra.mrb[14].mxu0 %v5889_v58  ;;  %3529 = vmatmul.mubr.f32.gmra.mrb[14].mxu1 %v5892_v42 }
 0x491   : > { %v3485_v57 = vpop.f32.mrb[0].mxu0  ;;  %v3509_v2 = vpop.f32.mrb[0].mxu1 }
 0x492   : > { %v2796_v18 = vpop.f32.mrb[1].mxu0  ;;  %v2876_v54 = vpop.f32.mrb[1].mxu1 }
 0x493   : > { %v2955_v9 = vadd.f32 %v3485_v57, %v2796_v18 }
 0x495   : > { %v3488_v53 = vpop.f32.mrb[2].mxu0  ;;  %v3512_v48 = vpop.f32.mrb[2].mxu1 }
 0x496   : > { %v2806_v55 = vpop.f32.mrb[3].mxu0  ;;  %v2886_v19 = vpop.f32.mrb[3].mxu1 }
 0x497   : > { %v2956_v61 = vadd.f32 %v2955_v9, %v2806_v55 }
 0x499   : > { %v3491_v13 = vpop.f32.mrb[4].mxu0  ;;  %v2957_v45 = vadd.f32 %v3488_v53, %v2956_v61  ;;  %v3515_v8 = vpop.f32.mrb[4].mxu1  ;;  %v2994_v53 = vld [vmem:[%s6081_s7] sm:$0x1] }
 0x49a   : > { %v2816_v46 = vpop.f32.mrb[5].mxu0  ;;  %v2896_v29 = vpop.f32.mrb[5].mxu1 }
 0x49b   : > { %v2958_v35 = vadd.f32 %v2957_v45, %v2816_v46 }
 0x49d   : > { %v3494_v11 = vpop.f32.mrb[6].mxu0  ;;  %v2959_v60 = vadd.f32 %v3491_v13, %v2958_v35  ;;  %v3518_v43 = vpop.f32.mrb[6].mxu1 }
 0x49e   : > { %v2826_v38 = vpop.f32.mrb[7].mxu0  ;;  %v2906_v12 = vpop.f32.mrb[7].mxu1 }
 0x49f   : > { %v2960_v37 = vadd.f32 %v2959_v60, %v2826_v38 }
 0x4a1   : > { %v3497_v0 = vpop.f32.mrb[8].mxu0  ;;  %v2961_v17 = vadd.f32 %v3494_v11, %v2960_v37  ;;  %v3521_v4 = vpop.f32.mrb[8].mxu1 }
 0x4a2   : > { %v2836_v49 = vpop.f32.mrb[9].mxu0  ;;  %v2916_v3 = vpop.f32.mrb[9].mxu1 }
 0x4a3   : > { %v2962_v15 = vadd.f32 %v2961_v17, %v2836_v49 }
 0x4a5   : > { %v3500_v5 = vpop.f32.mrb[10].mxu0  ;;  %v2963_v52 = vadd.f32 %v3497_v0, %v2962_v15  ;;  %v3524_v6 = vpop.f32.mrb[10].mxu1 }
 0x4a6   : > { %v2846_v47 = vpop.f32.mrb[11].mxu0  ;;  %v2926_v62 = vpop.f32.mrb[11].mxu1 }
 0x4a7   : > { %v2964_v58 = vadd.f32 %v2963_v52, %v2846_v47 }
 0x4a9   : > { %v3503_v42 = vpop.f32.mrb[12].mxu0  ;;  %v2965_v34 = vadd.f32 %v3500_v5, %v2964_v58  ;;  %v3527_v24 = vpop.f32.mrb[12].mxu1 }
 0x4aa   : > { %v2856_v14 = vpop.f32.mrb[13].mxu0  ;;  %v2936_v41 = vpop.f32.mrb[13].mxu1 }
 0x4ab   : > { %v2966_v32 = vadd.f32 %v2965_v34, %v2856_v14 }
 0x4ad   : > { %v3506_v40 = vpop.f32.mrb[14].mxu0  ;;  %v2967_v28 = vadd.f32 %v3503_v42, %v2966_v32  ;;  %v3530_v50 = vpop.f32.mrb[14].mxu1 }
 0x4ae   : > { %v2866_v31 = vpop.f32.mrb[15].mxu0  ;;  %v2946_v39 = vpop.f32.mrb[15].mxu1 }
 0x4af   : > { %v2968_v33 = vadd.f32 %v2967_v28, %v2866_v31 }
 0x4b1   : > { %v2969_v23 = vadd.f32 %v3506_v40, %v2968_v33 }
 0x4b3   : > { %v2970_v21 = vadd.f32 %v2969_v23, %v2876_v54 }
 0x4b5   : > { %v2971_v30 = vadd.f32 %v3509_v2, %v2970_v21 }
 0x4b7   : > { %v2972_v22 = vadd.f32 %v2971_v30, %v2886_v19 }
 0x4b9   : > { %v2973_v56 = vadd.f32 %v3512_v48, %v2972_v22 }
 0x4bb   : > { %v2974_v1 = vadd.f32 %v2973_v56, %v2896_v29 }
 0x4bd   : > { %v2975_v59 = vadd.f32 %v3515_v8, %v2974_v1 }
 0x4bf   : > { %v2976_v7 = vadd.f32 %v2975_v59, %v2906_v12 }
 0x4c1   : > { %v2977_v20 = vadd.f32 %v3518_v43, %v2976_v7 }
 0x4c3   : > { %v2978_v10 = vadd.f32 %v2977_v20, %v2916_v3 }
 0x4c5   : > { %v2979_v63 = vadd.f32 %v3521_v4, %v2978_v10 }
 0x4c7   : > { %v2980_v36 = vadd.f32 %v2979_v63, %v2926_v62 }
 0x4c9   : > { %v2981_v27 = vadd.f32 %v3524_v6, %v2980_v36 }
 0x4cb   : > { %v2982_v44 = vadd.f32 %v2981_v27, %v2936_v41 }
 0x4cd   : > { %v2983_v26 = vadd.f32 %v3527_v24, %v2982_v44 }
 0x4cf   : > { %v2984_v16 = vadd.f32 %v2983_v26, %v2946_v39 }
 0x4d1   : > { %v2985_v51 = vadd.f32 %v3530_v50, %v2984_v16 }
 0x4d3   : > { %v2986_v25 = vrot.slane %v2985_v51, 4 }
 0x4d5   : > { %v2987_v57 = vadd.f32 %v2986_v25, %v2985_v51 }
 0x4d7   : > { %v2988_v18 = vrot.slane %v2987_v57, 2 }
 0x4d9   : > { %v2989_v54 = vadd.f32 %v2988_v18, %v2987_v57 }
 0x4db   : > { %v2990_v2 = vrot.slane %v2989_v54, 1 }
 0x4dd   : > { %v2991_v9 = vadd.f32 %v2990_v2, %v2989_v54 }
 0x4df   : > { %v2993_v48 = vmul.f32 0.00390625, %v2991_v9 }
 0x4e1   : > { %v2995_v55 = vadd.f32 %v2994_v53, %v2993_v48 }
 0x4e3   : > { %2996 = vst [vmem:[%s4162_s26] sm:$0x1] %v2995_v55 }
 0x4e4 PF: > { %s3140_s22 = sshll.u32 %s4001_s9, 4  ;;  %s3010_s10 = sshll.u32 %s4162_s26, 4  ;;  %s3011_s10 = int_to_ptr.vmem [resolvable:$true] %s3010_s10 }
 0x4e5   : > { %s6024_s19 = scalar_lea.hbm %s6082_s8, %s3140_s22  ;;  %s6255_s11 = sand.u32 1, %s3989_s28  }
 0x4e6   : > { %s2998_s21 = scalar_lea.sflag [#allocation5], %s6255_s11  ;;  %s3915_s30 = scalar_lea.vmem %s3011_s10, 16 }
 0x4e7   : > { %p3916_p5 = scmp.ne.s32.totalorder %s3011_s10, %s3915_s30  ;;  %s4020_s29 = smov [#allocation4]  }
 0x4e8   : > { %s3919_s18 = sshll.u32 %s4020_s29, 4  ;;  %s3920_s18 = int_to_ptr.vmem [resolvable:$false] %s3919_s18 }
 0x4e9   : > { %p3917_p6 = pnand %p3916_p5, %p4115_p3  ;;  %s3921_s24 = scalar_lea.vmem %s3920_s18, 32 }
 0x4ea   : > { %p3922_p8 = scmp.lt.s32.totalorder %s3011_s10, %s3920_s18  ;;  %p3923_p10 = scmp.lt.s32.totalorder %s3921_s24, %s3915_s30 }
 0x4eb   : > { %p3918_p7 = pneg %p3917_p6 }
 0x4ec   : > { %p3924_p11 = por %p3923_p10, %p3922_p8 }
 0x4ee   : > { %p3925_p12 = pnand %p3924_p11, %p3918_p7 }
 0x4f0   : > { %3928 = shalt.err (!%p3925_p12)
}
 0x4f1   : > { %s3929_s9 = scalar_lea.hbm %s6024_s19, 16  ;;  %s3933_s14 = scalar_lea.hbm %s6082_s8, 32 }
 0x4f2   : > { %p3930_p13 = scmp.ne.s32.totalorder %s6024_s19, %s3929_s9  ;;  %p3934_p2 = scmp.lt.u32.totalorder %s6024_s19, %s6082_s8 }
 0x4f3   : > { %p3935_p4 = scmp.lt.u32.totalorder %s3933_s14, %s3929_s9  ;;  %p3937_p6 = scmp.lt.u32.totalorder %s3929_s9, %s6024_s19 }
 0x4f4   : > { %p3931_p0 = pnand %p3930_p13, %p4115_p3 }
 0x4f5   : > { %p3936_p5 = por %p3935_p4, %p3934_p2 }
 0x4f6   : > { %p3932_p1 = pneg %p3931_p0 }
 0x4f7   : > { %p3938_p7 = por %p3937_p6, %p3936_p5 }
 0x4f9   : > { %p3939_p8 = pnand %p3938_p7, %p3932_p1 }
 0x4fb   : > { %3942 = shalt.err (!%p3939_p8)
}
 0x4fc   : > { %3675 = dma.vmem_to_hbm [thread:$0]  (%p4115_p3), %s3011_s10, 16, %s6024_s19, %s2998_s21  }
 0x4fd PF: > { %s6256_s15 = sld [smem:[#allocation7_spill]]  ;;  %p3681_p10 = scmp.ge.s32.totalorder %s4013_s12, 2 }
 0x4ff   : > { %p3678_p11 = pnand %p3681_p10, %p4125_p9 }
 0x503   : > { %s3022_s22 = sand.u32 1, %s6256_s15  }
 0x504   : > { %s3023_s16 = scalar_lea.sflag [#allocation5], %s3022_s22 }
 0x505   : > { %3980 = dma.done.wait (!%p3678_p11), %s3023_s16, 16  }
 0x506   : > { %3982 = vsyncadd (!%p3678_p11), %s3023_s16, 4294967280  ;;  %s21_s12 = sadd.s32 1, %s4013_s12   ;;  %s6258_s13 = sld [smem:[#allocation8_spill]] }
 0x507   : > { %p18_p12 = scmp.ge.s32.totalorder %s21_s12, 6   ;;  %s6259_s29 = sld [smem:[#allocation14_spill]] }
 0x508   : > { %s6260_s30 = sld [smem:[#allocation9_spill]]  ;;  %s6261_s9 = sld [smem:[#allocation10_spill]] }
 0x509   : > { %s6262_s10 = sld [smem:[#allocation11_spill]]  ;;  %s6263_s11 = sld [smem:[#allocation12_spill]] }
 0x50a   : > { %s6264_s27 = smov %s3989_s28  ;;  %20 = sbr.rel (!%p18_p12) target bundleno = 5 (0x5), region = 131 }
 0x50c   : > { %s6265_s28 = smov %s6258_s13 }
 0x511   :  { %3027 = vsyncpa [#allocation5], 1 }
 0x512   :  { %3029 = vsyncpa [#allocation5 + $0x1], 1 }

</bundles_post_ra>
